<compile_context>
chip_gen: v7x
topology: tpu7x:2x2x1
jax: 0.10.0
libtpu: 0.0.40
codegen_flags: <defaults>
</compile_context>

<pallas_src>
import jax
import jax.numpy as jnp
from jax.experimental import pallas as pl
from jax.experimental.pallas import tpu as pltpu

_SUBLANE = 8
# Below this many matmul FLOPs a pallas_call launch is pure overhead; XLA's
# fused matmul+bias is already at HBM roofline for such sizes.
_MIN_FLOPS_FOR_PALLAS = 1_000_000


def _round_up(x: int, m: int) -> int:
    return (x + m - 1) // m * m


def _choose_row_tile(n: int, block_rows: int) -> int:
    """Row tile: multiple of 8 sublanes.  For large N force an even number of
    grid steps (>=2) so v7x's two TensorCores get a balanced 'parallel' split;
    v5e/v6e (single TC) are unaffected."""
    steps = pl.cdiv(n, block_rows)
    if n >= 2048:
        steps = max(steps, 2)
    if steps > 1 and steps % 2:
        steps += 1
    tm = _round_up(pl.cdiv(n, steps), _SUBLANE)
    return min(tm, _round_up(n, _SUBLANE))


# ----------------------------- kernels --------------------------------------


def _logits_kernel(x_ref, w_ref, b_ref, o_ref):
    # MXU matmul with f32 accumulation + VPU bias broadcast-add.
    acc = jnp.dot(x_ref[...], w_ref[...], preferred_element_type=jnp.float32)
    o_ref[...] = (acc + b_ref[...]).astype(o_ref.dtype)


def _argmax_kernel(x_ref, w_ref, b_ref, o_ref):
    # Fused logits + per-row argmax (first occurrence on ties), so only one
    # int32 per row ever hits HBM.
    logits = (
        jnp.dot(x_ref[...], w_ref[...], preferred_element_type=jnp.float32)
        + b_ref[...]
    )
    c = logits.shape[1]
    row_max = jnp.max(logits, axis=1, keepdims=True)
    col = jax.lax.broadcasted_iota(jnp.int32, logits.shape, 1)
    idx = jnp.min(jnp.where(logits == row_max, col, c), axis=1, keepdims=True)
    o_ref[...] = idx.astype(jnp.int32)


# ----------------------------- wrappers --------------------------------------


def prepare_classifier_params(weight, bias):
    """Hoist the per-call W.T transpose / bias reshape out of the forward path.

    Call once at init and reuse (w_t, b2) for every forward/predict call.
      weight: (n_classes, n_inputs)  ->  w_t: (n_inputs, n_classes)
      bias:   (n_classes,)           ->  b2:  (1, n_classes)
    """
    return weight.T, bias.reshape(1, -1)


def _pallas_linear(kernel, x, w_t, b2, out_dtype, out_cols, block_rows):
    n, d = x.shape
    c = w_t.shape[1]
    tm = _choose_row_tile(n, block_rows)
    grid = (pl.cdiv(n, tm),)  # ragged last block handled by Pallas masking

    # Double-buffered x/out tiles + resident W.T and bias, with headroom.
    # Kept well under v7x's 64 MiB physical / 32 MiB default scoped VMEM.
    itm = x.dtype.itemsize
    vmem_needed = 2 * tm * d * itm + 2 * tm * out_cols * 4 + (d * c + c) * 4
    vmem_limit = int(min(max(2 * vmem_needed, 16 * 2**20), 48 * 2**20))

    cost = pl.CostEstimate(
        flops=2 * n * d * c,  # real C, not a padded one
        transcendentals=0,
        bytes_accessed=n * d * itm
        + (d * c + c) * 4
        + n * out_cols * jnp.dtype(out_dtype).itemsize,
    )

    return pl.pallas_call(
        kernel,
        out_shape=jax.ShapeDtypeStruct((n, out_cols), out_dtype),
        grid=grid,
        in_specs=[
            pl.BlockSpec((tm, d), lambda i: (i, 0)),   # X row tile (pipelined)
            pl.BlockSpec((d, c), lambda i: (0, 0)),    # W.T VMEM-resident
            pl.BlockSpec((1, c), lambda i: (0, 0)),    # bias VMEM-resident
        ],
        out_specs=pl.BlockSpec((tm, out_cols), lambda i: (i, 0)),
        compiler_params=pltpu.CompilerParams(
            dimension_semantics=("parallel",),  # v7x: shard row steps over 2 TCs
            vmem_limit_bytes=vmem_limit,
        ),
        cost_estimate=cost,
    )(x, w_t, b2)


def forward_from_params(x, w_t, b2, *, block_rows: int = 8192,
                        use_bf16_inputs: bool = False):
    """logits = X @ w_t + b2 with pre-transposed params."""
    n, d = x.shape
    c = w_t.shape[1]
    if 2 * n * d * c < _MIN_FLOPS_FOR_PALLAS:
        return x @ w_t + b2  # tiny problem: let XLA fuse it
    if use_bf16_inputs:
        # Halves X-read bytes on the mem-bound path (biggest win on v5e);
        # MXU still accumulates in f32, logits stay f32.
        x = x.astype(jnp.bfloat16)
        w_t = w_t.astype(jnp.bfloat16)
    return _pallas_linear(_logits_kernel, x, w_t, b2, jnp.float32, c, block_rows)


def predict_from_params(x, w_t, b2, *, block_rows: int = 8192,
                        use_bf16_inputs: bool = False):
    """argmax over class logits, fused in-kernel (logits never hit HBM)."""
    n, d = x.shape
    c = w_t.shape[1]
    if 2 * n * d * c < _MIN_FLOPS_FOR_PALLAS:
        return jnp.argmax(x @ w_t + b2, axis=1)
    if use_bf16_inputs:
        x = x.astype(jnp.bfloat16)
        w_t = w_t.astype(jnp.bfloat16)
    out = _pallas_linear(_argmax_kernel, x, w_t, b2, jnp.int32, 1, block_rows)
    return out[:, 0]


def normals_cluster_classifier_forward(x, weight, bias, **kwargs):
    """Forward pass matching NormalsClusterClassifier.forward (nn.Linear)."""
    w_t, b2 = prepare_classifier_params(weight, bias)
    return forward_from_params(x, w_t, b2, **kwargs)


def normals_cluster_classifier_predict(x, weight, bias, **kwargs):
    """predict(): argmax over class logits."""
    w_t, b2 = prepare_classifier_params(weight, bias)
    return predict_from_params(x, w_t, b2, **kwargs)


def init_linear_params(key, n_inputs, n_classes, init_scale=1.0):
    """Deterministic init mimicking nn.Linear: U(-1/sqrt(in), 1/sqrt(in))."""
    kw, kb = jax.random.split(key)
    bound = init_scale / jnp.sqrt(jnp.float32(n_inputs))
    weight = jax.random.uniform(
        kw, (n_classes, n_inputs), jnp.float32, minval=-bound, maxval=bound)
    bias = jax.random.uniform(
        kb, (n_classes,), jnp.float32, minval=-bound, maxval=bound)
    return weight, bias


if __name__ == "__main__":
    key = jax.random.PRNGKey(0)
    k_x, k_params, k_tiny = jax.random.split(key, 3)

    # N points with n_inputs intra-cluster-distance features, n_classes
    # surface classes.  N is not a multiple of the row tile -> exercises the
    # ragged last block and the 2-step (v7x-balanced) grid.
    N = 5000
    N_INPUTS = 32
    N_CLASSES = 8

    x = jax.random.normal(k_x, (N, N_INPUTS), dtype=jnp.float32)
    weight, bias = init_linear_params(k_params, N_INPUTS, N_CLASSES)

    ref = x @ weight.T + bias

    # Forward (Pallas path).
    logits = jax.block_until_ready(
        normals_cluster_classifier_forward(x, weight, bias))
    assert logits.shape == (N, N_CLASSES)
    assert logits.dtype == jnp.float32
    assert jnp.allclose(logits, ref, atol=1e-5, rtol=1e-5)

    # predict(): fused in-kernel argmax; must match argmax of the
    # (bit-identical) Pallas logits, and agree with the XLA ref up to float ties.
    preds = jax.block_until_ready(
        normals_cluster_classifier_predict(x, weight, bias))
    assert preds.shape == (N,)
    assert jnp.array_equal(preds, jnp.argmax(logits, axis=1))
    agree = jnp.mean((preds == jnp.argmax(ref, axis=1)).astype(jnp.float32))
    assert agree >= 0.999

    # Optional bf16-input path (halves X-read bytes; mainly for v5e).
    logits_bf16 = jax.block_until_ready(
        normals_cluster_classifier_forward(x, weight, bias,
                                           use_bf16_inputs=True))
    assert jnp.allclose(logits_bf16, ref, atol=5e-2, rtol=5e-2)

    # Tiny-input fallback path (plain jnp, no Pallas launch).
    x_tiny = jax.random.normal(k_tiny, (8, N_INPUTS), dtype=jnp.float32)
    logits_tiny = jax.block_until_ready(
        normals_cluster_classifier_forward(x_tiny, weight, bias))
    assert jnp.allclose(logits_tiny, x_tiny @ weight.T + bias,
                        atol=1e-5, rtol=1e-5)

    print("KERNEL_OK")
</pallas_src>

<mosaic_0001>
module attributes {stable_mosaic.version = 11 : i64} {
  func.func @_logits_kernel(%arg0: i32, %arg1: memref<2504x32xf32, #tpu.memory_space<vmem>>, %arg2: memref<32x8xf32, #tpu.memory_space<vmem>>, %arg3: memref<1x8xf32, #tpu.memory_space<vmem>>, %arg4: memref<2504x8xf32, #tpu.memory_space<vmem>>) attributes {dimension_semantics = [#tpu.dimension_semantics<parallel>], iteration_bounds = array<i64: 2>, scalar_prefetch = 0 : i64, scratch_operands = 0 : i64, tpu.core_type = #tpu.core_type<tc>, window_params = [{transform_indices = @transform_0, window_bounds = array<i64: 2504, 32>}, {pipeline_mode = #tpu.pipeline_mode<synchronous>, transform_indices = @transform_1, window_bounds = array<i64: 32, 8>}, {pipeline_mode = #tpu.pipeline_mode<synchronous>, transform_indices = @transform_2, window_bounds = array<i64: 1, 8>}, {transform_indices = @transform_3, window_bounds = array<i64: 2504, 8>}]} {
    %c0 = arith.constant 0 : index
    %c0_0 = arith.constant 0 : index
    %0 = vector.load %arg1[%c0, %c0_0] : memref<2504x32xf32, #tpu.memory_space<vmem>>, vector<2504x32xf32>
    %c0_1 = arith.constant 0 : index
    %c0_2 = arith.constant 0 : index
    %1 = vector.load %arg2[%c0_1, %c0_2] : memref<32x8xf32, #tpu.memory_space<vmem>>, vector<32x8xf32>
    %cst = arith.constant dense<0.000000e+00> : vector<2504x8xf32>
    %2 = tpu.matmul %0, %1, %cst {dimension_numbers = #tpu.dot_dimension_numbers<[1], [0], [0], [1], [0, 0, 1, 1], [], []>} : vector<2504x32xf32>, vector<32x8xf32>, vector<2504x8xf32> -> vector<2504x8xf32>
    %c0_3 = arith.constant 0 : index
    %c0_4 = arith.constant 0 : index
    %3 = vector.load %arg3[%c0_3, %c0_4] : memref<1x8xf32, #tpu.memory_space<vmem>>, vector<1x8xf32>
    %4 = vector.broadcast %3 : vector<1x8xf32> to vector<2504x8xf32>
    %5 = arith.addf %2, %4 : vector<2504x8xf32>
    %c0_5 = arith.constant 0 : index
    %c0_6 = arith.constant 0 : index
    %6 = vector.load %arg4[%c0_5, %c0_6] : memref<2504x8xf32, #tpu.memory_space<vmem>>, vector<2504x8xf32>
    tpu.vector_store %arg4[%c0_5, %c0_6], %5 {strides = array<i32>} : memref<2504x8xf32, #tpu.memory_space<vmem>>, vector<2504x8xf32>,
    return
  }
  func.func @transform_0(%arg0: i32) -> (i32, i32) {
    %c0_i32 = arith.constant 0 : i32
    %c0_i32_0 = arith.constant 0 : i32
    return %arg0, %c0_i32 : i32, i32
  }
  func.func @transform_1(%arg0: i32) -> (i32, i32) {
    %c0_i32 = arith.constant 0 : i32
    %c0_i32_0 = arith.constant 0 : i32
    %c0_i32_1 = arith.constant 0 : i32
    return %c0_i32, %c0_i32_0 : i32, i32
  }
  func.func @transform_2(%arg0: i32) -> (i32, i32) {
    %c0_i32 = arith.constant 0 : i32
    %c0_i32_0 = arith.constant 0 : i32
    %c0_i32_1 = arith.constant 0 : i32
    return %c0_i32, %c0_i32_0 : i32, i32
  }
  func.func @transform_3(%arg0: i32) -> (i32, i32) {
    %c0_i32 = arith.constant 0 : i32
    %c0_i32_0 = arith.constant 0 : i32
    return %arg0, %c0_i32 : i32, i32
  }
}

</mosaic_0001>

<bundles_post_ra>
// kernel: tpu_custom_call.1
= control target key start
LH: loop header
LB: loop body
LE: loop exit
PB: predicated region body
PF: predicated region fallthrough
CT: control target
= control target key end

     0   :  { %s5684_s12 = smov 0   ;;  %s5686_s13 = smov 0   ;;  %s8155_s0 = inlined_call_operand.vmem [shape: f32[5000,32], index: 0, kind: input, shape index: {}]   ;;  %s8156_s1 = inlined_call_operand.vmem [shape: f32[32,8], index: 1, kind: input, shape index: {}]   ;;  %s8157_s2 = inlined_call_operand.vmem [shape: f32[1,8], index: 2, kind: input, shape index: {}]   ;;  %s8158_s3 = inlined_call_operand.vmem [shape: f32[5000,8], index: 3, kind: output, shape index: {}]  }
   0x1   :  { %s5688_s14 = smov 0  }
   0x2 LB: > { %s5697_s15 = sadd.s32 4294967295, %s5627_s14   ;;  %s5699_s16 = sadd.s32 1, %s5627_s14   ;;  %s5627_s14 = sphi %s5688_s14, %s8167_s14   ;;  %s5623_s13 = sphi %s5686_s13, %s8166_s13   ;;  %s5619_s12 = sphi %s5684_s12, %s8165_s12  }
   0x3   : > { %s85_s17 = ssub.s32 %s5627_s14, %s5699_s16  ;;  %s88_s18 = sadd.s32 1, %s5623_s13 }
   0x4   : > { %p86_p0 = scmp.eq.s32.totalorder %s85_s17, 0  ;;  %p98_p1 = scmp.ne.s32.totalorder %s5623_s13, %s5619_s12 }
   0x5   : > { %p99_p2 = scmp.eq.s32.totalorder %s5697_s15, 1  ;;  %p3870_p3 = scmp.ge.s32.totalorder %s5627_s14, 1 }
   0x6   : > { %s5707_s19 = scalar_select %p86_p0, %s5623_s13, %s88_s18  }
   0x7   : > { %p5709_p4 = por %p99_p2, %p98_p1  ;;  %p146_p5 = scmp.lt.s32.totalorder %s5627_s14, 3 }
   0x9   : > { %p147_p6 = pnand %p3870_p3, %p146_p5 }
   0xa   : > { %v505_v0 = vld [vmem:[%s8156_s1] sm:$0xff] (!%p147_p6)  ;;  %v506_v1 = vld [vmem:[%s8156_s1 + $0x8] sm:$0xff] (!%p147_p6)  ;;  %v507_v2 = vld [vmem:[%s8156_s1 + $0x10] sm:$0xff] (!%p147_p6)  ;;  %v5661_v3 = vmov (!%p147_p6), 0.0|0.0   ;;  %s5726_s29 = smul.u32 (!%p147_p6), 313, %s5697_s15  ;;  %vm5662_vm0 = vmmov (!%p147_p6), 0  }
   0xb   : > { %150 = sbr.rel (%p147_p6) target bundleno = 934 (0x3a6), region = 32  ;;  %5468 = vmatprep.subr.bf16.mxu0 (!%p147_p6), %v5661_v3  ;;  %v5469_v4 = vpack.c.bf16 (!%p147_p6), %v506_v1, %v505_v0  ;;  %5474 = vmatprep.subr.bf16.mxu1 (!%p147_p6), %v5661_v3  ;;  %v508_v5 = vld [vmem:[%s8156_s1 + $0x18] sm:$0xff] (!%p147_p6)  ;;  %v5663_v6 = vmov (!%p147_p6), 0.0   ;;  %vm516_vm1 = vcmask (!%p147_p6), 261120   ;;  %s170_s8 = sand.u32 (!%p147_p6), 1, %s5619_s12   ;;  %vm3086_vm2 = vcmask (!%p147_p6), 64512  }
   0xc   : > { %4529 = vmatprep.mubr.msk.f32.mxu0 (!%p147_p6), %vm5662_vm0, %v5663_v6  ;;  %5000 = vmatprep.mubr.msk.f32.mxu1 (!%p147_p6), %vm5662_vm0, %v5663_v6  ;;  %v5472_v7 = vpack.c.bf16 (!%p147_p6), %v508_v5, %v507_v2  ;;  %p178_p7 = scmp.lt.s32.totalorder (!%p147_p6), %s5726_s29, 624  ;;  %s5478_s9 = smul.u32 (!%p147_p6), 2504, %s170_s8 }
   0xd   : > { %5470 = vmatpush3.bf16.msra.mxu0 (!%p147_p6), %v5469_v4  ;;  %5476 = vmatpush3.bf16.msra.mxu1 (!%p147_p6), %v5469_v4 }
   0xe   : > { %5471 = vmatprep.subr.bf16.mxu0 (!%p147_p6), %v5661_v3  ;;  %5475 = vmatprep.subr.bf16.mxu1 (!%p147_p6), %v5661_v3  ;;  %s6181_s12 = scalar_lea.vmem (!%p147_p6), [#allocation2], %s5478_s9  }
  0x11   : > { %5473 = vmatpush3.bf16.msra.mxu0 (!%p147_p6), %v5472_v7  ;;  %5477 = vmatpush3.bf16.msra.mxu1 (!%p147_p6), %v5472_v7 }
  0x12   : > { %s179_s30 = scalar_select %p178_p7, %s5726_s29, 624 }
  0x13   : > { %s3408_s24 = ssub.s32 (%p5709_p4), 625, %s5726_s29  ;;  %s4201_s25 = smul.u32 (%p5709_p4), 2504, %s5697_s15 }
  0x14   : > { %s3871_s4 = sshll.u32 %s179_s30, 3  ;;  %p3409_p8 = scmp.lt.s32.totalorder (%p5709_p4), %s3408_s24, 313 }
  0x15   : > { %s5737_s7 = scalar_lea.vmem %s8155_s0, %s3871_s4  ;;  %s7956_s28 = scalar_lea.vmem (%p5709_p4), %s8158_s3, %s4201_s25  }
  0x16   : > { %v192_v8 = vld [vmem:[%s5737_s7] sm:$0xff]  ;;  %v349_v9 = vld [vmem:[%s5737_s7 + $0x4e8] sm:$0xff]  ;;  %v350_v11 = vld [vmem:[%s5737_s7 + $0x4f0] sm:$0xff] }
  0x17   : > { %4530 = vmatmul.mubr.msk.f32.vlgmr.msra.gmra.mrb[0].mxu0 %vm516_vm1, %v192_v8  ;;  %5001 = vmatmul.mubr.msk.f32.vlgmr.msra.gmra.mrb[0].mxu1 %vm516_vm1, %v349_v9  ;;  %v193_v10 = vld [vmem:[%s5737_s7 + $0x8] sm:$0xff]  ;;  %v194_v12 = vld [vmem:[%s5737_s7 + $0x10] sm:$0xff]  ;;  %v351_v13 = vld [vmem:[%s5737_s7 + $0x4f8] sm:$0xff] }
  0x18   : > { %4532 = vmatprep.mubr.msk.f32.mxu0 %vm5662_vm0, %v5663_v6  ;;  %5003 = vmatprep.mubr.msk.f32.mxu1 %vm5662_vm0, %v5663_v6  ;;  %v195_v14 = vld [vmem:[%s5737_s7 + $0x18] sm:$0xff]  ;;  %v352_v15 = vld [vmem:[%s5737_s7 + $0x500] sm:$0xff]  ;;  %v353_v17 = vld [vmem:[%s5737_s7 + $0x508] sm:$0xff] }
  0x19   : > { %v196_v16 = vld [vmem:[%s5737_s7 + $0x20] sm:$0xff]  ;;  %v197_v18 = vld [vmem:[%s5737_s7 + $0x28] sm:$0xff]  ;;  %v354_v19 = vld [vmem:[%s5737_s7 + $0x510] sm:$0xff] }
  0x1a   : > { %v198_v20 = vld [vmem:[%s5737_s7 + $0x30] sm:$0xff]  ;;  %v355_v21 = vld [vmem:[%s5737_s7 + $0x518] sm:$0xff]  ;;  %v356_v23 = vld [vmem:[%s5737_s7 + $0x520] sm:$0xff] }
  0x1b   : > { %4533 = vmatmul.mubr.msk.f32.gmra.mrb[2].mxu0 %vm516_vm1, %v193_v10  ;;  %5004 = vmatmul.mubr.msk.f32.gmra.mrb[2].mxu1 %vm516_vm1, %v350_v11  ;;  %v199_v22 = vld [vmem:[%s5737_s7 + $0x38] sm:$0xff]  ;;  %v200_v24 = vld [vmem:[%s5737_s7 + $0x40] sm:$0xff]  ;;  %v357_v25 = vld [vmem:[%s5737_s7 + $0x528] sm:$0xff] }
  0x1c   : > { %4535 = vmatprep.mubr.msk.f32.mxu0 %vm5662_vm0, %v5663_v6  ;;  %5006 = vmatprep.mubr.msk.f32.mxu1 %vm5662_vm0, %v5663_v6  ;;  %v201_v26 = vld [vmem:[%s5737_s7 + $0x48] sm:$0xff]  ;;  %v358_v27 = vld [vmem:[%s5737_s7 + $0x530] sm:$0xff]  ;;  %v359_v29 = vld [vmem:[%s5737_s7 + $0x538] sm:$0xff] }
  0x1d   : > { %v202_v28 = vld [vmem:[%s5737_s7 + $0x50] sm:$0xff]  ;;  %v203_v30 = vld [vmem:[%s5737_s7 + $0x58] sm:$0xff]  ;;  %v360_v31 = vld [vmem:[%s5737_s7 + $0x540] sm:$0xff] }
  0x1e   : > { %v204_v32 = vld [vmem:[%s5737_s7 + $0x60] sm:$0xff]  ;;  %v361_v33 = vld [vmem:[%s5737_s7 + $0x548] sm:$0xff]  ;;  %v362_v35 = vld [vmem:[%s5737_s7 + $0x550] sm:$0xff] }
  0x1f   : > { %4536 = vmatmul.mubr.msk.f32.gmra.mrb[4].mxu0 %vm516_vm1, %v194_v12  ;;  %5007 = vmatmul.mubr.msk.f32.gmra.mrb[4].mxu1 %vm516_vm1, %v351_v13  ;;  %v205_v34 = vld [vmem:[%s5737_s7 + $0x68] sm:$0xff]  ;;  %v206_v36 = vld [vmem:[%s5737_s7 + $0x70] sm:$0xff]  ;;  %v363_v37 = vld [vmem:[%s5737_s7 + $0x558] sm:$0xff] }
  0x20   : > { %4538 = vmatprep.mubr.msk.f32.mxu0 %vm5662_vm0, %v5663_v6  ;;  %5009 = vmatprep.mubr.msk.f32.mxu1 %vm5662_vm0, %v5663_v6  ;;  %v207_v38 = vld [vmem:[%s5737_s7 + $0x78] sm:$0xff]  ;;  %v364_v39 = vld [vmem:[%s5737_s7 + $0x560] sm:$0xff]  ;;  %v365_v41 = vld [vmem:[%s5737_s7 + $0x568] sm:$0xff] }
  0x21   : > { %v208_v40 = vld [vmem:[%s5737_s7 + $0x80] sm:$0xff]  ;;  %v209_v42 = vld [vmem:[%s5737_s7 + $0x88] sm:$0xff]  ;;  %v366_v43 = vld [vmem:[%s5737_s7 + $0x570] sm:$0xff] }
  0x22   : > { %v210_v44 = vld [vmem:[%s5737_s7 + $0x90] sm:$0xff]  ;;  %v367_v45 = vld [vmem:[%s5737_s7 + $0x578] sm:$0xff]  ;;  %v368_v47 = vld [vmem:[%s5737_s7 + $0x580] sm:$0xff] }
  0x23   : > { %4539 = vmatmul.mubr.msk.f32.gmra.mrb[6].mxu0 %vm516_vm1, %v195_v14  ;;  %5010 = vmatmul.mubr.msk.f32.gmra.mrb[6].mxu1 %vm516_vm1, %v352_v15  ;;  %v211_v46 = vld [vmem:[%s5737_s7 + $0x98] sm:$0xff]  ;;  %v212_v48 = vld [vmem:[%s5737_s7 + $0xa0] sm:$0xff]  ;;  %v369_v49 = vld [vmem:[%s5737_s7 + $0x588] sm:$0xff] }
  0x24   : > { %4541 = vmatprep.mubr.msk.f32.mxu0 %vm5662_vm0, %v5663_v6  ;;  %5012 = vmatprep.mubr.msk.f32.mxu1 %vm5662_vm0, %v5663_v6  ;;  %v213_v50 = vld [vmem:[%s5737_s7 + $0xa8] sm:$0xff]  ;;  %v370_v51 = vld [vmem:[%s5737_s7 + $0x590] sm:$0xff]  ;;  %v371_v53 = vld [vmem:[%s5737_s7 + $0x598] sm:$0xff] }
  0x25   : > { %v214_v52 = vld [vmem:[%s5737_s7 + $0xb0] sm:$0xff]  ;;  %v215_v54 = vld [vmem:[%s5737_s7 + $0xb8] sm:$0xff]  ;;  %v372_v55 = vld [vmem:[%s5737_s7 + $0x5a0] sm:$0xff] }
  0x26   : > { %v216_v56 = vld [vmem:[%s5737_s7 + $0xc0] sm:$0xff]  ;;  %v373_v57 = vld [vmem:[%s5737_s7 + $0x5a8] sm:$0xff]  ;;  %v374_v59 = vld [vmem:[%s5737_s7 + $0x5b0] sm:$0xff] }
  0x27   : > { %4542 = vmatmul.mubr.msk.f32.gmra.mrb[8].mxu0 %vm516_vm1, %v196_v16  ;;  %5013 = vmatmul.mubr.msk.f32.gmra.mrb[8].mxu1 %vm516_vm1, %v353_v17  ;;  %v217_v58 = vld [vmem:[%s5737_s7 + $0xc8] sm:$0xff]  ;;  %v218_v60 = vld [vmem:[%s5737_s7 + $0xd0] sm:$0xff]  ;;  %v375_v61 = vld [vmem:[%s5737_s7 + $0x5b8] sm:$0xff] }
  0x28   : > { %4544 = vmatprep.mubr.msk.f32.mxu0 %vm5662_vm0, %v5663_v6  ;;  %5015 = vmatprep.mubr.msk.f32.mxu1 %vm5662_vm0, %v5663_v6  ;;  %v219_v62 = vld [vmem:[%s5737_s7 + $0xd8] sm:$0xff]  ;;  %v376_v63 = vld [vmem:[%s5737_s7 + $0x5c0] sm:$0xff]  ;;  %v377_v1 = vld [vmem:[%s5737_s7 + $0x5c8] sm:$0xff] }
  0x29   : > { %v220_v0 = vld [vmem:[%s5737_s7 + $0xe0] sm:$0xff]  ;;  %v221_v2 = vld [vmem:[%s5737_s7 + $0xe8] sm:$0xff]  ;;  %v378_v3 = vld [vmem:[%s5737_s7 + $0x5d0] sm:$0xff] }
  0x2a   : > { %v222_v4 = vld [vmem:[%s5737_s7 + $0xf0] sm:$0xff]  ;;  %v379_v5 = vld [vmem:[%s5737_s7 + $0x5d8] sm:$0xff]  ;;  %v380_v8 = vld [vmem:[%s5737_s7 + $0x5e0] sm:$0xff] }
  0x2b   : > { %4545 = vmatmul.mubr.msk.f32.gmra.mrb[10].mxu0 %vm516_vm1, %v197_v18  ;;  %5016 = vmatmul.mubr.msk.f32.gmra.mrb[10].mxu1 %vm516_vm1, %v354_v19  ;;  %v223_v7 = vld [vmem:[%s5737_s7 + $0xf8] sm:$0xff]  ;;  %v224_v9 = vld [vmem:[%s5737_s7 + $0x100] sm:$0xff]  ;;  %v381_v10 = vld [vmem:[%s5737_s7 + $0x5e8] sm:$0xff] }
  0x2c   : > { %4547 = vmatprep.mubr.msk.f32.mxu0 %vm5662_vm0, %v5663_v6  ;;  %5018 = vmatprep.mubr.msk.f32.mxu1 %vm5662_vm0, %v5663_v6  ;;  %v225_v11 = vld [vmem:[%s5737_s7 + $0x108] sm:$0xff]  ;;  %v382_v12 = vld [vmem:[%s5737_s7 + $0x5f0] sm:$0xff]  ;;  %v383_v14 = vld [vmem:[%s5737_s7 + $0x5f8] sm:$0xff] }
  0x2d   : > { %v226_v13 = vld [vmem:[%s5737_s7 + $0x110] sm:$0xff]  ;;  %v227_v15 = vld [vmem:[%s5737_s7 + $0x118] sm:$0xff]  ;;  %v384_v16 = vld [vmem:[%s5737_s7 + $0x600] sm:$0xff] }
  0x2e   : > { %v228_v17 = vld [vmem:[%s5737_s7 + $0x120] sm:$0xff]  ;;  %v385_v18 = vld [vmem:[%s5737_s7 + $0x608] sm:$0xff] }
  0x2f   : > { %4548 = vmatmul.mubr.msk.f32.gmra.mrb[12].mxu0 %vm516_vm1, %v198_v20  ;;  %5019 = vmatmul.mubr.msk.f32.gmra.mrb[12].mxu1 %vm516_vm1, %v355_v21  ;;  %v229_v19 = vld [vmem:[%s5737_s7 + $0x128] sm:$0xff]  ;;  %v386_v20 = vld [vmem:[%s5737_s7 + $0x610] sm:$0xff] }
  0x30   : > { %4550 = vmatprep.mubr.msk.f32.mxu0 %vm5662_vm0, %v5663_v6  ;;  %5021 = vmatprep.mubr.msk.f32.mxu1 %vm5662_vm0, %v5663_v6  ;;  %v230_v21 = vld [vmem:[%s5737_s7 + $0x130] sm:$0xff] }
  0x33   : > { %4551 = vmatmul.mubr.msk.f32.gmra.mrb[14].mxu0 %vm516_vm1, %v199_v22  ;;  %5022 = vmatmul.mubr.msk.f32.gmra.mrb[14].mxu1 %vm516_vm1, %v356_v23  ;;  %v387_v22 = vld [vmem:[%s5737_s7 + $0x618] sm:$0xff] }
  0x34   : > { %4553 = vmatprep.mubr.msk.f32.mxu0 %vm5662_vm0, %v5663_v6  ;;  %5024 = vmatprep.mubr.msk.f32.mxu1 %vm5662_vm0, %v5663_v6  ;;  %v231_v23 = vld [vmem:[%s5737_s7 + $0x138] sm:$0xff] }
  0x37   : > { %4554 = vmatmul.mubr.msk.f32.gmra.mrb[16].mxu0 %vm516_vm1, %v200_v24  ;;  %5025 = vmatmul.mubr.msk.f32.gmra.mrb[16].mxu1 %vm516_vm1, %v357_v25  ;;  %v388_v24 = vld [vmem:[%s5737_s7 + $0x620] sm:$0xff] }
  0x38   : > { %4556 = vmatprep.mubr.msk.f32.mxu0 %vm5662_vm0, %v5663_v6  ;;  %5027 = vmatprep.mubr.msk.f32.mxu1 %vm5662_vm0, %v5663_v6  ;;  %v232_v25 = vld [vmem:[%s5737_s7 + $0x140] sm:$0xff] }
  0x3b   : > { %4557 = vmatmul.mubr.msk.f32.gmra.mrb[18].mxu0 %vm516_vm1, %v201_v26  ;;  %5028 = vmatmul.mubr.msk.f32.gmra.mrb[18].mxu1 %vm516_vm1, %v358_v27  ;;  %v389_v26 = vld [vmem:[%s5737_s7 + $0x628] sm:$0xff] }
  0x3c   : > { %4559 = vmatprep.mubr.msk.f32.mxu0 %vm5662_vm0, %v5663_v6  ;;  %5030 = vmatprep.mubr.msk.f32.mxu1 %vm5662_vm0, %v5663_v6  ;;  %v233_v27 = vld [vmem:[%s5737_s7 + $0x148] sm:$0xff] }
  0x3f   : > { %4560 = vmatmul.mubr.msk.f32.gmra.mrb[20].mxu0 %vm516_vm1, %v202_v28  ;;  %5031 = vmatmul.mubr.msk.f32.gmra.mrb[20].mxu1 %vm516_vm1, %v359_v29  ;;  %v390_v28 = vld [vmem:[%s5737_s7 + $0x630] sm:$0xff] }
  0x40   : > { %4562 = vmatprep.mubr.msk.f32.mxu0 %vm5662_vm0, %v5663_v6  ;;  %5033 = vmatprep.mubr.msk.f32.mxu1 %vm5662_vm0, %v5663_v6  ;;  %v234_v29 = vld [vmem:[%s5737_s7 + $0x150] sm:$0xff] }
  0x43   : > { %4563 = vmatmul.mubr.msk.f32.gmra.mrb[22].mxu0 %vm516_vm1, %v203_v30  ;;  %5034 = vmatmul.mubr.msk.f32.gmra.mrb[22].mxu1 %vm516_vm1, %v360_v31  ;;  %v391_v30 = vld [vmem:[%s5737_s7 + $0x638] sm:$0xff] }
  0x44   : > { %4565 = vmatprep.mubr.msk.f32.mxu0 %vm5662_vm0, %v5663_v6  ;;  %5036 = vmatprep.mubr.msk.f32.mxu1 %vm5662_vm0, %v5663_v6  ;;  %v235_v31 = vld [vmem:[%s5737_s7 + $0x158] sm:$0xff] }
  0x47   : > { %4566 = vmatmul.mubr.msk.f32.gmra.mrb[24].mxu0 %vm516_vm1, %v204_v32  ;;  %5037 = vmatmul.mubr.msk.f32.gmra.mrb[24].mxu1 %vm516_vm1, %v361_v33  ;;  %v392_v32 = vld [vmem:[%s5737_s7 + $0x640] sm:$0xff] }
  0x48   : > { %4568 = vmatprep.mubr.msk.f32.mxu0 %vm5662_vm0, %v5663_v6  ;;  %5039 = vmatprep.mubr.msk.f32.mxu1 %vm5662_vm0, %v5663_v6  ;;  %v236_v33 = vld [vmem:[%s5737_s7 + $0x160] sm:$0xff] }
  0x4b   : > { %4569 = vmatmul.mubr.msk.f32.gmra.mrb[26].mxu0 %vm516_vm1, %v205_v34  ;;  %5040 = vmatmul.mubr.msk.f32.gmra.mrb[26].mxu1 %vm516_vm1, %v362_v35  ;;  %v393_v34 = vld [vmem:[%s5737_s7 + $0x648] sm:$0xff] }
  0x4c   : > { %4571 = vmatprep.mubr.msk.f32.mxu0 %vm5662_vm0, %v5663_v6  ;;  %5042 = vmatprep.mubr.msk.f32.mxu1 %vm5662_vm0, %v5663_v6  ;;  %v237_v35 = vld [vmem:[%s5737_s7 + $0x168] sm:$0xff] }
  0x4f   : > { %4572 = vmatmul.mubr.msk.f32.gmra.mrb[28].mxu0 %vm516_vm1, %v206_v36  ;;  %5043 = vmatmul.mubr.msk.f32.gmra.mrb[28].mxu1 %vm516_vm1, %v363_v37  ;;  %v394_v36 = vld [vmem:[%s5737_s7 + $0x650] sm:$0xff] }
  0x50   : > { %4574 = vmatprep.mubr.msk.f32.mxu0 %vm5662_vm0, %v5663_v6  ;;  %5045 = vmatprep.mubr.msk.f32.mxu1 %vm5662_vm0, %v5663_v6  ;;  %v238_v37 = vld [vmem:[%s5737_s7 + $0x170] sm:$0xff] }
  0x53   : > { %4575 = vmatmul.mubr.msk.f32.gmra.mrb[30].mxu0 %vm516_vm1, %v207_v38  ;;  %5046 = vmatmul.mubr.msk.f32.gmra.mrb[30].mxu1 %vm516_vm1, %v364_v39  ;;  %v395_v38 = vld [vmem:[%s5737_s7 + $0x658] sm:$0xff] }
  0x54   : > { %4577 = vmatprep.mubr.msk.f32.mxu0 %vm5662_vm0, %v5663_v6  ;;  %5048 = vmatprep.mubr.msk.f32.mxu1 %vm5662_vm0, %v5663_v6  ;;  %v239_v39 = vld [vmem:[%s5737_s7 + $0x178] sm:$0xff] }
  0x57   : > { %4578 = vmatmul.mubr.msk.f32.gmra.mrb[32].mxu0 %vm516_vm1, %v208_v40  ;;  %5049 = vmatmul.mubr.msk.f32.gmra.mrb[32].mxu1 %vm516_vm1, %v365_v41  ;;  %v396_v40 = vld [vmem:[%s5737_s7 + $0x660] sm:$0xff] }
  0x58   : > { %4580 = vmatprep.mubr.msk.f32.mxu0 %vm5662_vm0, %v5663_v6  ;;  %5051 = vmatprep.mubr.msk.f32.mxu1 %vm5662_vm0, %v5663_v6  ;;  %v240_v41 = vld [vmem:[%s5737_s7 + $0x180] sm:$0xff] }
  0x5b   : > { %4581 = vmatmul.mubr.msk.f32.gmra.mrb[34].mxu0 %vm516_vm1, %v209_v42  ;;  %5052 = vmatmul.mubr.msk.f32.gmra.mrb[34].mxu1 %vm516_vm1, %v366_v43  ;;  %v397_v42 = vld [vmem:[%s5737_s7 + $0x668] sm:$0xff] }
  0x5c   : > { %4583 = vmatprep.mubr.msk.f32.mxu0 %vm5662_vm0, %v5663_v6  ;;  %5054 = vmatprep.mubr.msk.f32.mxu1 %vm5662_vm0, %v5663_v6  ;;  %v241_v43 = vld [vmem:[%s5737_s7 + $0x188] sm:$0xff] }
  0x5f   : > { %4584 = vmatmul.mubr.msk.f32.gmra.mrb[36].mxu0 %vm516_vm1, %v210_v44  ;;  %5055 = vmatmul.mubr.msk.f32.gmra.mrb[36].mxu1 %vm516_vm1, %v367_v45  ;;  %v398_v44 = vld [vmem:[%s5737_s7 + $0x670] sm:$0xff] }
  0x60   : > { %4586 = vmatprep.mubr.msk.f32.mxu0 %vm5662_vm0, %v5663_v6  ;;  %5057 = vmatprep.mubr.msk.f32.mxu1 %vm5662_vm0, %v5663_v6  ;;  %v242_v45 = vld [vmem:[%s5737_s7 + $0x190] sm:$0xff] }
  0x63   : > { %4587 = vmatmul.mubr.msk.f32.gmra.mrb[38].mxu0 %vm516_vm1, %v211_v46  ;;  %5058 = vmatmul.mubr.msk.f32.gmra.mrb[38].mxu1 %vm516_vm1, %v368_v47  ;;  %v399_v46 = vld [vmem:[%s5737_s7 + $0x678] sm:$0xff] }
  0x64   : > { %4589 = vmatprep.mubr.msk.f32.mxu0 %vm5662_vm0, %v5663_v6  ;;  %5060 = vmatprep.mubr.msk.f32.mxu1 %vm5662_vm0, %v5663_v6  ;;  %v243_v47 = vld [vmem:[%s5737_s7 + $0x198] sm:$0xff] }
  0x67   : > { %4590 = vmatmul.mubr.msk.f32.gmra.mrb[40].mxu0 %vm516_vm1, %v212_v48  ;;  %5061 = vmatmul.mubr.msk.f32.gmra.mrb[40].mxu1 %vm516_vm1, %v369_v49  ;;  %v400_v48 = vld [vmem:[%s5737_s7 + $0x680] sm:$0xff] }
  0x68   : > { %4592 = vmatprep.mubr.msk.f32.mxu0 %vm5662_vm0, %v5663_v6  ;;  %5063 = vmatprep.mubr.msk.f32.mxu1 %vm5662_vm0, %v5663_v6  ;;  %v244_v49 = vld [vmem:[%s5737_s7 + $0x1a0] sm:$0xff] }
  0x6b   : > { %4593 = vmatmul.mubr.msk.f32.gmra.mrb[42].mxu0 %vm516_vm1, %v213_v50  ;;  %5064 = vmatmul.mubr.msk.f32.gmra.mrb[42].mxu1 %vm516_vm1, %v370_v51  ;;  %v401_v50 = vld [vmem:[%s5737_s7 + $0x688] sm:$0xff]  ;;  %v6163_v51 = vld [vmem:[%s8157_s2] ss:$0 sm:$0xff] }
  0x6c   : > { %4595 = vmatprep.mubr.msk.f32.mxu0 %vm5662_vm0, %v5663_v6  ;;  %5066 = vmatprep.mubr.msk.f32.mxu1 %vm5662_vm0, %v5663_v6 }
  0x6f   : > { %4596 = vmatmul.mubr.msk.f32.gmra.mrb[44].mxu0 %vm516_vm1, %v214_v52  ;;  %5067 = vmatmul.mubr.msk.f32.gmra.mrb[44].mxu1 %vm516_vm1, %v371_v53  ;;  %v245_v52 = vld [vmem:[%s5737_s7 + $0x1a8] sm:$0xff]  ;;  %v402_v53 = vld [vmem:[%s5737_s7 + $0x690] sm:$0xff] }
  0x70   : > { %4598 = vmatprep.mubr.msk.f32.mxu0 %vm5662_vm0, %v5663_v6  ;;  %5069 = vmatprep.mubr.msk.f32.mxu1 %vm5662_vm0, %v5663_v6 }
  0x73   : > { %4599 = vmatmul.mubr.msk.f32.gmra.mrb[46].mxu0 %vm516_vm1, %v215_v54  ;;  %5070 = vmatmul.mubr.msk.f32.gmra.mrb[46].mxu1 %vm516_vm1, %v372_v55 }
  0x74   : > { %4601 = vmatprep.mubr.msk.f32.mxu0 %vm5662_vm0, %v5663_v6  ;;  %5072 = vmatprep.mubr.msk.f32.mxu1 %vm5662_vm0, %v5663_v6 }
  0x77   : > { %4602 = vmatmul.mubr.msk.f32.gmra.mrb[48].mxu0 %vm516_vm1, %v216_v56  ;;  %5073 = vmatmul.mubr.msk.f32.gmra.mrb[48].mxu1 %vm516_vm1, %v373_v57 }
  0x78   : > { %4604 = vmatprep.mubr.msk.f32.mxu0 %vm5662_vm0, %v5663_v6  ;;  %5075 = vmatprep.mubr.msk.f32.mxu1 %vm5662_vm0, %v5663_v6 }
  0x7b   : > { %4605 = vmatmul.mubr.msk.f32.gmra.mrb[50].mxu0 %vm516_vm1, %v217_v58  ;;  %5076 = vmatmul.mubr.msk.f32.gmra.mrb[50].mxu1 %vm516_vm1, %v374_v59 }
  0x7c   : > { %4607 = vmatprep.mubr.msk.f32.mxu0 %vm5662_vm0, %v5663_v6  ;;  %5078 = vmatprep.mubr.msk.f32.mxu1 %vm5662_vm0, %v5663_v6 }
  0x7f   : > { %4608 = vmatmul.mubr.msk.f32.gmra.mrb[52].mxu0 %vm516_vm1, %v218_v60  ;;  %5079 = vmatmul.mubr.msk.f32.gmra.mrb[52].mxu1 %vm516_vm1, %v375_v61  ;;  %v246_v60 = vld [vmem:[%s5737_s7 + $0x1b0] sm:$0xff]  ;;  %v403_v61 = vld [vmem:[%s5737_s7 + $0x698] sm:$0xff] }
  0x80   : > { %4610 = vmatprep.mubr.msk.f32.mxu0 %vm5662_vm0, %v5663_v6  ;;  %5081 = vmatprep.mubr.msk.f32.mxu1 %vm5662_vm0, %v5663_v6 }
  0x83   : > { %4611 = vmatmul.mubr.msk.f32.gmra.mrb[54].mxu0 %vm516_vm1, %v219_v62  ;;  %5082 = vmatmul.mubr.msk.f32.gmra.mrb[54].mxu1 %vm516_vm1, %v376_v63 }
  0x84   : > { %4613 = vmatprep.mubr.msk.f32.mxu0 %vm5662_vm0, %v5663_v6  ;;  %5084 = vmatprep.mubr.msk.f32.mxu1 %vm5662_vm0, %v5663_v6 }
  0x87   : > { %4614 = vmatmul.mubr.msk.f32.gmra.mrb[56].mxu0 %vm516_vm1, %v220_v0  ;;  %5085 = vmatmul.mubr.msk.f32.gmra.mrb[56].mxu1 %vm516_vm1, %v377_v1 }
  0x88   : > { %4616 = vmatprep.mubr.msk.f32.mxu0 %vm5662_vm0, %v5663_v6  ;;  %5087 = vmatprep.mubr.msk.f32.mxu1 %vm5662_vm0, %v5663_v6 }
  0x8b   : > { %4617 = vmatmul.mubr.msk.f32.gmra.mrb[58].mxu0 %vm516_vm1, %v221_v2  ;;  %5088 = vmatmul.mubr.msk.f32.gmra.mrb[58].mxu1 %vm516_vm1, %v378_v3 }
  0x8c   : > { %4619 = vmatprep.mubr.msk.f32.mxu0 %vm5662_vm0, %v5663_v6  ;;  %5090 = vmatprep.mubr.msk.f32.mxu1 %vm5662_vm0, %v5663_v6 }
  0x8f   : > { %4620 = vmatmul.mubr.msk.f32.gmra.mrb[60].mxu0 %vm516_vm1, %v222_v4  ;;  %5091 = vmatmul.mubr.msk.f32.gmra.mrb[60].mxu1 %vm516_vm1, %v379_v5  ;;  %v247_v4 = vld [vmem:[%s5737_s7 + $0x1b8] sm:$0xff]  ;;  %v404_v5 = vld [vmem:[%s5737_s7 + $0x6a0] sm:$0xff] }
  0x90   : > { %4622 = vmatprep.mubr.msk.f32.mxu0 %vm5662_vm0, %v5663_v6  ;;  %5093 = vmatprep.mubr.msk.f32.mxu1 %vm5662_vm0, %v5663_v6 }
  0x93   : > { %4623 = vmatmul.mubr.msk.f32.gmra.mrb[62].mxu0 %vm516_vm1, %v223_v7  ;;  %5094 = vmatmul.mubr.msk.f32.gmra.mrb[62].mxu1 %vm516_vm1, %v380_v8 }
  0x94   : > { %4625 = vmatprep.mubr.msk.f32.mxu0 %vm5662_vm0, %v5663_v6  ;;  %5096 = vmatprep.mubr.msk.f32.mxu1 %vm5662_vm0, %v5663_v6 }
  0x97   : > { %4626 = vmatmul.mubr.msk.f32.gmra.mrb[64].mxu0 %vm516_vm1, %v224_v9  ;;  %5097 = vmatmul.mubr.msk.f32.gmra.mrb[64].mxu1 %vm516_vm1, %v381_v10 }
  0x98   : > { %4628 = vmatprep.mubr.msk.f32.mxu0 %vm5662_vm0, %v5663_v6  ;;  %5099 = vmatprep.mubr.msk.f32.mxu1 %vm5662_vm0, %v5663_v6 }
  0x9b   : > { %4629 = vmatmul.mubr.msk.f32.gmra.mrb[66].mxu0 %vm516_vm1, %v225_v11  ;;  %5100 = vmatmul.mubr.msk.f32.gmra.mrb[66].mxu1 %vm516_vm1, %v382_v12 }
  0x9c   : > { %4631 = vmatprep.mubr.msk.f32.mxu0 %vm5662_vm0, %v5663_v6  ;;  %5102 = vmatprep.mubr.msk.f32.mxu1 %vm5662_vm0, %v5663_v6 }
  0x9f   : > { %4632 = vmatmul.mubr.msk.f32.gmra.mrb[68].mxu0 %vm516_vm1, %v226_v13  ;;  %5103 = vmatmul.mubr.msk.f32.gmra.mrb[68].mxu1 %vm516_vm1, %v383_v14  ;;  %v248_v13 = vld [vmem:[%s5737_s7 + $0x1c0] sm:$0xff]  ;;  %v405_v14 = vld [vmem:[%s5737_s7 + $0x6a8] sm:$0xff] }
  0xa0   : > { %4634 = vmatprep.mubr.msk.f32.mxu0 %vm5662_vm0, %v5663_v6  ;;  %5105 = vmatprep.mubr.msk.f32.mxu1 %vm5662_vm0, %v5663_v6 }
  0xa3   : > { %4635 = vmatmul.mubr.msk.f32.gmra.mrb[70].mxu0 %vm516_vm1, %v227_v15  ;;  %5106 = vmatmul.mubr.msk.f32.gmra.mrb[70].mxu1 %vm516_vm1, %v384_v16 }
  0xa4   : > { %4637 = vmatprep.mubr.msk.f32.mxu0 %vm5662_vm0, %v5663_v6  ;;  %5108 = vmatprep.mubr.msk.f32.mxu1 %vm5662_vm0, %v5663_v6 }
  0xa7   : > { %4638 = vmatmul.mubr.msk.f32.gmra.mrb[72].mxu0 %vm516_vm1, %v228_v17  ;;  %5109 = vmatmul.mubr.msk.f32.gmra.mrb[72].mxu1 %vm516_vm1, %v385_v18 }
  0xa8   : > { %4640 = vmatprep.mubr.msk.f32.mxu0 %vm5662_vm0, %v5663_v6  ;;  %5111 = vmatprep.mubr.msk.f32.mxu1 %vm5662_vm0, %v5663_v6 }
  0xab   : > { %4641 = vmatmul.mubr.msk.f32.gmra.mrb[74].mxu0 %vm516_vm1, %v229_v19  ;;  %5112 = vmatmul.mubr.msk.f32.gmra.mrb[74].mxu1 %vm516_vm1, %v386_v20 }
  0xac   : > { %4643 = vmatprep.mubr.msk.f32.mxu0 %vm5662_vm0, %v5663_v6  ;;  %5114 = vmatprep.mubr.msk.f32.mxu1 %vm5662_vm0, %v5663_v6 }
  0xaf   : > { %4644 = vmatmul.mubr.msk.f32.gmra.mrb[76].mxu0 %vm516_vm1, %v230_v21  ;;  %5115 = vmatmul.mubr.msk.f32.gmra.mrb[76].mxu1 %vm516_vm1, %v387_v22  ;;  %v249_v21 = vld [vmem:[%s5737_s7 + $0x1c8] sm:$0xff]  ;;  %v406_v22 = vld [vmem:[%s5737_s7 + $0x6b0] sm:$0xff] }
  0xb0   : > { %4646 = vmatprep.mubr.msk.f32.mxu0 %vm5662_vm0, %v5663_v6  ;;  %5117 = vmatprep.mubr.msk.f32.mxu1 %vm5662_vm0, %v5663_v6 }
  0xb3   : > { %4647 = vmatmul.mubr.msk.f32.gmra.mrb[78].mxu0 %vm516_vm1, %v231_v23  ;;  %5118 = vmatmul.mubr.msk.f32.gmra.mrb[78].mxu1 %vm516_vm1, %v388_v24 }
  0xb4   : > { %4649 = vmatprep.mubr.msk.f32.mxu0 %vm5662_vm0, %v5663_v6  ;;  %5120 = vmatprep.mubr.msk.f32.mxu1 %vm5662_vm0, %v5663_v6 }
  0xb7   : > { %4650 = vmatmul.mubr.msk.f32.gmra.mrb[80].mxu0 %vm516_vm1, %v232_v25  ;;  %5121 = vmatmul.mubr.msk.f32.gmra.mrb[80].mxu1 %vm516_vm1, %v389_v26 }
  0xb8   : > { %4652 = vmatprep.mubr.msk.f32.mxu0 %vm5662_vm0, %v5663_v6  ;;  %5123 = vmatprep.mubr.msk.f32.mxu1 %vm5662_vm0, %v5663_v6 }
  0xbb   : > { %4653 = vmatmul.mubr.msk.f32.gmra.mrb[82].mxu0 %vm516_vm1, %v233_v27  ;;  %5124 = vmatmul.mubr.msk.f32.gmra.mrb[82].mxu1 %vm516_vm1, %v390_v28 }
  0xbc   : > { %4655 = vmatprep.mubr.msk.f32.mxu0 %vm5662_vm0, %v5663_v6  ;;  %5126 = vmatprep.mubr.msk.f32.mxu1 %vm5662_vm0, %v5663_v6 }
  0xbf   : > { %4656 = vmatmul.mubr.msk.f32.gmra.mrb[84].mxu0 %vm516_vm1, %v234_v29  ;;  %5127 = vmatmul.mubr.msk.f32.gmra.mrb[84].mxu1 %vm516_vm1, %v391_v30  ;;  %v250_v29 = vld [vmem:[%s5737_s7 + $0x1d0] sm:$0xff]  ;;  %v407_v30 = vld [vmem:[%s5737_s7 + $0x6b8] sm:$0xff] }
  0xc0   : > { %4658 = vmatprep.mubr.msk.f32.mxu0 %vm5662_vm0, %v5663_v6  ;;  %5129 = vmatprep.mubr.msk.f32.mxu1 %vm5662_vm0, %v5663_v6 }
  0xc3   : > { %4659 = vmatmul.mubr.msk.f32.gmra.mrb[86].mxu0 %vm516_vm1, %v235_v31  ;;  %5130 = vmatmul.mubr.msk.f32.gmra.mrb[86].mxu1 %vm516_vm1, %v392_v32 }
  0xc4   : > { %4661 = vmatprep.mubr.msk.f32.mxu0 %vm5662_vm0, %v5663_v6  ;;  %5132 = vmatprep.mubr.msk.f32.mxu1 %vm5662_vm0, %v5663_v6 }
  0xc7   : > { %4662 = vmatmul.mubr.msk.f32.gmra.mrb[88].mxu0 %vm516_vm1, %v236_v33  ;;  %5133 = vmatmul.mubr.msk.f32.gmra.mrb[88].mxu1 %vm516_vm1, %v393_v34 }
  0xc8   : > { %4664 = vmatprep.mubr.msk.f32.mxu0 %vm5662_vm0, %v5663_v6  ;;  %5135 = vmatprep.mubr.msk.f32.mxu1 %vm5662_vm0, %v5663_v6 }
  0xcb   : > { %4665 = vmatmul.mubr.msk.f32.gmra.mrb[90].mxu0 %vm516_vm1, %v237_v35  ;;  %5136 = vmatmul.mubr.msk.f32.gmra.mrb[90].mxu1 %vm516_vm1, %v394_v36 }
  0xcc   : > { %4667 = vmatprep.mubr.msk.f32.mxu0 %vm5662_vm0, %v5663_v6  ;;  %5138 = vmatprep.mubr.msk.f32.mxu1 %vm5662_vm0, %v5663_v6 }
  0xcf   : > { %4668 = vmatmul.mubr.msk.f32.gmra.mrb[92].mxu0 %vm516_vm1, %v238_v37  ;;  %5139 = vmatmul.mubr.msk.f32.gmra.mrb[92].mxu1 %vm516_vm1, %v395_v38  ;;  %v251_v37 = vld [vmem:[%s5737_s7 + $0x1d8] sm:$0xff]  ;;  %v408_v38 = vld [vmem:[%s5737_s7 + $0x6c0] sm:$0xff] }
  0xd0   : > { %4670 = vmatprep.mubr.msk.f32.mxu0 %vm5662_vm0, %v5663_v6  ;;  %5141 = vmatprep.mubr.msk.f32.mxu1 %vm5662_vm0, %v5663_v6 }
  0xd3   : > { %4671 = vmatmul.mubr.msk.f32.gmra.mrb[94].mxu0 %vm516_vm1, %v239_v39  ;;  %5142 = vmatmul.mubr.msk.f32.gmra.mrb[94].mxu1 %vm516_vm1, %v396_v40 }
  0xd4   : > { %4673 = vmatprep.mubr.msk.f32.mxu0 %vm5662_vm0, %v5663_v6  ;;  %5144 = vmatprep.mubr.msk.f32.mxu1 %vm5662_vm0, %v5663_v6 }
  0xd7   : > { %4674 = vmatmul.mubr.msk.f32.gmra.mrb[96].mxu0 %vm516_vm1, %v240_v41  ;;  %5145 = vmatmul.mubr.msk.f32.gmra.mrb[96].mxu1 %vm516_vm1, %v397_v42 }
  0xd8   : > { %4676 = vmatprep.mubr.msk.f32.mxu0 %vm5662_vm0, %v5663_v6  ;;  %5147 = vmatprep.mubr.msk.f32.mxu1 %vm5662_vm0, %v5663_v6 }
  0xdb   : > { %4677 = vmatmul.mubr.msk.f32.gmra.mrb[98].mxu0 %vm516_vm1, %v241_v43  ;;  %5148 = vmatmul.mubr.msk.f32.gmra.mrb[98].mxu1 %vm516_vm1, %v398_v44 }
  0xdc   : > { %4679 = vmatprep.mubr.msk.f32.mxu0 %vm5662_vm0, %v5663_v6  ;;  %5150 = vmatprep.mubr.msk.f32.mxu1 %vm5662_vm0, %v5663_v6 }
  0xdf   : > { %4680 = vmatmul.mubr.msk.f32.gmra.mrb[100].mxu0 %vm516_vm1, %v242_v45  ;;  %5151 = vmatmul.mubr.msk.f32.gmra.mrb[100].mxu1 %vm516_vm1, %v399_v46  ;;  %v252_v45 = vld [vmem:[%s5737_s7 + $0x1e0] sm:$0xff]  ;;  %v409_v46 = vld [vmem:[%s5737_s7 + $0x6c8] sm:$0xff] }
  0xe0   : > { %4682 = vmatprep.mubr.msk.f32.mxu0 %vm5662_vm0, %v5663_v6  ;;  %5153 = vmatprep.mubr.msk.f32.mxu1 %vm5662_vm0, %v5663_v6 }
  0xe3   : > { %4683 = vmatmul.mubr.msk.f32.gmra.mrb[102].mxu0 %vm516_vm1, %v243_v47  ;;  %5154 = vmatmul.mubr.msk.f32.gmra.mrb[102].mxu1 %vm516_vm1, %v400_v48 }
  0xe4   : > { %4685 = vmatprep.mubr.msk.f32.mxu0 %vm5662_vm0, %v5663_v6  ;;  %5156 = vmatprep.mubr.msk.f32.mxu1 %vm5662_vm0, %v5663_v6 }
  0xe7   : > { %4686 = vmatmul.mubr.msk.f32.gmra.mrb[104].mxu0 %vm516_vm1, %v244_v49  ;;  %5157 = vmatmul.mubr.msk.f32.gmra.mrb[104].mxu1 %vm516_vm1, %v401_v50 }
  0xe8   : > { %4688 = vmatprep.mubr.msk.f32.mxu0 %vm5662_vm0, %v5663_v6  ;;  %5159 = vmatprep.mubr.msk.f32.mxu1 %vm5662_vm0, %v5663_v6 }
  0xea   : > { %v1522_v54 = vpop.f32.mrb[0].mxu0  ;;  %v2307_v55 = vpop.f32.mrb[0].mxu1 }
  0xeb   : > { %v1523_v56 = vadd.f32 %v6163_v51, %v1522_v54  ;;  %v4531_v57 = vpop.f32.mrb[1].mxu0  ;;  %4689 = vmatmul.mubr.msk.f32.gmra.mrb[106].mxu0 %vm516_vm1, %v245_v52  ;;  %v2308_v58 = vadd.f32 %v6163_v51, %v2307_v55  ;;  %v5002_v59 = vpop.f32.mrb[1].mxu1  ;;  %5160 = vmatmul.mubr.msk.f32.gmra.mrb[106].mxu1 %vm516_vm1, %v402_v53  ;;  %v253_v54 = vld [vmem:[%s5737_s7 + $0x1e8] sm:$0xff]  ;;  %v410_v55 = vld [vmem:[%s5737_s7 + $0x6d0] sm:$0xff] }
  0xec   : > { %4691 = vmatprep.mubr.msk.f32.mxu0 %vm5662_vm0, %v5663_v6  ;;  %5162 = vmatprep.mubr.msk.f32.mxu1 %vm5662_vm0, %v5663_v6 }
  0xed   : > { %3087 = vst.msk [vmem:[%s6181_s12] sm:$0xff] %vm3086_vm2, %v1523_v56  ;;  %3244 = vst.msk [vmem:[%s6181_s12 + $0x4e8] sm:$0xff] %vm3086_vm2, %v2308_v58 }
  0xee   : > { %v1527_v62 = vpop.f32.mrb[2].mxu0  ;;  %v2312_v63 = vpop.f32.mrb[2].mxu1 }
  0xef   : > { %v1528_v0 = vadd.f32 %v6163_v51, %v1527_v62  ;;  %v4534_v1 = vpop.f32.mrb[3].mxu0  ;;  %4692 = vmatmul.mubr.msk.f32.gmra.mrb[108].mxu0 %vm516_vm1, %v246_v60  ;;  %v2313_v2 = vadd.f32 %v6163_v51, %v2312_v63  ;;  %v5005_v3 = vpop.f32.mrb[3].mxu1  ;;  %5163 = vmatmul.mubr.msk.f32.gmra.mrb[108].mxu1 %vm516_vm1, %v403_v61  ;;  %v254_v62 = vld [vmem:[%s5737_s7 + $0x1f0] sm:$0xff]  ;;  %v411_v63 = vld [vmem:[%s5737_s7 + $0x6d8] sm:$0xff] }
  0xf0   : > { %4694 = vmatprep.mubr.msk.f32.mxu0 %vm5662_vm0, %v5663_v6  ;;  %5165 = vmatprep.mubr.msk.f32.mxu1 %vm5662_vm0, %v5663_v6 }
  0xf1   : > { %3088 = vst.msk [vmem:[%s6181_s12 + $0x8] sm:$0xff] %vm3086_vm2, %v1528_v0  ;;  %3245 = vst.msk [vmem:[%s6181_s12 + $0x4f0] sm:$0xff] %vm3086_vm2, %v2313_v2 }
  0xf2   : > { %v1532_v7 = vpop.f32.mrb[4].mxu0  ;;  %v2317_v8 = vpop.f32.mrb[4].mxu1 }
  0xf3   : > { %v1533_v9 = vadd.f32 %v6163_v51, %v1532_v7  ;;  %v4537_v10 = vpop.f32.mrb[5].mxu0  ;;  %4695 = vmatmul.mubr.msk.f32.gmra.mrb[110].mxu0 %vm516_vm1, %v247_v4  ;;  %v2318_v11 = vadd.f32 %v6163_v51, %v2317_v8  ;;  %v5008_v12 = vpop.f32.mrb[5].mxu1  ;;  %5166 = vmatmul.mubr.msk.f32.gmra.mrb[110].mxu1 %vm516_vm1, %v404_v5  ;;  %v255_v7 = vld [vmem:[%s5737_s7 + $0x1f8] sm:$0xff]  ;;  %v412_v8 = vld [vmem:[%s5737_s7 + $0x6e0] sm:$0xff] }
  0xf4   : > { %4697 = vmatprep.mubr.msk.f32.mxu0 %vm5662_vm0, %v5663_v6  ;;  %5168 = vmatprep.mubr.msk.f32.mxu1 %vm5662_vm0, %v5663_v6 }
  0xf5   : > { %3089 = vst.msk [vmem:[%s6181_s12 + $0x10] sm:$0xff] %vm3086_vm2, %v1533_v9  ;;  %3246 = vst.msk [vmem:[%s6181_s12 + $0x4f8] sm:$0xff] %vm3086_vm2, %v2318_v11 }
  0xf6   : > { %v1537_v15 = vpop.f32.mrb[6].mxu0  ;;  %v2322_v16 = vpop.f32.mrb[6].mxu1 }
  0xf7   : > { %v1538_v17 = vadd.f32 %v6163_v51, %v1537_v15  ;;  %v4540_v18 = vpop.f32.mrb[7].mxu0  ;;  %4698 = vmatmul.mubr.msk.f32.gmra.mrb[112].mxu0 %vm516_vm1, %v248_v13  ;;  %v2323_v19 = vadd.f32 %v6163_v51, %v2322_v16  ;;  %v5011_v20 = vpop.f32.mrb[7].mxu1  ;;  %5169 = vmatmul.mubr.msk.f32.gmra.mrb[112].mxu1 %vm516_vm1, %v405_v14  ;;  %v256_v15 = vld [vmem:[%s5737_s7 + $0x200] sm:$0xff]  ;;  %v413_v16 = vld [vmem:[%s5737_s7 + $0x6e8] sm:$0xff] }
  0xf8   : > { %4700 = vmatprep.mubr.msk.f32.mxu0 %vm5662_vm0, %v5663_v6  ;;  %5171 = vmatprep.mubr.msk.f32.mxu1 %vm5662_vm0, %v5663_v6 }
  0xf9   : > { %3090 = vst.msk [vmem:[%s6181_s12 + $0x18] sm:$0xff] %vm3086_vm2, %v1538_v17  ;;  %3247 = vst.msk [vmem:[%s6181_s12 + $0x500] sm:$0xff] %vm3086_vm2, %v2323_v19 }
  0xfa   : > { %v1542_v23 = vpop.f32.mrb[8].mxu0  ;;  %v2327_v24 = vpop.f32.mrb[8].mxu1 }
  0xfb   : > { %v1543_v25 = vadd.f32 %v6163_v51, %v1542_v23  ;;  %v4543_v26 = vpop.f32.mrb[9].mxu0  ;;  %4701 = vmatmul.mubr.msk.f32.gmra.mrb[114].mxu0 %vm516_vm1, %v249_v21  ;;  %v2328_v27 = vadd.f32 %v6163_v51, %v2327_v24  ;;  %v5014_v28 = vpop.f32.mrb[9].mxu1  ;;  %5172 = vmatmul.mubr.msk.f32.gmra.mrb[114].mxu1 %vm516_vm1, %v406_v22  ;;  %v257_v23 = vld [vmem:[%s5737_s7 + $0x208] sm:$0xff]  ;;  %v414_v24 = vld [vmem:[%s5737_s7 + $0x6f0] sm:$0xff] }
  0xfc   : > { %4703 = vmatprep.mubr.msk.f32.mxu0 %vm5662_vm0, %v5663_v6  ;;  %5174 = vmatprep.mubr.msk.f32.mxu1 %vm5662_vm0, %v5663_v6 }
  0xfd   : > { %3091 = vst.msk [vmem:[%s6181_s12 + $0x20] sm:$0xff] %vm3086_vm2, %v1543_v25  ;;  %3248 = vst.msk [vmem:[%s6181_s12 + $0x508] sm:$0xff] %vm3086_vm2, %v2328_v27 }
  0xfe   : > { %v1547_v31 = vpop.f32.mrb[10].mxu0  ;;  %v2332_v32 = vpop.f32.mrb[10].mxu1 }
  0xff   : > { %v1548_v33 = vadd.f32 %v6163_v51, %v1547_v31  ;;  %v4546_v34 = vpop.f32.mrb[11].mxu0  ;;  %4704 = vmatmul.mubr.msk.f32.gmra.mrb[116].mxu0 %vm516_vm1, %v250_v29  ;;  %v2333_v35 = vadd.f32 %v6163_v51, %v2332_v32  ;;  %v5017_v36 = vpop.f32.mrb[11].mxu1  ;;  %5175 = vmatmul.mubr.msk.f32.gmra.mrb[116].mxu1 %vm516_vm1, %v407_v30  ;;  %v258_v31 = vld [vmem:[%s5737_s7 + $0x210] sm:$0xff]  ;;  %v415_v32 = vld [vmem:[%s5737_s7 + $0x6f8] sm:$0xff] }
 0x100   : > { %4706 = vmatprep.mubr.msk.f32.mxu0 %vm5662_vm0, %v5663_v6  ;;  %5177 = vmatprep.mubr.msk.f32.mxu1 %vm5662_vm0, %v5663_v6 }
 0x101   : > { %3092 = vst.msk [vmem:[%s6181_s12 + $0x28] sm:$0xff] %vm3086_vm2, %v1548_v33  ;;  %3249 = vst.msk [vmem:[%s6181_s12 + $0x510] sm:$0xff] %vm3086_vm2, %v2333_v35 }
 0x102   : > { %v1552_v39 = vpop.f32.mrb[12].mxu0  ;;  %v2337_v40 = vpop.f32.mrb[12].mxu1 }
 0x103   : > { %v1553_v41 = vadd.f32 %v6163_v51, %v1552_v39  ;;  %v4549_v42 = vpop.f32.mrb[13].mxu0  ;;  %4707 = vmatmul.mubr.msk.f32.gmra.mrb[118].mxu0 %vm516_vm1, %v251_v37  ;;  %v2338_v43 = vadd.f32 %v6163_v51, %v2337_v40  ;;  %v5020_v44 = vpop.f32.mrb[13].mxu1  ;;  %5178 = vmatmul.mubr.msk.f32.gmra.mrb[118].mxu1 %vm516_vm1, %v408_v38  ;;  %v259_v39 = vld [vmem:[%s5737_s7 + $0x218] sm:$0xff]  ;;  %v416_v40 = vld [vmem:[%s5737_s7 + $0x700] sm:$0xff] }
 0x104   : > { %4709 = vmatprep.mubr.msk.f32.mxu0 %vm5662_vm0, %v5663_v6  ;;  %5180 = vmatprep.mubr.msk.f32.mxu1 %vm5662_vm0, %v5663_v6 }
 0x105   : > { %3093 = vst.msk [vmem:[%s6181_s12 + $0x30] sm:$0xff] %vm3086_vm2, %v1553_v41  ;;  %3250 = vst.msk [vmem:[%s6181_s12 + $0x518] sm:$0xff] %vm3086_vm2, %v2338_v43 }
 0x106   : > { %v1557_v47 = vpop.f32.mrb[14].mxu0  ;;  %v2342_v48 = vpop.f32.mrb[14].mxu1 }
 0x107   : > { %v1558_v49 = vadd.f32 %v6163_v51, %v1557_v47  ;;  %v4552_v50 = vpop.f32.mrb[15].mxu0  ;;  %4710 = vmatmul.mubr.msk.f32.gmra.mrb[120].mxu0 %vm516_vm1, %v252_v45  ;;  %v2343_v52 = vadd.f32 %v6163_v51, %v2342_v48  ;;  %v5023_v53 = vpop.f32.mrb[15].mxu1  ;;  %5181 = vmatmul.mubr.msk.f32.gmra.mrb[120].mxu1 %vm516_vm1, %v409_v46  ;;  %v260_v47 = vld [vmem:[%s5737_s7 + $0x220] sm:$0xff]  ;;  %v417_v48 = vld [vmem:[%s5737_s7 + $0x708] sm:$0xff] }
 0x108   : > { %4712 = vmatprep.mubr.msk.f32.mxu0 %vm5662_vm0, %v5663_v6  ;;  %5183 = vmatprep.mubr.msk.f32.mxu1 %vm5662_vm0, %v5663_v6 }
 0x109   : > { %3094 = vst.msk [vmem:[%s6181_s12 + $0x38] sm:$0xff] %vm3086_vm2, %v1558_v49  ;;  %3251 = vst.msk [vmem:[%s6181_s12 + $0x520] sm:$0xff] %vm3086_vm2, %v2343_v52 }
 0x10a   : > { %v1562_v56 = vpop.f32.mrb[16].mxu0  ;;  %v2347_v57 = vpop.f32.mrb[16].mxu1 }
 0x10b   : > { %v1563_v58 = vadd.f32 %v6163_v51, %v1562_v56  ;;  %v4555_v59 = vpop.f32.mrb[17].mxu0  ;;  %4713 = vmatmul.mubr.msk.f32.gmra.mrb[122].mxu0 %vm516_vm1, %v253_v54  ;;  %v2348_v60 = vadd.f32 %v6163_v51, %v2347_v57  ;;  %v5026_v61 = vpop.f32.mrb[17].mxu1  ;;  %5184 = vmatmul.mubr.msk.f32.gmra.mrb[122].mxu1 %vm516_vm1, %v410_v55  ;;  %v261_v56 = vld [vmem:[%s5737_s7 + $0x228] sm:$0xff]  ;;  %v418_v57 = vld [vmem:[%s5737_s7 + $0x710] sm:$0xff] }
 0x10c   : > { %4715 = vmatprep.mubr.msk.f32.mxu0 %vm5662_vm0, %v5663_v6  ;;  %5186 = vmatprep.mubr.msk.f32.mxu1 %vm5662_vm0, %v5663_v6 }
 0x10d   : > { %3095 = vst.msk [vmem:[%s6181_s12 + $0x40] sm:$0xff] %vm3086_vm2, %v1563_v58  ;;  %3252 = vst.msk [vmem:[%s6181_s12 + $0x528] sm:$0xff] %vm3086_vm2, %v2348_v60 }
 0x10e   : > { %v1567_v0 = vpop.f32.mrb[18].mxu0  ;;  %v2352_v1 = vpop.f32.mrb[18].mxu1 }
 0x10f   : > { %v1568_v2 = vadd.f32 %v6163_v51, %v1567_v0  ;;  %v4558_v3 = vpop.f32.mrb[19].mxu0  ;;  %4716 = vmatmul.mubr.msk.f32.gmra.mrb[124].mxu0 %vm516_vm1, %v254_v62  ;;  %v2353_v4 = vadd.f32 %v6163_v51, %v2352_v1  ;;  %v5029_v5 = vpop.f32.mrb[19].mxu1  ;;  %5187 = vmatmul.mubr.msk.f32.gmra.mrb[124].mxu1 %vm516_vm1, %v411_v63  ;;  %v262_v0 = vld [vmem:[%s5737_s7 + $0x230] sm:$0xff]  ;;  %v419_v1 = vld [vmem:[%s5737_s7 + $0x718] sm:$0xff] }
 0x110   : > { %4718 = vmatprep.mubr.msk.f32.mxu0 %vm5662_vm0, %v5663_v6  ;;  %5189 = vmatprep.mubr.msk.f32.mxu1 %vm5662_vm0, %v5663_v6 }
 0x111   : > { %3096 = vst.msk [vmem:[%s6181_s12 + $0x48] sm:$0xff] %vm3086_vm2, %v1568_v2  ;;  %3253 = vst.msk [vmem:[%s6181_s12 + $0x530] sm:$0xff] %vm3086_vm2, %v2353_v4 }
 0x112   : > { %v1572_v9 = vpop.f32.mrb[20].mxu0  ;;  %v2357_v10 = vpop.f32.mrb[20].mxu1 }
 0x113   : > { %v1573_v11 = vadd.f32 %v6163_v51, %v1572_v9  ;;  %v4561_v12 = vpop.f32.mrb[21].mxu0  ;;  %4719 = vmatmul.mubr.msk.f32.gmra.mrb[126].mxu0 %vm516_vm1, %v255_v7  ;;  %v2358_v13 = vadd.f32 %v6163_v51, %v2357_v10  ;;  %v5032_v14 = vpop.f32.mrb[21].mxu1  ;;  %5190 = vmatmul.mubr.msk.f32.gmra.mrb[126].mxu1 %vm516_vm1, %v412_v8  ;;  %v263_v9 = vld [vmem:[%s5737_s7 + $0x238] sm:$0xff]  ;;  %v420_v10 = vld [vmem:[%s5737_s7 + $0x720] sm:$0xff] }
 0x114   : > { %4721 = vmatprep.mubr.msk.f32.mxu0 %vm5662_vm0, %v5663_v6  ;;  %5192 = vmatprep.mubr.msk.f32.mxu1 %vm5662_vm0, %v5663_v6 }
 0x115   : > { %3097 = vst.msk [vmem:[%s6181_s12 + $0x50] sm:$0xff] %vm3086_vm2, %v1573_v11  ;;  %3254 = vst.msk [vmem:[%s6181_s12 + $0x538] sm:$0xff] %vm3086_vm2, %v2358_v13 }
 0x116   : > { %v1577_v17 = vpop.f32.mrb[22].mxu0  ;;  %v2362_v18 = vpop.f32.mrb[22].mxu1 }
 0x117   : > { %v1578_v19 = vadd.f32 %v6163_v51, %v1577_v17  ;;  %v4564_v20 = vpop.f32.mrb[23].mxu0  ;;  %4722 = vmatmul.mubr.msk.f32.gmra.mrb[128].mxu0 %vm516_vm1, %v256_v15  ;;  %v2363_v21 = vadd.f32 %v6163_v51, %v2362_v18  ;;  %v5035_v22 = vpop.f32.mrb[23].mxu1  ;;  %5193 = vmatmul.mubr.msk.f32.gmra.mrb[128].mxu1 %vm516_vm1, %v413_v16  ;;  %v264_v17 = vld [vmem:[%s5737_s7 + $0x240] sm:$0xff]  ;;  %v421_v18 = vld [vmem:[%s5737_s7 + $0x728] sm:$0xff] }
 0x118   : > { %4724 = vmatprep.mubr.msk.f32.mxu0 %vm5662_vm0, %v5663_v6  ;;  %5195 = vmatprep.mubr.msk.f32.mxu1 %vm5662_vm0, %v5663_v6 }
 0x119   : > { %3098 = vst.msk [vmem:[%s6181_s12 + $0x58] sm:$0xff] %vm3086_vm2, %v1578_v19  ;;  %3255 = vst.msk [vmem:[%s6181_s12 + $0x540] sm:$0xff] %vm3086_vm2, %v2363_v21 }
 0x11a   : > { %v1582_v25 = vpop.f32.mrb[24].mxu0  ;;  %v2367_v26 = vpop.f32.mrb[24].mxu1 }
 0x11b   : > { %v1583_v27 = vadd.f32 %v6163_v51, %v1582_v25  ;;  %v4567_v28 = vpop.f32.mrb[25].mxu0  ;;  %4725 = vmatmul.mubr.msk.f32.gmra.mrb[130].mxu0 %vm516_vm1, %v257_v23  ;;  %v2368_v29 = vadd.f32 %v6163_v51, %v2367_v26  ;;  %v5038_v30 = vpop.f32.mrb[25].mxu1  ;;  %5196 = vmatmul.mubr.msk.f32.gmra.mrb[130].mxu1 %vm516_vm1, %v414_v24  ;;  %v265_v25 = vld [vmem:[%s5737_s7 + $0x248] sm:$0xff]  ;;  %v422_v26 = vld [vmem:[%s5737_s7 + $0x730] sm:$0xff] }
 0x11c   : > { %4727 = vmatprep.mubr.msk.f32.mxu0 %vm5662_vm0, %v5663_v6  ;;  %5198 = vmatprep.mubr.msk.f32.mxu1 %vm5662_vm0, %v5663_v6 }
 0x11d   : > { %3099 = vst.msk [vmem:[%s6181_s12 + $0x60] sm:$0xff] %vm3086_vm2, %v1583_v27  ;;  %3256 = vst.msk [vmem:[%s6181_s12 + $0x548] sm:$0xff] %vm3086_vm2, %v2368_v29 }
 0x11e   : > { %v1587_v33 = vpop.f32.mrb[26].mxu0  ;;  %v2372_v34 = vpop.f32.mrb[26].mxu1 }
 0x11f   : > { %v1588_v35 = vadd.f32 %v6163_v51, %v1587_v33  ;;  %v4570_v36 = vpop.f32.mrb[27].mxu0  ;;  %4728 = vmatmul.mubr.msk.f32.gmra.mrb[132].mxu0 %vm516_vm1, %v258_v31  ;;  %v2373_v37 = vadd.f32 %v6163_v51, %v2372_v34  ;;  %v5041_v38 = vpop.f32.mrb[27].mxu1  ;;  %5199 = vmatmul.mubr.msk.f32.gmra.mrb[132].mxu1 %vm516_vm1, %v415_v32  ;;  %v266_v33 = vld [vmem:[%s5737_s7 + $0x250] sm:$0xff]  ;;  %v423_v34 = vld [vmem:[%s5737_s7 + $0x738] sm:$0xff] }
 0x120   : > { %4730 = vmatprep.mubr.msk.f32.mxu0 %vm5662_vm0, %v5663_v6  ;;  %5201 = vmatprep.mubr.msk.f32.mxu1 %vm5662_vm0, %v5663_v6 }
 0x121   : > { %3100 = vst.msk [vmem:[%s6181_s12 + $0x68] sm:$0xff] %vm3086_vm2, %v1588_v35  ;;  %3257 = vst.msk [vmem:[%s6181_s12 + $0x550] sm:$0xff] %vm3086_vm2, %v2373_v37 }
 0x122   : > { %v1592_v41 = vpop.f32.mrb[28].mxu0  ;;  %v2377_v42 = vpop.f32.mrb[28].mxu1 }
 0x123   : > { %v1593_v43 = vadd.f32 %v6163_v51, %v1592_v41  ;;  %v4573_v44 = vpop.f32.mrb[29].mxu0  ;;  %4731 = vmatmul.mubr.msk.f32.gmra.mrb[134].mxu0 %vm516_vm1, %v259_v39  ;;  %v2378_v45 = vadd.f32 %v6163_v51, %v2377_v42  ;;  %v5044_v46 = vpop.f32.mrb[29].mxu1  ;;  %5202 = vmatmul.mubr.msk.f32.gmra.mrb[134].mxu1 %vm516_vm1, %v416_v40  ;;  %v267_v41 = vld [vmem:[%s5737_s7 + $0x258] sm:$0xff]  ;;  %v424_v42 = vld [vmem:[%s5737_s7 + $0x740] sm:$0xff] }
 0x124   : > { %4733 = vmatprep.mubr.msk.f32.mxu0 %vm5662_vm0, %v5663_v6  ;;  %5204 = vmatprep.mubr.msk.f32.mxu1 %vm5662_vm0, %v5663_v6 }
 0x125   : > { %3101 = vst.msk [vmem:[%s6181_s12 + $0x70] sm:$0xff] %vm3086_vm2, %v1593_v43  ;;  %3258 = vst.msk [vmem:[%s6181_s12 + $0x558] sm:$0xff] %vm3086_vm2, %v2378_v45 }
 0x126   : > { %v1597_v49 = vpop.f32.mrb[30].mxu0  ;;  %v2382_v50 = vpop.f32.mrb[30].mxu1 }
 0x127   : > { %v1598_v52 = vadd.f32 %v6163_v51, %v1597_v49  ;;  %v4576_v53 = vpop.f32.mrb[31].mxu0  ;;  %4734 = vmatmul.mubr.msk.f32.gmra.mrb[136].mxu0 %vm516_vm1, %v260_v47  ;;  %v2383_v54 = vadd.f32 %v6163_v51, %v2382_v50  ;;  %v5047_v55 = vpop.f32.mrb[31].mxu1  ;;  %5205 = vmatmul.mubr.msk.f32.gmra.mrb[136].mxu1 %vm516_vm1, %v417_v48  ;;  %v268_v49 = vld [vmem:[%s5737_s7 + $0x260] sm:$0xff]  ;;  %v425_v50 = vld [vmem:[%s5737_s7 + $0x748] sm:$0xff] }
 0x128   : > { %4736 = vmatprep.mubr.msk.f32.mxu0 %vm5662_vm0, %v5663_v6  ;;  %5207 = vmatprep.mubr.msk.f32.mxu1 %vm5662_vm0, %v5663_v6 }
 0x129   : > { %3102 = vst.msk [vmem:[%s6181_s12 + $0x78] sm:$0xff] %vm3086_vm2, %v1598_v52  ;;  %3259 = vst.msk [vmem:[%s6181_s12 + $0x560] sm:$0xff] %vm3086_vm2, %v2383_v54 }
 0x12a   : > { %v1602_v58 = vpop.f32.mrb[32].mxu0  ;;  %v2387_v59 = vpop.f32.mrb[32].mxu1 }
 0x12b   : > { %v1603_v60 = vadd.f32 %v6163_v51, %v1602_v58  ;;  %v4579_v61 = vpop.f32.mrb[33].mxu0  ;;  %4737 = vmatmul.mubr.msk.f32.gmra.mrb[138].mxu0 %vm516_vm1, %v261_v56  ;;  %v2388_v62 = vadd.f32 %v6163_v51, %v2387_v59  ;;  %v5050_v63 = vpop.f32.mrb[33].mxu1  ;;  %5208 = vmatmul.mubr.msk.f32.gmra.mrb[138].mxu1 %vm516_vm1, %v418_v57  ;;  %v269_v58 = vld [vmem:[%s5737_s7 + $0x268] sm:$0xff]  ;;  %v426_v59 = vld [vmem:[%s5737_s7 + $0x750] sm:$0xff] }
 0x12c   : > { %4739 = vmatprep.mubr.msk.f32.mxu0 %vm5662_vm0, %v5663_v6  ;;  %5210 = vmatprep.mubr.msk.f32.mxu1 %vm5662_vm0, %v5663_v6 }
 0x12d   : > { %3103 = vst.msk [vmem:[%s6181_s12 + $0x80] sm:$0xff] %vm3086_vm2, %v1603_v60  ;;  %3260 = vst.msk [vmem:[%s6181_s12 + $0x568] sm:$0xff] %vm3086_vm2, %v2388_v62 }
 0x12e   : > { %v1607_v2 = vpop.f32.mrb[34].mxu0  ;;  %v2392_v3 = vpop.f32.mrb[34].mxu1 }
 0x12f   : > { %v1608_v4 = vadd.f32 %v6163_v51, %v1607_v2  ;;  %v4582_v5 = vpop.f32.mrb[35].mxu0  ;;  %4740 = vmatmul.mubr.msk.f32.gmra.mrb[140].mxu0 %vm516_vm1, %v262_v0  ;;  %v2393_v7 = vadd.f32 %v6163_v51, %v2392_v3  ;;  %v5053_v8 = vpop.f32.mrb[35].mxu1  ;;  %5211 = vmatmul.mubr.msk.f32.gmra.mrb[140].mxu1 %vm516_vm1, %v419_v1  ;;  %v270_v2 = vld [vmem:[%s5737_s7 + $0x270] sm:$0xff]  ;;  %v427_v3 = vld [vmem:[%s5737_s7 + $0x758] sm:$0xff] }
 0x130   : > { %4742 = vmatprep.mubr.msk.f32.mxu0 %vm5662_vm0, %v5663_v6  ;;  %5213 = vmatprep.mubr.msk.f32.mxu1 %vm5662_vm0, %v5663_v6 }
 0x131   : > { %3104 = vst.msk [vmem:[%s6181_s12 + $0x88] sm:$0xff] %vm3086_vm2, %v1608_v4  ;;  %3261 = vst.msk [vmem:[%s6181_s12 + $0x570] sm:$0xff] %vm3086_vm2, %v2393_v7 }
 0x132   : > { %v1612_v11 = vpop.f32.mrb[36].mxu0  ;;  %v2397_v12 = vpop.f32.mrb[36].mxu1 }
 0x133   : > { %v1613_v13 = vadd.f32 %v6163_v51, %v1612_v11  ;;  %v4585_v14 = vpop.f32.mrb[37].mxu0  ;;  %4743 = vmatmul.mubr.msk.f32.gmra.mrb[142].mxu0 %vm516_vm1, %v263_v9  ;;  %v2398_v15 = vadd.f32 %v6163_v51, %v2397_v12  ;;  %v5056_v16 = vpop.f32.mrb[37].mxu1  ;;  %5214 = vmatmul.mubr.msk.f32.gmra.mrb[142].mxu1 %vm516_vm1, %v420_v10  ;;  %v271_v11 = vld [vmem:[%s5737_s7 + $0x278] sm:$0xff]  ;;  %v428_v12 = vld [vmem:[%s5737_s7 + $0x760] sm:$0xff] }
 0x134   : > { %4745 = vmatprep.mubr.msk.f32.mxu0 %vm5662_vm0, %v5663_v6  ;;  %5216 = vmatprep.mubr.msk.f32.mxu1 %vm5662_vm0, %v5663_v6 }
 0x135   : > { %3105 = vst.msk [vmem:[%s6181_s12 + $0x90] sm:$0xff] %vm3086_vm2, %v1613_v13  ;;  %3262 = vst.msk [vmem:[%s6181_s12 + $0x578] sm:$0xff] %vm3086_vm2, %v2398_v15 }
 0x136   : > { %v1617_v19 = vpop.f32.mrb[38].mxu0  ;;  %v2402_v20 = vpop.f32.mrb[38].mxu1 }
 0x137   : > { %v1618_v21 = vadd.f32 %v6163_v51, %v1617_v19  ;;  %v4588_v22 = vpop.f32.mrb[39].mxu0  ;;  %4746 = vmatmul.mubr.msk.f32.gmra.mrb[144].mxu0 %vm516_vm1, %v264_v17  ;;  %v2403_v23 = vadd.f32 %v6163_v51, %v2402_v20  ;;  %v5059_v24 = vpop.f32.mrb[39].mxu1  ;;  %5217 = vmatmul.mubr.msk.f32.gmra.mrb[144].mxu1 %vm516_vm1, %v421_v18  ;;  %v272_v19 = vld [vmem:[%s5737_s7 + $0x280] sm:$0xff]  ;;  %v429_v20 = vld [vmem:[%s5737_s7 + $0x768] sm:$0xff] }
 0x138   : > { %4748 = vmatprep.mubr.msk.f32.mxu0 %vm5662_vm0, %v5663_v6  ;;  %5219 = vmatprep.mubr.msk.f32.mxu1 %vm5662_vm0, %v5663_v6 }
 0x139   : > { %3106 = vst.msk [vmem:[%s6181_s12 + $0x98] sm:$0xff] %vm3086_vm2, %v1618_v21  ;;  %3263 = vst.msk [vmem:[%s6181_s12 + $0x580] sm:$0xff] %vm3086_vm2, %v2403_v23 }
 0x13a   : > { %v1622_v27 = vpop.f32.mrb[40].mxu0  ;;  %v2407_v28 = vpop.f32.mrb[40].mxu1 }
 0x13b   : > { %v1623_v29 = vadd.f32 %v6163_v51, %v1622_v27  ;;  %v4591_v30 = vpop.f32.mrb[41].mxu0  ;;  %4749 = vmatmul.mubr.msk.f32.gmra.mrb[146].mxu0 %vm516_vm1, %v265_v25  ;;  %v2408_v31 = vadd.f32 %v6163_v51, %v2407_v28  ;;  %v5062_v32 = vpop.f32.mrb[41].mxu1  ;;  %5220 = vmatmul.mubr.msk.f32.gmra.mrb[146].mxu1 %vm516_vm1, %v422_v26  ;;  %v273_v27 = vld [vmem:[%s5737_s7 + $0x288] sm:$0xff]  ;;  %v430_v28 = vld [vmem:[%s5737_s7 + $0x770] sm:$0xff] }
 0x13c   : > { %4751 = vmatprep.mubr.msk.f32.mxu0 %vm5662_vm0, %v5663_v6  ;;  %5222 = vmatprep.mubr.msk.f32.mxu1 %vm5662_vm0, %v5663_v6 }
 0x13d   : > { %3107 = vst.msk [vmem:[%s6181_s12 + $0xa0] sm:$0xff] %vm3086_vm2, %v1623_v29  ;;  %3264 = vst.msk [vmem:[%s6181_s12 + $0x588] sm:$0xff] %vm3086_vm2, %v2408_v31 }
 0x13e   : > { %v1627_v35 = vpop.f32.mrb[42].mxu0  ;;  %v2412_v36 = vpop.f32.mrb[42].mxu1 }
 0x13f   : > { %v1628_v37 = vadd.f32 %v6163_v51, %v1627_v35  ;;  %v4594_v38 = vpop.f32.mrb[43].mxu0  ;;  %4752 = vmatmul.mubr.msk.f32.gmra.mrb[148].mxu0 %vm516_vm1, %v266_v33  ;;  %v2413_v39 = vadd.f32 %v6163_v51, %v2412_v36  ;;  %v5065_v40 = vpop.f32.mrb[43].mxu1  ;;  %5223 = vmatmul.mubr.msk.f32.gmra.mrb[148].mxu1 %vm516_vm1, %v423_v34  ;;  %v274_v35 = vld [vmem:[%s5737_s7 + $0x290] sm:$0xff]  ;;  %v431_v36 = vld [vmem:[%s5737_s7 + $0x778] sm:$0xff] }
 0x140   : > { %4754 = vmatprep.mubr.msk.f32.mxu0 %vm5662_vm0, %v5663_v6  ;;  %5225 = vmatprep.mubr.msk.f32.mxu1 %vm5662_vm0, %v5663_v6 }
 0x141   : > { %3108 = vst.msk [vmem:[%s6181_s12 + $0xa8] sm:$0xff] %vm3086_vm2, %v1628_v37  ;;  %3265 = vst.msk [vmem:[%s6181_s12 + $0x590] sm:$0xff] %vm3086_vm2, %v2413_v39 }
 0x142   : > { %v1632_v43 = vpop.f32.mrb[44].mxu0  ;;  %v2417_v44 = vpop.f32.mrb[44].mxu1 }
 0x143   : > { %v1633_v45 = vadd.f32 %v6163_v51, %v1632_v43  ;;  %v4597_v46 = vpop.f32.mrb[45].mxu0  ;;  %4755 = vmatmul.mubr.msk.f32.gmra.mrb[150].mxu0 %vm516_vm1, %v267_v41  ;;  %v2418_v47 = vadd.f32 %v6163_v51, %v2417_v44  ;;  %v5068_v48 = vpop.f32.mrb[45].mxu1  ;;  %5226 = vmatmul.mubr.msk.f32.gmra.mrb[150].mxu1 %vm516_vm1, %v424_v42  ;;  %v275_v43 = vld [vmem:[%s5737_s7 + $0x298] sm:$0xff]  ;;  %v432_v44 = vld [vmem:[%s5737_s7 + $0x780] sm:$0xff] }
 0x144   : > { %4757 = vmatprep.mubr.msk.f32.mxu0 %vm5662_vm0, %v5663_v6  ;;  %5228 = vmatprep.mubr.msk.f32.mxu1 %vm5662_vm0, %v5663_v6 }
 0x145   : > { %3109 = vst.msk [vmem:[%s6181_s12 + $0xb0] sm:$0xff] %vm3086_vm2, %v1633_v45  ;;  %3266 = vst.msk [vmem:[%s6181_s12 + $0x598] sm:$0xff] %vm3086_vm2, %v2418_v47 }
 0x146   : > { %v1637_v52 = vpop.f32.mrb[46].mxu0  ;;  %v2422_v53 = vpop.f32.mrb[46].mxu1 }
 0x147   : > { %v1638_v54 = vadd.f32 %v6163_v51, %v1637_v52  ;;  %v4600_v55 = vpop.f32.mrb[47].mxu0  ;;  %4758 = vmatmul.mubr.msk.f32.gmra.mrb[152].mxu0 %vm516_vm1, %v268_v49  ;;  %v2423_v56 = vadd.f32 %v6163_v51, %v2422_v53  ;;  %v5071_v57 = vpop.f32.mrb[47].mxu1  ;;  %5229 = vmatmul.mubr.msk.f32.gmra.mrb[152].mxu1 %vm516_vm1, %v425_v50  ;;  %v276_v52 = vld [vmem:[%s5737_s7 + $0x2a0] sm:$0xff]  ;;  %v433_v53 = vld [vmem:[%s5737_s7 + $0x788] sm:$0xff] }
 0x148   : > { %4760 = vmatprep.mubr.msk.f32.mxu0 %vm5662_vm0, %v5663_v6  ;;  %5231 = vmatprep.mubr.msk.f32.mxu1 %vm5662_vm0, %v5663_v6 }
 0x149   : > { %3110 = vst.msk [vmem:[%s6181_s12 + $0xb8] sm:$0xff] %vm3086_vm2, %v1638_v54  ;;  %3267 = vst.msk [vmem:[%s6181_s12 + $0x5a0] sm:$0xff] %vm3086_vm2, %v2423_v56 }
 0x14a   : > { %v1642_v60 = vpop.f32.mrb[48].mxu0  ;;  %v2427_v61 = vpop.f32.mrb[48].mxu1 }
 0x14b   : > { %v1643_v62 = vadd.f32 %v6163_v51, %v1642_v60  ;;  %v4603_v63 = vpop.f32.mrb[49].mxu0  ;;  %4761 = vmatmul.mubr.msk.f32.gmra.mrb[154].mxu0 %vm516_vm1, %v269_v58  ;;  %v2428_v0 = vadd.f32 %v6163_v51, %v2427_v61  ;;  %v5074_v1 = vpop.f32.mrb[49].mxu1  ;;  %5232 = vmatmul.mubr.msk.f32.gmra.mrb[154].mxu1 %vm516_vm1, %v426_v59  ;;  %v277_v60 = vld [vmem:[%s5737_s7 + $0x2a8] sm:$0xff]  ;;  %v434_v61 = vld [vmem:[%s5737_s7 + $0x790] sm:$0xff] }
 0x14c   : > { %4763 = vmatprep.mubr.msk.f32.mxu0 %vm5662_vm0, %v5663_v6  ;;  %5234 = vmatprep.mubr.msk.f32.mxu1 %vm5662_vm0, %v5663_v6 }
 0x14d   : > { %3111 = vst.msk [vmem:[%s6181_s12 + $0xc0] sm:$0xff] %vm3086_vm2, %v1643_v62  ;;  %3268 = vst.msk [vmem:[%s6181_s12 + $0x5a8] sm:$0xff] %vm3086_vm2, %v2428_v0 }
 0x14e   : > { %v1647_v4 = vpop.f32.mrb[50].mxu0  ;;  %v2432_v5 = vpop.f32.mrb[50].mxu1 }
 0x14f   : > { %v1648_v7 = vadd.f32 %v6163_v51, %v1647_v4  ;;  %v4606_v8 = vpop.f32.mrb[51].mxu0  ;;  %4764 = vmatmul.mubr.msk.f32.gmra.mrb[156].mxu0 %vm516_vm1, %v270_v2  ;;  %v2433_v9 = vadd.f32 %v6163_v51, %v2432_v5  ;;  %v5077_v10 = vpop.f32.mrb[51].mxu1  ;;  %5235 = vmatmul.mubr.msk.f32.gmra.mrb[156].mxu1 %vm516_vm1, %v427_v3  ;;  %v278_v4 = vld [vmem:[%s5737_s7 + $0x2b0] sm:$0xff]  ;;  %v435_v5 = vld [vmem:[%s5737_s7 + $0x798] sm:$0xff] }
 0x150   : > { %4766 = vmatprep.mubr.msk.f32.mxu0 %vm5662_vm0, %v5663_v6  ;;  %5237 = vmatprep.mubr.msk.f32.mxu1 %vm5662_vm0, %v5663_v6 }
 0x151   : > { %3112 = vst.msk [vmem:[%s6181_s12 + $0xc8] sm:$0xff] %vm3086_vm2, %v1648_v7  ;;  %3269 = vst.msk [vmem:[%s6181_s12 + $0x5b0] sm:$0xff] %vm3086_vm2, %v2433_v9 }
 0x152   : > { %v1652_v13 = vpop.f32.mrb[52].mxu0  ;;  %v2437_v14 = vpop.f32.mrb[52].mxu1 }
 0x153   : > { %v1653_v15 = vadd.f32 %v6163_v51, %v1652_v13  ;;  %v4609_v16 = vpop.f32.mrb[53].mxu0  ;;  %4767 = vmatmul.mubr.msk.f32.gmra.mrb[158].mxu0 %vm516_vm1, %v271_v11  ;;  %v2438_v17 = vadd.f32 %v6163_v51, %v2437_v14  ;;  %v5080_v18 = vpop.f32.mrb[53].mxu1  ;;  %5238 = vmatmul.mubr.msk.f32.gmra.mrb[158].mxu1 %vm516_vm1, %v428_v12  ;;  %v279_v13 = vld [vmem:[%s5737_s7 + $0x2b8] sm:$0xff]  ;;  %v436_v14 = vld [vmem:[%s5737_s7 + $0x7a0] sm:$0xff] }
 0x154   : > { %4769 = vmatprep.mubr.msk.f32.mxu0 %vm5662_vm0, %v5663_v6  ;;  %5240 = vmatprep.mubr.msk.f32.mxu1 %vm5662_vm0, %v5663_v6 }
 0x155   : > { %3113 = vst.msk [vmem:[%s6181_s12 + $0xd0] sm:$0xff] %vm3086_vm2, %v1653_v15  ;;  %3270 = vst.msk [vmem:[%s6181_s12 + $0x5b8] sm:$0xff] %vm3086_vm2, %v2438_v17 }
 0x156   : > { %v1657_v21 = vpop.f32.mrb[54].mxu0  ;;  %v2442_v22 = vpop.f32.mrb[54].mxu1 }
 0x157   : > { %v1658_v23 = vadd.f32 %v6163_v51, %v1657_v21  ;;  %v4612_v24 = vpop.f32.mrb[55].mxu0  ;;  %4770 = vmatmul.mubr.msk.f32.gmra.mrb[160].mxu0 %vm516_vm1, %v272_v19  ;;  %v2443_v25 = vadd.f32 %v6163_v51, %v2442_v22  ;;  %v5083_v26 = vpop.f32.mrb[55].mxu1  ;;  %5241 = vmatmul.mubr.msk.f32.gmra.mrb[160].mxu1 %vm516_vm1, %v429_v20  ;;  %v280_v21 = vld [vmem:[%s5737_s7 + $0x2c0] sm:$0xff]  ;;  %v437_v22 = vld [vmem:[%s5737_s7 + $0x7a8] sm:$0xff] }
 0x158   : > { %4772 = vmatprep.mubr.msk.f32.mxu0 %vm5662_vm0, %v5663_v6  ;;  %5243 = vmatprep.mubr.msk.f32.mxu1 %vm5662_vm0, %v5663_v6 }
 0x159   : > { %3114 = vst.msk [vmem:[%s6181_s12 + $0xd8] sm:$0xff] %vm3086_vm2, %v1658_v23  ;;  %3271 = vst.msk [vmem:[%s6181_s12 + $0x5c0] sm:$0xff] %vm3086_vm2, %v2443_v25 }
 0x15a   : > { %v1662_v29 = vpop.f32.mrb[56].mxu0  ;;  %v2447_v30 = vpop.f32.mrb[56].mxu1 }
 0x15b   : > { %v1663_v31 = vadd.f32 %v6163_v51, %v1662_v29  ;;  %v4615_v32 = vpop.f32.mrb[57].mxu0  ;;  %4773 = vmatmul.mubr.msk.f32.gmra.mrb[162].mxu0 %vm516_vm1, %v273_v27  ;;  %v2448_v33 = vadd.f32 %v6163_v51, %v2447_v30  ;;  %v5086_v34 = vpop.f32.mrb[57].mxu1  ;;  %5244 = vmatmul.mubr.msk.f32.gmra.mrb[162].mxu1 %vm516_vm1, %v430_v28  ;;  %v281_v29 = vld [vmem:[%s5737_s7 + $0x2c8] sm:$0xff]  ;;  %v438_v30 = vld [vmem:[%s5737_s7 + $0x7b0] sm:$0xff] }
 0x15c   : > { %4775 = vmatprep.mubr.msk.f32.mxu0 %vm5662_vm0, %v5663_v6  ;;  %5246 = vmatprep.mubr.msk.f32.mxu1 %vm5662_vm0, %v5663_v6  ;;  %v6680_v32 = vld [vmem:[%s8157_s2] ss:$0 sm:$0xff] }
 0x15d   : > { %3115 = vst.msk [vmem:[%s6181_s12 + $0xe0] sm:$0xff] %vm3086_vm2, %v1663_v31  ;;  %3272 = vst.msk [vmem:[%s6181_s12 + $0x5c8] sm:$0xff] %vm3086_vm2, %v2448_v33 }
 0x15e   : > { %v1667_v37 = vpop.f32.mrb[58].mxu0  ;;  %v2452_v38 = vpop.f32.mrb[58].mxu1 }
 0x15f   : > { %v1668_v39 = vadd.f32 %v6163_v51, %v1667_v37  ;;  %v4618_v40 = vpop.f32.mrb[59].mxu0  ;;  %4776 = vmatmul.mubr.msk.f32.gmra.mrb[164].mxu0 %vm516_vm1, %v274_v35  ;;  %v2453_v41 = vadd.f32 %v6163_v51, %v2452_v38  ;;  %v5089_v42 = vpop.f32.mrb[59].mxu1  ;;  %5247 = vmatmul.mubr.msk.f32.gmra.mrb[164].mxu1 %vm516_vm1, %v431_v36  ;;  %v282_v37 = vld [vmem:[%s5737_s7 + $0x2d0] sm:$0xff]  ;;  %v439_v38 = vld [vmem:[%s5737_s7 + $0x7b8] sm:$0xff] }
 0x160   : > { %4778 = vmatprep.mubr.msk.f32.mxu0 %vm5662_vm0, %v5663_v6  ;;  %5249 = vmatprep.mubr.msk.f32.mxu1 %vm5662_vm0, %v5663_v6 }
 0x161   : > { %3116 = vst.msk [vmem:[%s6181_s12 + $0xe8] sm:$0xff] %vm3086_vm2, %v1668_v39  ;;  %3273 = vst.msk [vmem:[%s6181_s12 + $0x5d0] sm:$0xff] %vm3086_vm2, %v2453_v41 }
 0x162   : > { %v1672_v45 = vpop.f32.mrb[60].mxu0  ;;  %v2457_v46 = vpop.f32.mrb[60].mxu1 }
 0x163   : > { %v1673_v47 = vadd.f32 %v6163_v51, %v1672_v45  ;;  %v4621_v48 = vpop.f32.mrb[61].mxu0  ;;  %4779 = vmatmul.mubr.msk.f32.gmra.mrb[166].mxu0 %vm516_vm1, %v275_v43  ;;  %v2458_v49 = vadd.f32 %v6163_v51, %v2457_v46  ;;  %v5092_v50 = vpop.f32.mrb[61].mxu1  ;;  %5250 = vmatmul.mubr.msk.f32.gmra.mrb[166].mxu1 %vm516_vm1, %v432_v44  ;;  %v283_v45 = vld [vmem:[%s5737_s7 + $0x2d8] sm:$0xff]  ;;  %v440_v46 = vld [vmem:[%s5737_s7 + $0x7c0] sm:$0xff] }
 0x164   : > { %4781 = vmatprep.mubr.msk.f32.mxu0 %vm5662_vm0, %v5663_v6  ;;  %5252 = vmatprep.mubr.msk.f32.mxu1 %vm5662_vm0, %v5663_v6 }
 0x165   : > { %3117 = vst.msk [vmem:[%s6181_s12 + $0xf0] sm:$0xff] %vm3086_vm2, %v1673_v47  ;;  %3274 = vst.msk [vmem:[%s6181_s12 + $0x5d8] sm:$0xff] %vm3086_vm2, %v2458_v49 }
 0x166   : > { %v1677_v54 = vpop.f32.mrb[62].mxu0  ;;  %v2462_v55 = vpop.f32.mrb[62].mxu1 }
 0x167   : > { %v1678_v56 = vadd.f32 %v6163_v51, %v1677_v54  ;;  %v4624_v57 = vpop.f32.mrb[63].mxu0  ;;  %4782 = vmatmul.mubr.msk.f32.gmra.mrb[168].mxu0 %vm516_vm1, %v276_v52  ;;  %v2463_v58 = vadd.f32 %v6163_v51, %v2462_v55  ;;  %v5095_v59 = vpop.f32.mrb[63].mxu1  ;;  %5253 = vmatmul.mubr.msk.f32.gmra.mrb[168].mxu1 %vm516_vm1, %v433_v53  ;;  %v284_v54 = vld [vmem:[%s5737_s7 + $0x2e0] sm:$0xff]  ;;  %v441_v55 = vld [vmem:[%s5737_s7 + $0x7c8] sm:$0xff] }
 0x168   : > { %4784 = vmatprep.mubr.msk.f32.mxu0 %vm5662_vm0, %v5663_v6  ;;  %5255 = vmatprep.mubr.msk.f32.mxu1 %vm5662_vm0, %v5663_v6 }
 0x169   : > { %3118 = vst.msk [vmem:[%s6181_s12 + $0xf8] sm:$0xff] %vm3086_vm2, %v1678_v56  ;;  %3275 = vst.msk [vmem:[%s6181_s12 + $0x5e0] sm:$0xff] %vm3086_vm2, %v2463_v58 }
 0x16a   : > { %v1682_v62 = vpop.f32.mrb[64].mxu0  ;;  %v2467_v63 = vpop.f32.mrb[64].mxu1 }
 0x16b   : > { %v1683_v0 = vadd.f32 %v6163_v51, %v1682_v62  ;;  %v4627_v1 = vpop.f32.mrb[65].mxu0  ;;  %4785 = vmatmul.mubr.msk.f32.gmra.mrb[170].mxu0 %vm516_vm1, %v277_v60  ;;  %v2468_v2 = vadd.f32 %v6163_v51, %v2467_v63  ;;  %v5098_v3 = vpop.f32.mrb[65].mxu1  ;;  %5256 = vmatmul.mubr.msk.f32.gmra.mrb[170].mxu1 %vm516_vm1, %v434_v61  ;;  %v285_v62 = vld [vmem:[%s5737_s7 + $0x2e8] sm:$0xff]  ;;  %v442_v63 = vld [vmem:[%s5737_s7 + $0x7d0] sm:$0xff] }
 0x16c   : > { %4787 = vmatprep.mubr.msk.f32.mxu0 %vm5662_vm0, %v5663_v6  ;;  %5258 = vmatprep.mubr.msk.f32.mxu1 %vm5662_vm0, %v5663_v6 }
 0x16d   : > { %3119 = vst.msk [vmem:[%s6181_s12 + $0x100] sm:$0xff] %vm3086_vm2, %v1683_v0  ;;  %3276 = vst.msk [vmem:[%s6181_s12 + $0x5e8] sm:$0xff] %vm3086_vm2, %v2468_v2 }
 0x16e   : > { %v1687_v7 = vpop.f32.mrb[66].mxu0  ;;  %v2472_v8 = vpop.f32.mrb[66].mxu1 }
 0x16f   : > { %v1688_v9 = vadd.f32 %v6163_v51, %v1687_v7  ;;  %v4630_v10 = vpop.f32.mrb[67].mxu0  ;;  %4788 = vmatmul.mubr.msk.f32.gmra.mrb[172].mxu0 %vm516_vm1, %v278_v4  ;;  %v2473_v11 = vadd.f32 %v6163_v51, %v2472_v8  ;;  %v5101_v12 = vpop.f32.mrb[67].mxu1  ;;  %5259 = vmatmul.mubr.msk.f32.gmra.mrb[172].mxu1 %vm516_vm1, %v435_v5  ;;  %v286_v7 = vld [vmem:[%s5737_s7 + $0x2f0] sm:$0xff]  ;;  %v443_v8 = vld [vmem:[%s5737_s7 + $0x7d8] sm:$0xff] }
 0x170   : > { %4790 = vmatprep.mubr.msk.f32.mxu0 %vm5662_vm0, %v5663_v6  ;;  %5261 = vmatprep.mubr.msk.f32.mxu1 %vm5662_vm0, %v5663_v6 }
 0x171   : > { %3120 = vst.msk [vmem:[%s6181_s12 + $0x108] sm:$0xff] %vm3086_vm2, %v1688_v9  ;;  %3277 = vst.msk [vmem:[%s6181_s12 + $0x5f0] sm:$0xff] %vm3086_vm2, %v2473_v11 }
 0x172   : > { %v1692_v15 = vpop.f32.mrb[68].mxu0  ;;  %v2477_v16 = vpop.f32.mrb[68].mxu1 }
 0x173   : > { %v1693_v17 = vadd.f32 %v6163_v51, %v1692_v15  ;;  %v4633_v18 = vpop.f32.mrb[69].mxu0  ;;  %4791 = vmatmul.mubr.msk.f32.gmra.mrb[174].mxu0 %vm516_vm1, %v279_v13  ;;  %v2478_v19 = vadd.f32 %v6163_v51, %v2477_v16  ;;  %v5104_v20 = vpop.f32.mrb[69].mxu1  ;;  %5262 = vmatmul.mubr.msk.f32.gmra.mrb[174].mxu1 %vm516_vm1, %v436_v14  ;;  %v287_v15 = vld [vmem:[%s5737_s7 + $0x2f8] sm:$0xff]  ;;  %v444_v16 = vld [vmem:[%s5737_s7 + $0x7e0] sm:$0xff] }
 0x174   : > { %4793 = vmatprep.mubr.msk.f32.mxu0 %vm5662_vm0, %v5663_v6  ;;  %5264 = vmatprep.mubr.msk.f32.mxu1 %vm5662_vm0, %v5663_v6 }
 0x175   : > { %3121 = vst.msk [vmem:[%s6181_s12 + $0x110] sm:$0xff] %vm3086_vm2, %v1693_v17  ;;  %3278 = vst.msk [vmem:[%s6181_s12 + $0x5f8] sm:$0xff] %vm3086_vm2, %v2478_v19 }
 0x176   : > { %v1697_v23 = vpop.f32.mrb[70].mxu0  ;;  %v2482_v24 = vpop.f32.mrb[70].mxu1 }
 0x177   : > { %v1698_v25 = vadd.f32 %v6163_v51, %v1697_v23  ;;  %v4636_v26 = vpop.f32.mrb[71].mxu0  ;;  %4794 = vmatmul.mubr.msk.f32.gmra.mrb[176].mxu0 %vm516_vm1, %v280_v21  ;;  %v2483_v27 = vadd.f32 %v6163_v51, %v2482_v24  ;;  %v5107_v28 = vpop.f32.mrb[71].mxu1  ;;  %5265 = vmatmul.mubr.msk.f32.gmra.mrb[176].mxu1 %vm516_vm1, %v437_v22  ;;  %v288_v23 = vld [vmem:[%s5737_s7 + $0x300] sm:$0xff]  ;;  %v445_v24 = vld [vmem:[%s5737_s7 + $0x7e8] sm:$0xff] }
 0x178   : > { %4796 = vmatprep.mubr.msk.f32.mxu0 %vm5662_vm0, %v5663_v6  ;;  %5267 = vmatprep.mubr.msk.f32.mxu1 %vm5662_vm0, %v5663_v6 }
 0x179   : > { %3122 = vst.msk [vmem:[%s6181_s12 + $0x118] sm:$0xff] %vm3086_vm2, %v1698_v25  ;;  %3279 = vst.msk [vmem:[%s6181_s12 + $0x600] sm:$0xff] %vm3086_vm2, %v2483_v27 }
 0x17a   : > { %v1702_v51 = vpop.f32.mrb[72].mxu0  ;;  %v2487_v31 = vpop.f32.mrb[72].mxu1 }
 0x17b   : > { %v1703_v33 = vadd.f32 %v6680_v32, %v1702_v51  ;;  %v4639_v34 = vpop.f32.mrb[73].mxu0  ;;  %4797 = vmatmul.mubr.msk.f32.gmra.mrb[178].mxu0 %vm516_vm1, %v281_v29  ;;  %v2488_v35 = vadd.f32 %v6680_v32, %v2487_v31  ;;  %v5110_v36 = vpop.f32.mrb[73].mxu1  ;;  %5268 = vmatmul.mubr.msk.f32.gmra.mrb[178].mxu1 %vm516_vm1, %v438_v30  ;;  %v289_v51 = vld [vmem:[%s5737_s7 + $0x308] sm:$0xff]  ;;  %v446_v31 = vld [vmem:[%s5737_s7 + $0x7f0] sm:$0xff] }
 0x17c   : > { %4799 = vmatprep.mubr.msk.f32.mxu0 %vm5662_vm0, %v5663_v6  ;;  %5270 = vmatprep.mubr.msk.f32.mxu1 %vm5662_vm0, %v5663_v6 }
 0x17d   : > { %3123 = vst.msk [vmem:[%s6181_s12 + $0x120] sm:$0xff] %vm3086_vm2, %v1703_v33  ;;  %3280 = vst.msk [vmem:[%s6181_s12 + $0x608] sm:$0xff] %vm3086_vm2, %v2488_v35 }
 0x17e   : > { %v1707_v39 = vpop.f32.mrb[74].mxu0  ;;  %v2492_v40 = vpop.f32.mrb[74].mxu1 }
 0x17f   : > { %v1708_v41 = vadd.f32 %v6680_v32, %v1707_v39  ;;  %v4642_v42 = vpop.f32.mrb[75].mxu0  ;;  %4800 = vmatmul.mubr.msk.f32.gmra.mrb[180].mxu0 %vm516_vm1, %v282_v37  ;;  %v2493_v43 = vadd.f32 %v6680_v32, %v2492_v40  ;;  %v5113_v44 = vpop.f32.mrb[75].mxu1  ;;  %5271 = vmatmul.mubr.msk.f32.gmra.mrb[180].mxu1 %vm516_vm1, %v439_v38  ;;  %v290_v39 = vld [vmem:[%s5737_s7 + $0x310] sm:$0xff]  ;;  %v447_v40 = vld [vmem:[%s5737_s7 + $0x7f8] sm:$0xff] }
 0x180   : > { %4802 = vmatprep.mubr.msk.f32.mxu0 %vm5662_vm0, %v5663_v6  ;;  %5273 = vmatprep.mubr.msk.f32.mxu1 %vm5662_vm0, %v5663_v6 }
 0x181   : > { %3124 = vst.msk [vmem:[%s6181_s12 + $0x128] sm:$0xff] %vm3086_vm2, %v1708_v41  ;;  %3281 = vst.msk [vmem:[%s6181_s12 + $0x610] sm:$0xff] %vm3086_vm2, %v2493_v43 }
 0x182   : > { %v1712_v47 = vpop.f32.mrb[76].mxu0  ;;  %v2497_v48 = vpop.f32.mrb[76].mxu1 }
 0x183   : > { %v1713_v49 = vadd.f32 %v6680_v32, %v1712_v47  ;;  %v4645_v50 = vpop.f32.mrb[77].mxu0  ;;  %4803 = vmatmul.mubr.msk.f32.gmra.mrb[182].mxu0 %vm516_vm1, %v283_v45  ;;  %v2498_v52 = vadd.f32 %v6680_v32, %v2497_v48  ;;  %v5116_v53 = vpop.f32.mrb[77].mxu1  ;;  %5274 = vmatmul.mubr.msk.f32.gmra.mrb[182].mxu1 %vm516_vm1, %v440_v46  ;;  %v291_v47 = vld [vmem:[%s5737_s7 + $0x318] sm:$0xff]  ;;  %v448_v48 = vld [vmem:[%s5737_s7 + $0x800] sm:$0xff] }
 0x184   : > { %4805 = vmatprep.mubr.msk.f32.mxu0 %vm5662_vm0, %v5663_v6  ;;  %5276 = vmatprep.mubr.msk.f32.mxu1 %vm5662_vm0, %v5663_v6 }
 0x185   : > { %3125 = vst.msk [vmem:[%s6181_s12 + $0x130] sm:$0xff] %vm3086_vm2, %v1713_v49  ;;  %3282 = vst.msk [vmem:[%s6181_s12 + $0x618] sm:$0xff] %vm3086_vm2, %v2498_v52 }
 0x186   : > { %v1717_v56 = vpop.f32.mrb[78].mxu0  ;;  %v2502_v57 = vpop.f32.mrb[78].mxu1 }
 0x187   : > { %v1718_v58 = vadd.f32 %v6680_v32, %v1717_v56  ;;  %v4648_v59 = vpop.f32.mrb[79].mxu0  ;;  %4806 = vmatmul.mubr.msk.f32.gmra.mrb[184].mxu0 %vm516_vm1, %v284_v54  ;;  %v2503_v60 = vadd.f32 %v6680_v32, %v2502_v57  ;;  %v5119_v61 = vpop.f32.mrb[79].mxu1  ;;  %5277 = vmatmul.mubr.msk.f32.gmra.mrb[184].mxu1 %vm516_vm1, %v441_v55  ;;  %v292_v56 = vld [vmem:[%s5737_s7 + $0x320] sm:$0xff]  ;;  %v449_v57 = vld [vmem:[%s5737_s7 + $0x808] sm:$0xff] }
 0x188   : > { %4808 = vmatprep.mubr.msk.f32.mxu0 %vm5662_vm0, %v5663_v6  ;;  %5279 = vmatprep.mubr.msk.f32.mxu1 %vm5662_vm0, %v5663_v6 }
 0x189   : > { %3126 = vst.msk [vmem:[%s6181_s12 + $0x138] sm:$0xff] %vm3086_vm2, %v1718_v58  ;;  %3283 = vst.msk [vmem:[%s6181_s12 + $0x620] sm:$0xff] %vm3086_vm2, %v2503_v60 }
 0x18a   : > { %v1722_v0 = vpop.f32.mrb[80].mxu0  ;;  %v2507_v1 = vpop.f32.mrb[80].mxu1 }
 0x18b   : > { %v1723_v2 = vadd.f32 %v6680_v32, %v1722_v0  ;;  %v4651_v3 = vpop.f32.mrb[81].mxu0  ;;  %4809 = vmatmul.mubr.msk.f32.gmra.mrb[186].mxu0 %vm516_vm1, %v285_v62  ;;  %v2508_v4 = vadd.f32 %v6680_v32, %v2507_v1  ;;  %v5122_v5 = vpop.f32.mrb[81].mxu1  ;;  %5280 = vmatmul.mubr.msk.f32.gmra.mrb[186].mxu1 %vm516_vm1, %v442_v63  ;;  %v293_v0 = vld [vmem:[%s5737_s7 + $0x328] sm:$0xff]  ;;  %v450_v1 = vld [vmem:[%s5737_s7 + $0x810] sm:$0xff] }
 0x18c   : > { %4811 = vmatprep.mubr.msk.f32.mxu0 %vm5662_vm0, %v5663_v6  ;;  %5282 = vmatprep.mubr.msk.f32.mxu1 %vm5662_vm0, %v5663_v6 }
 0x18d   : > { %3127 = vst.msk [vmem:[%s6181_s12 + $0x140] sm:$0xff] %vm3086_vm2, %v1723_v2  ;;  %3284 = vst.msk [vmem:[%s6181_s12 + $0x628] sm:$0xff] %vm3086_vm2, %v2508_v4 }
 0x18e   : > { %v1727_v9 = vpop.f32.mrb[82].mxu0  ;;  %v2512_v10 = vpop.f32.mrb[82].mxu1 }
 0x18f   : > { %v1728_v11 = vadd.f32 %v6680_v32, %v1727_v9  ;;  %v4654_v12 = vpop.f32.mrb[83].mxu0  ;;  %4812 = vmatmul.mubr.msk.f32.gmra.mrb[188].mxu0 %vm516_vm1, %v286_v7  ;;  %v2513_v13 = vadd.f32 %v6680_v32, %v2512_v10  ;;  %v5125_v14 = vpop.f32.mrb[83].mxu1  ;;  %5283 = vmatmul.mubr.msk.f32.gmra.mrb[188].mxu1 %vm516_vm1, %v443_v8  ;;  %v294_v9 = vld [vmem:[%s5737_s7 + $0x330] sm:$0xff]  ;;  %v451_v10 = vld [vmem:[%s5737_s7 + $0x818] sm:$0xff] }
 0x190   : > { %4814 = vmatprep.mubr.msk.f32.mxu0 %vm5662_vm0, %v5663_v6  ;;  %5285 = vmatprep.mubr.msk.f32.mxu1 %vm5662_vm0, %v5663_v6 }
 0x191   : > { %3128 = vst.msk [vmem:[%s6181_s12 + $0x148] sm:$0xff] %vm3086_vm2, %v1728_v11  ;;  %3285 = vst.msk [vmem:[%s6181_s12 + $0x630] sm:$0xff] %vm3086_vm2, %v2513_v13 }
 0x192   : > { %v1732_v17 = vpop.f32.mrb[84].mxu0  ;;  %v2517_v18 = vpop.f32.mrb[84].mxu1 }
 0x193   : > { %v1733_v19 = vadd.f32 %v6680_v32, %v1732_v17  ;;  %v4657_v20 = vpop.f32.mrb[85].mxu0  ;;  %4815 = vmatmul.mubr.msk.f32.gmra.mrb[190].mxu0 %vm516_vm1, %v287_v15  ;;  %v2518_v21 = vadd.f32 %v6680_v32, %v2517_v18  ;;  %v5128_v22 = vpop.f32.mrb[85].mxu1  ;;  %5286 = vmatmul.mubr.msk.f32.gmra.mrb[190].mxu1 %vm516_vm1, %v444_v16  ;;  %v295_v17 = vld [vmem:[%s5737_s7 + $0x338] sm:$0xff]  ;;  %v452_v18 = vld [vmem:[%s5737_s7 + $0x820] sm:$0xff] }
 0x194   : > { %4817 = vmatprep.mubr.msk.f32.mxu0 %vm5662_vm0, %v5663_v6  ;;  %5288 = vmatprep.mubr.msk.f32.mxu1 %vm5662_vm0, %v5663_v6 }
 0x195   : > { %3129 = vst.msk [vmem:[%s6181_s12 + $0x150] sm:$0xff] %vm3086_vm2, %v1733_v19  ;;  %3286 = vst.msk [vmem:[%s6181_s12 + $0x638] sm:$0xff] %vm3086_vm2, %v2518_v21 }
 0x196   : > { %v1737_v25 = vpop.f32.mrb[86].mxu0  ;;  %v2522_v26 = vpop.f32.mrb[86].mxu1 }
 0x197   : > { %v1738_v27 = vadd.f32 %v6680_v32, %v1737_v25  ;;  %v4660_v28 = vpop.f32.mrb[87].mxu0  ;;  %4818 = vmatmul.mubr.msk.f32.gmra.mrb[192].mxu0 %vm516_vm1, %v288_v23  ;;  %v2523_v29 = vadd.f32 %v6680_v32, %v2522_v26  ;;  %v5131_v30 = vpop.f32.mrb[87].mxu1  ;;  %5289 = vmatmul.mubr.msk.f32.gmra.mrb[192].mxu1 %vm516_vm1, %v445_v24  ;;  %v296_v25 = vld [vmem:[%s5737_s7 + $0x340] sm:$0xff]  ;;  %v453_v26 = vld [vmem:[%s5737_s7 + $0x828] sm:$0xff] }
 0x198   : > { %4820 = vmatprep.mubr.msk.f32.mxu0 %vm5662_vm0, %v5663_v6  ;;  %5291 = vmatprep.mubr.msk.f32.mxu1 %vm5662_vm0, %v5663_v6 }
 0x199   : > { %3130 = vst.msk [vmem:[%s6181_s12 + $0x158] sm:$0xff] %vm3086_vm2, %v1738_v27  ;;  %3287 = vst.msk [vmem:[%s6181_s12 + $0x640] sm:$0xff] %vm3086_vm2, %v2523_v29 }
 0x19a   : > { %v1742_v33 = vpop.f32.mrb[88].mxu0  ;;  %v2527_v34 = vpop.f32.mrb[88].mxu1 }
 0x19b   : > { %v1743_v35 = vadd.f32 %v6680_v32, %v1742_v33  ;;  %v4663_v36 = vpop.f32.mrb[89].mxu0  ;;  %4821 = vmatmul.mubr.msk.f32.gmra.mrb[194].mxu0 %vm516_vm1, %v289_v51  ;;  %v2528_v37 = vadd.f32 %v6680_v32, %v2527_v34  ;;  %v5134_v38 = vpop.f32.mrb[89].mxu1  ;;  %5292 = vmatmul.mubr.msk.f32.gmra.mrb[194].mxu1 %vm516_vm1, %v446_v31  ;;  %v297_v33 = vld [vmem:[%s5737_s7 + $0x348] sm:$0xff]  ;;  %v454_v34 = vld [vmem:[%s5737_s7 + $0x830] sm:$0xff] }
 0x19c   : > { %4823 = vmatprep.mubr.msk.f32.mxu0 %vm5662_vm0, %v5663_v6  ;;  %5294 = vmatprep.mubr.msk.f32.mxu1 %vm5662_vm0, %v5663_v6 }
 0x19d   : > { %3131 = vst.msk [vmem:[%s6181_s12 + $0x160] sm:$0xff] %vm3086_vm2, %v1743_v35  ;;  %3288 = vst.msk [vmem:[%s6181_s12 + $0x648] sm:$0xff] %vm3086_vm2, %v2528_v37 }
 0x19e   : > { %v1747_v41 = vpop.f32.mrb[90].mxu0  ;;  %v2532_v42 = vpop.f32.mrb[90].mxu1 }
 0x19f   : > { %v1748_v43 = vadd.f32 %v6680_v32, %v1747_v41  ;;  %v4666_v44 = vpop.f32.mrb[91].mxu0  ;;  %4824 = vmatmul.mubr.msk.f32.gmra.mrb[196].mxu0 %vm516_vm1, %v290_v39  ;;  %v2533_v45 = vadd.f32 %v6680_v32, %v2532_v42  ;;  %v5137_v46 = vpop.f32.mrb[91].mxu1  ;;  %5295 = vmatmul.mubr.msk.f32.gmra.mrb[196].mxu1 %vm516_vm1, %v447_v40  ;;  %v298_v41 = vld [vmem:[%s5737_s7 + $0x350] sm:$0xff]  ;;  %v455_v42 = vld [vmem:[%s5737_s7 + $0x838] sm:$0xff] }
 0x1a0   : > { %4826 = vmatprep.mubr.msk.f32.mxu0 %vm5662_vm0, %v5663_v6  ;;  %5297 = vmatprep.mubr.msk.f32.mxu1 %vm5662_vm0, %v5663_v6 }
 0x1a1   : > { %3132 = vst.msk [vmem:[%s6181_s12 + $0x168] sm:$0xff] %vm3086_vm2, %v1748_v43  ;;  %3289 = vst.msk [vmem:[%s6181_s12 + $0x650] sm:$0xff] %vm3086_vm2, %v2533_v45 }
 0x1a2   : > { %v1752_v49 = vpop.f32.mrb[92].mxu0  ;;  %v2537_v50 = vpop.f32.mrb[92].mxu1 }
 0x1a3   : > { %v1753_v52 = vadd.f32 %v6680_v32, %v1752_v49  ;;  %v4669_v53 = vpop.f32.mrb[93].mxu0  ;;  %4827 = vmatmul.mubr.msk.f32.gmra.mrb[198].mxu0 %vm516_vm1, %v291_v47  ;;  %v2538_v54 = vadd.f32 %v6680_v32, %v2537_v50  ;;  %v5140_v55 = vpop.f32.mrb[93].mxu1  ;;  %5298 = vmatmul.mubr.msk.f32.gmra.mrb[198].mxu1 %vm516_vm1, %v448_v48  ;;  %v299_v49 = vld [vmem:[%s5737_s7 + $0x358] sm:$0xff]  ;;  %v456_v50 = vld [vmem:[%s5737_s7 + $0x840] sm:$0xff] }
 0x1a4   : > { %4829 = vmatprep.mubr.msk.f32.mxu0 %vm5662_vm0, %v5663_v6  ;;  %5300 = vmatprep.mubr.msk.f32.mxu1 %vm5662_vm0, %v5663_v6 }
 0x1a5   : > { %3133 = vst.msk [vmem:[%s6181_s12 + $0x170] sm:$0xff] %vm3086_vm2, %v1753_v52  ;;  %3290 = vst.msk [vmem:[%s6181_s12 + $0x658] sm:$0xff] %vm3086_vm2, %v2538_v54 }
 0x1a6   : > { %v1757_v58 = vpop.f32.mrb[94].mxu0  ;;  %v2542_v59 = vpop.f32.mrb[94].mxu1 }
 0x1a7   : > { %v1758_v60 = vadd.f32 %v6680_v32, %v1757_v58  ;;  %v4672_v61 = vpop.f32.mrb[95].mxu0  ;;  %4830 = vmatmul.mubr.msk.f32.gmra.mrb[200].mxu0 %vm516_vm1, %v292_v56  ;;  %v2543_v62 = vadd.f32 %v6680_v32, %v2542_v59  ;;  %v5143_v63 = vpop.f32.mrb[95].mxu1  ;;  %5301 = vmatmul.mubr.msk.f32.gmra.mrb[200].mxu1 %vm516_vm1, %v449_v57  ;;  %v300_v58 = vld [vmem:[%s5737_s7 + $0x360] sm:$0xff]  ;;  %v457_v59 = vld [vmem:[%s5737_s7 + $0x848] sm:$0xff] }
 0x1a8   : > { %4832 = vmatprep.mubr.msk.f32.mxu0 %vm5662_vm0, %v5663_v6  ;;  %5303 = vmatprep.mubr.msk.f32.mxu1 %vm5662_vm0, %v5663_v6 }
 0x1a9   : > { %3134 = vst.msk [vmem:[%s6181_s12 + $0x178] sm:$0xff] %vm3086_vm2, %v1758_v60  ;;  %3291 = vst.msk [vmem:[%s6181_s12 + $0x660] sm:$0xff] %vm3086_vm2, %v2543_v62 }
 0x1aa   : > { %v1762_v2 = vpop.f32.mrb[96].mxu0  ;;  %v2547_v3 = vpop.f32.mrb[96].mxu1 }
 0x1ab   : > { %v1763_v4 = vadd.f32 %v6680_v32, %v1762_v2  ;;  %v4675_v5 = vpop.f32.mrb[97].mxu0  ;;  %4833 = vmatmul.mubr.msk.f32.gmra.mrb[202].mxu0 %vm516_vm1, %v293_v0  ;;  %v2548_v7 = vadd.f32 %v6680_v32, %v2547_v3  ;;  %v5146_v8 = vpop.f32.mrb[97].mxu1  ;;  %5304 = vmatmul.mubr.msk.f32.gmra.mrb[202].mxu1 %vm516_vm1, %v450_v1  ;;  %v301_v2 = vld [vmem:[%s5737_s7 + $0x368] sm:$0xff]  ;;  %v458_v3 = vld [vmem:[%s5737_s7 + $0x850] sm:$0xff] }
 0x1ac   : > { %4835 = vmatprep.mubr.msk.f32.mxu0 %vm5662_vm0, %v5663_v6  ;;  %5306 = vmatprep.mubr.msk.f32.mxu1 %vm5662_vm0, %v5663_v6 }
 0x1ad   : > { %3135 = vst.msk [vmem:[%s6181_s12 + $0x180] sm:$0xff] %vm3086_vm2, %v1763_v4  ;;  %3292 = vst.msk [vmem:[%s6181_s12 + $0x668] sm:$0xff] %vm3086_vm2, %v2548_v7 }
 0x1ae   : > { %v1767_v11 = vpop.f32.mrb[98].mxu0  ;;  %v2552_v12 = vpop.f32.mrb[98].mxu1 }
 0x1af   : > { %v1768_v13 = vadd.f32 %v6680_v32, %v1767_v11  ;;  %v4678_v14 = vpop.f32.mrb[99].mxu0  ;;  %4836 = vmatmul.mubr.msk.f32.gmra.mrb[204].mxu0 %vm516_vm1, %v294_v9  ;;  %v2553_v15 = vadd.f32 %v6680_v32, %v2552_v12  ;;  %v5149_v16 = vpop.f32.mrb[99].mxu1  ;;  %5307 = vmatmul.mubr.msk.f32.gmra.mrb[204].mxu1 %vm516_vm1, %v451_v10  ;;  %v302_v11 = vld [vmem:[%s5737_s7 + $0x370] sm:$0xff]  ;;  %v459_v12 = vld [vmem:[%s5737_s7 + $0x858] sm:$0xff] }
 0x1b0   : > { %4838 = vmatprep.mubr.msk.f32.mxu0 %vm5662_vm0, %v5663_v6  ;;  %5309 = vmatprep.mubr.msk.f32.mxu1 %vm5662_vm0, %v5663_v6 }
 0x1b1   : > { %3136 = vst.msk [vmem:[%s6181_s12 + $0x188] sm:$0xff] %vm3086_vm2, %v1768_v13  ;;  %3293 = vst.msk [vmem:[%s6181_s12 + $0x670] sm:$0xff] %vm3086_vm2, %v2553_v15 }
 0x1b2   : > { %v1772_v19 = vpop.f32.mrb[100].mxu0  ;;  %v2557_v20 = vpop.f32.mrb[100].mxu1 }
 0x1b3   : > { %v1773_v21 = vadd.f32 %v6680_v32, %v1772_v19  ;;  %v4681_v22 = vpop.f32.mrb[101].mxu0  ;;  %4839 = vmatmul.mubr.msk.f32.gmra.mrb[206].mxu0 %vm516_vm1, %v295_v17  ;;  %v2558_v23 = vadd.f32 %v6680_v32, %v2557_v20  ;;  %v5152_v24 = vpop.f32.mrb[101].mxu1  ;;  %5310 = vmatmul.mubr.msk.f32.gmra.mrb[206].mxu1 %vm516_vm1, %v452_v18  ;;  %v303_v19 = vld [vmem:[%s5737_s7 + $0x378] sm:$0xff]  ;;  %v460_v20 = vld [vmem:[%s5737_s7 + $0x860] sm:$0xff] }
 0x1b4   : > { %4841 = vmatprep.mubr.msk.f32.mxu0 %vm5662_vm0, %v5663_v6  ;;  %5312 = vmatprep.mubr.msk.f32.mxu1 %vm5662_vm0, %v5663_v6 }
 0x1b5   : > { %3137 = vst.msk [vmem:[%s6181_s12 + $0x190] sm:$0xff] %vm3086_vm2, %v1773_v21  ;;  %3294 = vst.msk [vmem:[%s6181_s12 + $0x678] sm:$0xff] %vm3086_vm2, %v2558_v23 }
 0x1b6   : > { %v1777_v27 = vpop.f32.mrb[102].mxu0  ;;  %v2562_v28 = vpop.f32.mrb[102].mxu1 }
 0x1b7   : > { %v1778_v29 = vadd.f32 %v6680_v32, %v1777_v27  ;;  %v4684_v30 = vpop.f32.mrb[103].mxu0  ;;  %4842 = vmatmul.mubr.msk.f32.gmra.mrb[208].mxu0 %vm516_vm1, %v296_v25  ;;  %v2563_v51 = vadd.f32 %v6680_v32, %v2562_v28  ;;  %v5155_v31 = vpop.f32.mrb[103].mxu1  ;;  %5313 = vmatmul.mubr.msk.f32.gmra.mrb[208].mxu1 %vm516_vm1, %v453_v26  ;;  %v304_v27 = vld [vmem:[%s5737_s7 + $0x380] sm:$0xff]  ;;  %v461_v28 = vld [vmem:[%s5737_s7 + $0x868] sm:$0xff] }
 0x1b8   : > { %4844 = vmatprep.mubr.msk.f32.mxu0 %vm5662_vm0, %v5663_v6  ;;  %5315 = vmatprep.mubr.msk.f32.mxu1 %vm5662_vm0, %v5663_v6 }
 0x1b9   : > { %3138 = vst.msk [vmem:[%s6181_s12 + $0x198] sm:$0xff] %vm3086_vm2, %v1778_v29  ;;  %3295 = vst.msk [vmem:[%s6181_s12 + $0x680] sm:$0xff] %vm3086_vm2, %v2563_v51 }
 0x1ba   : > { %v1782_v35 = vpop.f32.mrb[104].mxu0  ;;  %v2567_v36 = vpop.f32.mrb[104].mxu1 }
 0x1bb   : > { %v1783_v37 = vadd.f32 %v6680_v32, %v1782_v35  ;;  %v4687_v38 = vpop.f32.mrb[105].mxu0  ;;  %4845 = vmatmul.mubr.msk.f32.gmra.mrb[210].mxu0 %vm516_vm1, %v297_v33  ;;  %v2568_v39 = vadd.f32 %v6680_v32, %v2567_v36  ;;  %v5158_v40 = vpop.f32.mrb[105].mxu1  ;;  %5316 = vmatmul.mubr.msk.f32.gmra.mrb[210].mxu1 %vm516_vm1, %v454_v34  ;;  %v305_v35 = vld [vmem:[%s5737_s7 + $0x388] sm:$0xff]  ;;  %v462_v36 = vld [vmem:[%s5737_s7 + $0x870] sm:$0xff] }
 0x1bc   : > { %4847 = vmatprep.mubr.msk.f32.mxu0 %vm5662_vm0, %v5663_v6  ;;  %5318 = vmatprep.mubr.msk.f32.mxu1 %vm5662_vm0, %v5663_v6 }
 0x1bd   : > { %3139 = vst.msk [vmem:[%s6181_s12 + $0x1a0] sm:$0xff] %vm3086_vm2, %v1783_v37  ;;  %3296 = vst.msk [vmem:[%s6181_s12 + $0x688] sm:$0xff] %vm3086_vm2, %v2568_v39 }
 0x1be   : > { %v1787_v43 = vpop.f32.mrb[106].mxu0  ;;  %v2572_v44 = vpop.f32.mrb[106].mxu1 }
 0x1bf   : > { %v1788_v45 = vadd.f32 %v6680_v32, %v1787_v43  ;;  %v4690_v46 = vpop.f32.mrb[107].mxu0  ;;  %4848 = vmatmul.mubr.msk.f32.gmra.mrb[212].mxu0 %vm516_vm1, %v298_v41  ;;  %v2573_v47 = vadd.f32 %v6680_v32, %v2572_v44  ;;  %v5161_v48 = vpop.f32.mrb[107].mxu1  ;;  %5319 = vmatmul.mubr.msk.f32.gmra.mrb[212].mxu1 %vm516_vm1, %v455_v42  ;;  %v306_v43 = vld [vmem:[%s5737_s7 + $0x390] sm:$0xff]  ;;  %v463_v44 = vld [vmem:[%s5737_s7 + $0x878] sm:$0xff] }
 0x1c0   : > { %4850 = vmatprep.mubr.msk.f32.mxu0 %vm5662_vm0, %v5663_v6  ;;  %5321 = vmatprep.mubr.msk.f32.mxu1 %vm5662_vm0, %v5663_v6 }
 0x1c1   : > { %3140 = vst.msk [vmem:[%s6181_s12 + $0x1a8] sm:$0xff] %vm3086_vm2, %v1788_v45  ;;  %3297 = vst.msk [vmem:[%s6181_s12 + $0x690] sm:$0xff] %vm3086_vm2, %v2573_v47 }
 0x1c2   : > { %v1792_v52 = vpop.f32.mrb[108].mxu0  ;;  %v2577_v53 = vpop.f32.mrb[108].mxu1 }
 0x1c3   : > { %v1793_v54 = vadd.f32 %v6680_v32, %v1792_v52  ;;  %v4693_v55 = vpop.f32.mrb[109].mxu0  ;;  %4851 = vmatmul.mubr.msk.f32.gmra.mrb[214].mxu0 %vm516_vm1, %v299_v49  ;;  %v2578_v56 = vadd.f32 %v6680_v32, %v2577_v53  ;;  %v5164_v57 = vpop.f32.mrb[109].mxu1  ;;  %5322 = vmatmul.mubr.msk.f32.gmra.mrb[214].mxu1 %vm516_vm1, %v456_v50  ;;  %v307_v52 = vld [vmem:[%s5737_s7 + $0x398] sm:$0xff]  ;;  %v464_v53 = vld [vmem:[%s5737_s7 + $0x880] sm:$0xff] }
 0x1c4   : > { %4853 = vmatprep.mubr.msk.f32.mxu0 %vm5662_vm0, %v5663_v6  ;;  %5324 = vmatprep.mubr.msk.f32.mxu1 %vm5662_vm0, %v5663_v6 }
 0x1c5   : > { %3141 = vst.msk [vmem:[%s6181_s12 + $0x1b0] sm:$0xff] %vm3086_vm2, %v1793_v54  ;;  %3298 = vst.msk [vmem:[%s6181_s12 + $0x698] sm:$0xff] %vm3086_vm2, %v2578_v56 }
 0x1c6   : > { %v1797_v60 = vpop.f32.mrb[110].mxu0  ;;  %v2582_v61 = vpop.f32.mrb[110].mxu1 }
 0x1c7   : > { %v1798_v62 = vadd.f32 %v6680_v32, %v1797_v60  ;;  %v4696_v63 = vpop.f32.mrb[111].mxu0  ;;  %4854 = vmatmul.mubr.msk.f32.gmra.mrb[216].mxu0 %vm516_vm1, %v300_v58  ;;  %v2583_v0 = vadd.f32 %v6680_v32, %v2582_v61  ;;  %v5167_v1 = vpop.f32.mrb[111].mxu1  ;;  %5325 = vmatmul.mubr.msk.f32.gmra.mrb[216].mxu1 %vm516_vm1, %v457_v59  ;;  %v308_v60 = vld [vmem:[%s5737_s7 + $0x3a0] sm:$0xff]  ;;  %v465_v61 = vld [vmem:[%s5737_s7 + $0x888] sm:$0xff] }
 0x1c8   : > { %4856 = vmatprep.mubr.msk.f32.mxu0 %vm5662_vm0, %v5663_v6  ;;  %5327 = vmatprep.mubr.msk.f32.mxu1 %vm5662_vm0, %v5663_v6 }
 0x1c9   : > { %3142 = vst.msk [vmem:[%s6181_s12 + $0x1b8] sm:$0xff] %vm3086_vm2, %v1798_v62  ;;  %3299 = vst.msk [vmem:[%s6181_s12 + $0x6a0] sm:$0xff] %vm3086_vm2, %v2583_v0 }
 0x1ca   : > { %v1802_v4 = vpop.f32.mrb[112].mxu0  ;;  %v2587_v5 = vpop.f32.mrb[112].mxu1 }
 0x1cb   : > { %v1803_v7 = vadd.f32 %v6680_v32, %v1802_v4  ;;  %v4699_v8 = vpop.f32.mrb[113].mxu0  ;;  %4857 = vmatmul.mubr.msk.f32.gmra.mrb[218].mxu0 %vm516_vm1, %v301_v2  ;;  %v2588_v9 = vadd.f32 %v6680_v32, %v2587_v5  ;;  %v5170_v10 = vpop.f32.mrb[113].mxu1  ;;  %5328 = vmatmul.mubr.msk.f32.gmra.mrb[218].mxu1 %vm516_vm1, %v458_v3  ;;  %v309_v4 = vld [vmem:[%s5737_s7 + $0x3a8] sm:$0xff]  ;;  %v466_v5 = vld [vmem:[%s5737_s7 + $0x890] sm:$0xff] }
 0x1cc   : > { %4859 = vmatprep.mubr.msk.f32.mxu0 %vm5662_vm0, %v5663_v6  ;;  %5330 = vmatprep.mubr.msk.f32.mxu1 %vm5662_vm0, %v5663_v6 }
 0x1cd   : > { %3143 = vst.msk [vmem:[%s6181_s12 + $0x1c0] sm:$0xff] %vm3086_vm2, %v1803_v7  ;;  %3300 = vst.msk [vmem:[%s6181_s12 + $0x6a8] sm:$0xff] %vm3086_vm2, %v2588_v9 }
 0x1ce   : > { %v1807_v13 = vpop.f32.mrb[114].mxu0  ;;  %v2592_v14 = vpop.f32.mrb[114].mxu1 }
 0x1cf   : > { %v1808_v15 = vadd.f32 %v6680_v32, %v1807_v13  ;;  %v4702_v16 = vpop.f32.mrb[115].mxu0  ;;  %4860 = vmatmul.mubr.msk.f32.gmra.mrb[220].mxu0 %vm516_vm1, %v302_v11  ;;  %v2593_v17 = vadd.f32 %v6680_v32, %v2592_v14  ;;  %v5173_v18 = vpop.f32.mrb[115].mxu1  ;;  %5331 = vmatmul.mubr.msk.f32.gmra.mrb[220].mxu1 %vm516_vm1, %v459_v12  ;;  %v310_v13 = vld [vmem:[%s5737_s7 + $0x3b0] sm:$0xff]  ;;  %v467_v14 = vld [vmem:[%s5737_s7 + $0x898] sm:$0xff] }
 0x1d0   : > { %4862 = vmatprep.mubr.msk.f32.mxu0 %vm5662_vm0, %v5663_v6  ;;  %5333 = vmatprep.mubr.msk.f32.mxu1 %vm5662_vm0, %v5663_v6 }
 0x1d1   : > { %3144 = vst.msk [vmem:[%s6181_s12 + $0x1c8] sm:$0xff] %vm3086_vm2, %v1808_v15  ;;  %3301 = vst.msk [vmem:[%s6181_s12 + $0x6b0] sm:$0xff] %vm3086_vm2, %v2593_v17 }
 0x1d2   : > { %v1812_v21 = vpop.f32.mrb[116].mxu0  ;;  %v2597_v22 = vpop.f32.mrb[116].mxu1 }
 0x1d3   : > { %v1813_v23 = vadd.f32 %v6680_v32, %v1812_v21  ;;  %v4705_v24 = vpop.f32.mrb[117].mxu0  ;;  %4863 = vmatmul.mubr.msk.f32.gmra.mrb[222].mxu0 %vm516_vm1, %v303_v19  ;;  %v2598_v25 = vadd.f32 %v6680_v32, %v2597_v22  ;;  %v5176_v26 = vpop.f32.mrb[117].mxu1  ;;  %5334 = vmatmul.mubr.msk.f32.gmra.mrb[222].mxu1 %vm516_vm1, %v460_v20  ;;  %v311_v21 = vld [vmem:[%s5737_s7 + $0x3b8] sm:$0xff]  ;;  %v468_v22 = vld [vmem:[%s5737_s7 + $0x8a0] sm:$0xff] }
 0x1d4   : > { %4865 = vmatprep.mubr.msk.f32.mxu0 %vm5662_vm0, %v5663_v6  ;;  %5336 = vmatprep.mubr.msk.f32.mxu1 %vm5662_vm0, %v5663_v6 }
 0x1d5   : > { %3145 = vst.msk [vmem:[%s6181_s12 + $0x1d0] sm:$0xff] %vm3086_vm2, %v1813_v23  ;;  %3302 = vst.msk [vmem:[%s6181_s12 + $0x6b8] sm:$0xff] %vm3086_vm2, %v2598_v25 }
 0x1d6   : > { %v1817_v29 = vpop.f32.mrb[118].mxu0  ;;  %v2602_v30 = vpop.f32.mrb[118].mxu1 }
 0x1d7   : > { %v1818_v51 = vadd.f32 %v6680_v32, %v1817_v29  ;;  %v4708_v31 = vpop.f32.mrb[119].mxu0  ;;  %4866 = vmatmul.mubr.msk.f32.gmra.mrb[224].mxu0 %vm516_vm1, %v304_v27  ;;  %v2603_v33 = vadd.f32 %v6680_v32, %v2602_v30  ;;  %v5179_v34 = vpop.f32.mrb[119].mxu1  ;;  %5337 = vmatmul.mubr.msk.f32.gmra.mrb[224].mxu1 %vm516_vm1, %v461_v28  ;;  %v312_v29 = vld [vmem:[%s5737_s7 + $0x3c0] sm:$0xff]  ;;  %v469_v30 = vld [vmem:[%s5737_s7 + $0x8a8] sm:$0xff] }
 0x1d8   : > { %4868 = vmatprep.mubr.msk.f32.mxu0 %vm5662_vm0, %v5663_v6  ;;  %5339 = vmatprep.mubr.msk.f32.mxu1 %vm5662_vm0, %v5663_v6 }
 0x1d9   : > { %3146 = vst.msk [vmem:[%s6181_s12 + $0x1d8] sm:$0xff] %vm3086_vm2, %v1818_v51  ;;  %3303 = vst.msk [vmem:[%s6181_s12 + $0x6c0] sm:$0xff] %vm3086_vm2, %v2603_v33 }
 0x1da   : > { %v1822_v37 = vpop.f32.mrb[120].mxu0  ;;  %v2607_v38 = vpop.f32.mrb[120].mxu1 }
 0x1db   : > { %v1823_v39 = vadd.f32 %v6680_v32, %v1822_v37  ;;  %v4711_v40 = vpop.f32.mrb[121].mxu0  ;;  %4869 = vmatmul.mubr.msk.f32.gmra.mrb[226].mxu0 %vm516_vm1, %v305_v35  ;;  %v2608_v41 = vadd.f32 %v6680_v32, %v2607_v38  ;;  %v5182_v42 = vpop.f32.mrb[121].mxu1  ;;  %5340 = vmatmul.mubr.msk.f32.gmra.mrb[226].mxu1 %vm516_vm1, %v462_v36  ;;  %v313_v37 = vld [vmem:[%s5737_s7 + $0x3c8] sm:$0xff]  ;;  %v470_v38 = vld [vmem:[%s5737_s7 + $0x8b0] sm:$0xff] }
 0x1dc   : > { %4871 = vmatprep.mubr.msk.f32.mxu0 %vm5662_vm0, %v5663_v6  ;;  %5342 = vmatprep.mubr.msk.f32.mxu1 %vm5662_vm0, %v5663_v6 }
 0x1dd   : > { %3147 = vst.msk [vmem:[%s6181_s12 + $0x1e0] sm:$0xff] %vm3086_vm2, %v1823_v39  ;;  %3304 = vst.msk [vmem:[%s6181_s12 + $0x6c8] sm:$0xff] %vm3086_vm2, %v2608_v41 }
 0x1de   : > { %v1827_v45 = vpop.f32.mrb[122].mxu0  ;;  %v2612_v46 = vpop.f32.mrb[122].mxu1 }
 0x1df   : > { %v1828_v47 = vadd.f32 %v6680_v32, %v1827_v45  ;;  %v4714_v48 = vpop.f32.mrb[123].mxu0  ;;  %4872 = vmatmul.mubr.msk.f32.gmra.mrb[228].mxu0 %vm516_vm1, %v306_v43  ;;  %v2613_v49 = vadd.f32 %v6680_v32, %v2612_v46  ;;  %v5185_v50 = vpop.f32.mrb[123].mxu1  ;;  %5343 = vmatmul.mubr.msk.f32.gmra.mrb[228].mxu1 %vm516_vm1, %v463_v44  ;;  %v314_v45 = vld [vmem:[%s5737_s7 + $0x3d0] sm:$0xff]  ;;  %v471_v46 = vld [vmem:[%s5737_s7 + $0x8b8] sm:$0xff] }
 0x1e0   : > { %4874 = vmatprep.mubr.msk.f32.mxu0 %vm5662_vm0, %v5663_v6  ;;  %5345 = vmatprep.mubr.msk.f32.mxu1 %vm5662_vm0, %v5663_v6 }
 0x1e1   : > { %3148 = vst.msk [vmem:[%s6181_s12 + $0x1e8] sm:$0xff] %vm3086_vm2, %v1828_v47  ;;  %3305 = vst.msk [vmem:[%s6181_s12 + $0x6d0] sm:$0xff] %vm3086_vm2, %v2613_v49 }
 0x1e2   : > { %v1832_v54 = vpop.f32.mrb[124].mxu0  ;;  %v2617_v55 = vpop.f32.mrb[124].mxu1 }
 0x1e3   : > { %v1833_v56 = vadd.f32 %v6680_v32, %v1832_v54  ;;  %v4717_v57 = vpop.f32.mrb[125].mxu0  ;;  %4875 = vmatmul.mubr.msk.f32.gmra.mrb[230].mxu0 %vm516_vm1, %v307_v52  ;;  %v2618_v58 = vadd.f32 %v6680_v32, %v2617_v55  ;;  %v5188_v59 = vpop.f32.mrb[125].mxu1  ;;  %5346 = vmatmul.mubr.msk.f32.gmra.mrb[230].mxu1 %vm516_vm1, %v464_v53  ;;  %v315_v54 = vld [vmem:[%s5737_s7 + $0x3d8] sm:$0xff]  ;;  %v472_v55 = vld [vmem:[%s5737_s7 + $0x8c0] sm:$0xff] }
 0x1e4   : > { %4877 = vmatprep.mubr.msk.f32.mxu0 %vm5662_vm0, %v5663_v6  ;;  %5348 = vmatprep.mubr.msk.f32.mxu1 %vm5662_vm0, %v5663_v6 }
 0x1e5   : > { %3149 = vst.msk [vmem:[%s6181_s12 + $0x1f0] sm:$0xff] %vm3086_vm2, %v1833_v56  ;;  %3306 = vst.msk [vmem:[%s6181_s12 + $0x6d8] sm:$0xff] %vm3086_vm2, %v2618_v58 }
 0x1e6   : > { %v1837_v62 = vpop.f32.mrb[126].mxu0  ;;  %v2622_v63 = vpop.f32.mrb[126].mxu1 }
 0x1e7   : > { %v1838_v0 = vadd.f32 %v6680_v32, %v1837_v62  ;;  %v4720_v1 = vpop.f32.mrb[127].mxu0  ;;  %4878 = vmatmul.mubr.msk.f32.gmra.mrb[232].mxu0 %vm516_vm1, %v308_v60  ;;  %v2623_v2 = vadd.f32 %v6680_v32, %v2622_v63  ;;  %v5191_v3 = vpop.f32.mrb[127].mxu1  ;;  %5349 = vmatmul.mubr.msk.f32.gmra.mrb[232].mxu1 %vm516_vm1, %v465_v61  ;;  %v316_v62 = vld [vmem:[%s5737_s7 + $0x3e0] sm:$0xff]  ;;  %v473_v63 = vld [vmem:[%s5737_s7 + $0x8c8] sm:$0xff] }
 0x1e8   : > { %4880 = vmatprep.mubr.msk.f32.mxu0 %vm5662_vm0, %v5663_v6  ;;  %5351 = vmatprep.mubr.msk.f32.mxu1 %vm5662_vm0, %v5663_v6 }
 0x1e9   : > { %3150 = vst.msk [vmem:[%s6181_s12 + $0x1f8] sm:$0xff] %vm3086_vm2, %v1838_v0  ;;  %3307 = vst.msk [vmem:[%s6181_s12 + $0x6e0] sm:$0xff] %vm3086_vm2, %v2623_v2 }
 0x1ea   : > { %v1842_v7 = vpop.f32.mrb[128].mxu0  ;;  %v2627_v8 = vpop.f32.mrb[128].mxu1 }
 0x1eb   : > { %v1843_v9 = vadd.f32 %v6680_v32, %v1842_v7  ;;  %v4723_v10 = vpop.f32.mrb[129].mxu0  ;;  %4881 = vmatmul.mubr.msk.f32.gmra.mrb[234].mxu0 %vm516_vm1, %v309_v4  ;;  %v2628_v11 = vadd.f32 %v6680_v32, %v2627_v8  ;;  %v5194_v12 = vpop.f32.mrb[129].mxu1  ;;  %5352 = vmatmul.mubr.msk.f32.gmra.mrb[234].mxu1 %vm516_vm1, %v466_v5  ;;  %v317_v7 = vld [vmem:[%s5737_s7 + $0x3e8] sm:$0xff]  ;;  %v474_v8 = vld [vmem:[%s5737_s7 + $0x8d0] sm:$0xff] }
 0x1ec   : > { %4883 = vmatprep.mubr.msk.f32.mxu0 %vm5662_vm0, %v5663_v6  ;;  %5354 = vmatprep.mubr.msk.f32.mxu1 %vm5662_vm0, %v5663_v6 }
 0x1ed   : > { %3151 = vst.msk [vmem:[%s6181_s12 + $0x200] sm:$0xff] %vm3086_vm2, %v1843_v9  ;;  %3308 = vst.msk [vmem:[%s6181_s12 + $0x6e8] sm:$0xff] %vm3086_vm2, %v2628_v11 }
 0x1ee   : > { %v1847_v15 = vpop.f32.mrb[130].mxu0  ;;  %v2632_v16 = vpop.f32.mrb[130].mxu1 }
 0x1ef   : > { %v1848_v17 = vadd.f32 %v6680_v32, %v1847_v15  ;;  %v4726_v18 = vpop.f32.mrb[131].mxu0  ;;  %4884 = vmatmul.mubr.msk.f32.gmra.mrb[236].mxu0 %vm516_vm1, %v310_v13  ;;  %v2633_v19 = vadd.f32 %v6680_v32, %v2632_v16  ;;  %v5197_v20 = vpop.f32.mrb[131].mxu1  ;;  %5355 = vmatmul.mubr.msk.f32.gmra.mrb[236].mxu1 %vm516_vm1, %v467_v14  ;;  %v318_v15 = vld [vmem:[%s5737_s7 + $0x3f0] sm:$0xff]  ;;  %v475_v16 = vld [vmem:[%s5737_s7 + $0x8d8] sm:$0xff] }
 0x1f0   : > { %4886 = vmatprep.mubr.msk.f32.mxu0 %vm5662_vm0, %v5663_v6  ;;  %5357 = vmatprep.mubr.msk.f32.mxu1 %vm5662_vm0, %v5663_v6  ;;  %v7203_v18 = vld [vmem:[%s8157_s2] ss:$0 sm:$0xff] }
 0x1f1   : > { %3152 = vst.msk [vmem:[%s6181_s12 + $0x208] sm:$0xff] %vm3086_vm2, %v1848_v17  ;;  %3309 = vst.msk [vmem:[%s6181_s12 + $0x6f0] sm:$0xff] %vm3086_vm2, %v2633_v19 }
 0x1f2   : > { %v1852_v23 = vpop.f32.mrb[132].mxu0  ;;  %v2637_v24 = vpop.f32.mrb[132].mxu1 }
 0x1f3   : > { %v1853_v25 = vadd.f32 %v6680_v32, %v1852_v23  ;;  %v4729_v26 = vpop.f32.mrb[133].mxu0  ;;  %4887 = vmatmul.mubr.msk.f32.gmra.mrb[238].mxu0 %vm516_vm1, %v311_v21  ;;  %v2638_v27 = vadd.f32 %v6680_v32, %v2637_v24  ;;  %v5200_v28 = vpop.f32.mrb[133].mxu1  ;;  %5358 = vmatmul.mubr.msk.f32.gmra.mrb[238].mxu1 %vm516_vm1, %v468_v22  ;;  %v319_v23 = vld [vmem:[%s5737_s7 + $0x3f8] sm:$0xff]  ;;  %v476_v24 = vld [vmem:[%s5737_s7 + $0x8e0] sm:$0xff] }
 0x1f4   : > { %4889 = vmatprep.mubr.msk.f32.mxu0 %vm5662_vm0, %v5663_v6  ;;  %5360 = vmatprep.mubr.msk.f32.mxu1 %vm5662_vm0, %v5663_v6 }
 0x1f5   : > { %3153 = vst.msk [vmem:[%s6181_s12 + $0x210] sm:$0xff] %vm3086_vm2, %v1853_v25  ;;  %3310 = vst.msk [vmem:[%s6181_s12 + $0x6f8] sm:$0xff] %vm3086_vm2, %v2638_v27 }
 0x1f6   : > { %v1857_v51 = vpop.f32.mrb[134].mxu0  ;;  %v2642_v31 = vpop.f32.mrb[134].mxu1 }
 0x1f7   : > { %v1858_v33 = vadd.f32 %v6680_v32, %v1857_v51  ;;  %v4732_v34 = vpop.f32.mrb[135].mxu0  ;;  %4890 = vmatmul.mubr.msk.f32.gmra.mrb[240].mxu0 %vm516_vm1, %v312_v29  ;;  %v2643_v35 = vadd.f32 %v6680_v32, %v2642_v31  ;;  %v5203_v36 = vpop.f32.mrb[135].mxu1  ;;  %5361 = vmatmul.mubr.msk.f32.gmra.mrb[240].mxu1 %vm516_vm1, %v469_v30  ;;  %v320_v51 = vld [vmem:[%s5737_s7 + $0x400] sm:$0xff]  ;;  %v477_v31 = vld [vmem:[%s5737_s7 + $0x8e8] sm:$0xff] }
 0x1f8   : > { %4892 = vmatprep.mubr.msk.f32.mxu0 %vm5662_vm0, %v5663_v6  ;;  %5363 = vmatprep.mubr.msk.f32.mxu1 %vm5662_vm0, %v5663_v6 }
 0x1f9   : > { %3154 = vst.msk [vmem:[%s6181_s12 + $0x218] sm:$0xff] %vm3086_vm2, %v1858_v33  ;;  %3311 = vst.msk [vmem:[%s6181_s12 + $0x700] sm:$0xff] %vm3086_vm2, %v2643_v35 }
 0x1fa   : > { %v1862_v39 = vpop.f32.mrb[136].mxu0  ;;  %v2647_v40 = vpop.f32.mrb[136].mxu1 }
 0x1fb   : > { %v1863_v41 = vadd.f32 %v6680_v32, %v1862_v39  ;;  %v4735_v42 = vpop.f32.mrb[137].mxu0  ;;  %4893 = vmatmul.mubr.msk.f32.gmra.mrb[242].mxu0 %vm516_vm1, %v313_v37  ;;  %v2648_v43 = vadd.f32 %v6680_v32, %v2647_v40  ;;  %v5206_v44 = vpop.f32.mrb[137].mxu1  ;;  %5364 = vmatmul.mubr.msk.f32.gmra.mrb[242].mxu1 %vm516_vm1, %v470_v38  ;;  %v321_v39 = vld [vmem:[%s5737_s7 + $0x408] sm:$0xff]  ;;  %v478_v40 = vld [vmem:[%s5737_s7 + $0x8f0] sm:$0xff] }
 0x1fc   : > { %4895 = vmatprep.mubr.msk.f32.mxu0 %vm5662_vm0, %v5663_v6  ;;  %5366 = vmatprep.mubr.msk.f32.mxu1 %vm5662_vm0, %v5663_v6 }
 0x1fd   : > { %3155 = vst.msk [vmem:[%s6181_s12 + $0x220] sm:$0xff] %vm3086_vm2, %v1863_v41  ;;  %3312 = vst.msk [vmem:[%s6181_s12 + $0x708] sm:$0xff] %vm3086_vm2, %v2648_v43 }
 0x1fe   : > { %v1867_v47 = vpop.f32.mrb[138].mxu0  ;;  %v2652_v48 = vpop.f32.mrb[138].mxu1 }
 0x1ff   : > { %v1868_v49 = vadd.f32 %v6680_v32, %v1867_v47  ;;  %v4738_v50 = vpop.f32.mrb[139].mxu0  ;;  %4896 = vmatmul.mubr.msk.f32.gmra.mrb[244].mxu0 %vm516_vm1, %v314_v45  ;;  %v2653_v52 = vadd.f32 %v6680_v32, %v2652_v48  ;;  %v5209_v53 = vpop.f32.mrb[139].mxu1  ;;  %5367 = vmatmul.mubr.msk.f32.gmra.mrb[244].mxu1 %vm516_vm1, %v471_v46  ;;  %v322_v47 = vld [vmem:[%s5737_s7 + $0x410] sm:$0xff]  ;;  %v479_v48 = vld [vmem:[%s5737_s7 + $0x8f8] sm:$0xff] }
 0x200   : > { %4898 = vmatprep.mubr.msk.f32.mxu0 %vm5662_vm0, %v5663_v6  ;;  %5369 = vmatprep.mubr.msk.f32.mxu1 %vm5662_vm0, %v5663_v6 }
 0x201   : > { %3156 = vst.msk [vmem:[%s6181_s12 + $0x228] sm:$0xff] %vm3086_vm2, %v1868_v49  ;;  %3313 = vst.msk [vmem:[%s6181_s12 + $0x710] sm:$0xff] %vm3086_vm2, %v2653_v52 }
 0x202   : > { %v1872_v56 = vpop.f32.mrb[140].mxu0  ;;  %v2657_v57 = vpop.f32.mrb[140].mxu1 }
 0x203   : > { %v1873_v58 = vadd.f32 %v6680_v32, %v1872_v56  ;;  %v4741_v59 = vpop.f32.mrb[141].mxu0  ;;  %4899 = vmatmul.mubr.msk.f32.gmra.mrb[246].mxu0 %vm516_vm1, %v315_v54  ;;  %v2658_v60 = vadd.f32 %v6680_v32, %v2657_v57  ;;  %v5212_v61 = vpop.f32.mrb[141].mxu1  ;;  %5370 = vmatmul.mubr.msk.f32.gmra.mrb[246].mxu1 %vm516_vm1, %v472_v55  ;;  %v323_v56 = vld [vmem:[%s5737_s7 + $0x418] sm:$0xff]  ;;  %v480_v57 = vld [vmem:[%s5737_s7 + $0x900] sm:$0xff] }
 0x204   : > { %4901 = vmatprep.mubr.msk.f32.mxu0 %vm5662_vm0, %v5663_v6  ;;  %5372 = vmatprep.mubr.msk.f32.mxu1 %vm5662_vm0, %v5663_v6 }
 0x205   : > { %3157 = vst.msk [vmem:[%s6181_s12 + $0x230] sm:$0xff] %vm3086_vm2, %v1873_v58  ;;  %3314 = vst.msk [vmem:[%s6181_s12 + $0x718] sm:$0xff] %vm3086_vm2, %v2658_v60 }
 0x206   : > { %v1877_v0 = vpop.f32.mrb[142].mxu0  ;;  %v2662_v1 = vpop.f32.mrb[142].mxu1 }
 0x207   : > { %v1878_v2 = vadd.f32 %v6680_v32, %v1877_v0  ;;  %v4744_v3 = vpop.f32.mrb[143].mxu0  ;;  %4902 = vmatmul.mubr.msk.f32.gmra.mrb[248].mxu0 %vm516_vm1, %v316_v62  ;;  %v2663_v4 = vadd.f32 %v6680_v32, %v2662_v1  ;;  %v5215_v5 = vpop.f32.mrb[143].mxu1  ;;  %5373 = vmatmul.mubr.msk.f32.gmra.mrb[248].mxu1 %vm516_vm1, %v473_v63  ;;  %v324_v0 = vld [vmem:[%s5737_s7 + $0x420] sm:$0xff]  ;;  %v481_v1 = vld [vmem:[%s5737_s7 + $0x908] sm:$0xff] }
 0x208   : > { %4904 = vmatprep.mubr.msk.f32.mxu0 %vm5662_vm0, %v5663_v6  ;;  %5375 = vmatprep.mubr.msk.f32.mxu1 %vm5662_vm0, %v5663_v6 }
 0x209   : > { %3158 = vst.msk [vmem:[%s6181_s12 + $0x238] sm:$0xff] %vm3086_vm2, %v1878_v2  ;;  %3315 = vst.msk [vmem:[%s6181_s12 + $0x720] sm:$0xff] %vm3086_vm2, %v2663_v4 }
 0x20a   : > { %v1882_v9 = vpop.f32.mrb[144].mxu0  ;;  %v2667_v10 = vpop.f32.mrb[144].mxu1 }
 0x20b   : > { %v1883_v11 = vadd.f32 %v6680_v32, %v1882_v9  ;;  %v4747_v12 = vpop.f32.mrb[145].mxu0  ;;  %4905 = vmatmul.mubr.msk.f32.gmra.mrb[250].mxu0 %vm516_vm1, %v317_v7  ;;  %v2668_v13 = vadd.f32 %v6680_v32, %v2667_v10  ;;  %v5218_v14 = vpop.f32.mrb[145].mxu1  ;;  %5376 = vmatmul.mubr.msk.f32.gmra.mrb[250].mxu1 %vm516_vm1, %v474_v8  ;;  %v325_v9 = vld [vmem:[%s5737_s7 + $0x428] sm:$0xff]  ;;  %v482_v10 = vld [vmem:[%s5737_s7 + $0x910] sm:$0xff] }
 0x20c   : > { %4907 = vmatprep.mubr.msk.f32.mxu0 %vm5662_vm0, %v5663_v6  ;;  %5378 = vmatprep.mubr.msk.f32.mxu1 %vm5662_vm0, %v5663_v6 }
 0x20d   : > { %3159 = vst.msk [vmem:[%s6181_s12 + $0x240] sm:$0xff] %vm3086_vm2, %v1883_v11  ;;  %3316 = vst.msk [vmem:[%s6181_s12 + $0x728] sm:$0xff] %vm3086_vm2, %v2668_v13 }
 0x20e   : > { %v1887_v32 = vpop.f32.mrb[146].mxu0  ;;  %v2672_v17 = vpop.f32.mrb[146].mxu1 }
 0x20f   : > { %v1888_v19 = vadd.f32 %v7203_v18, %v1887_v32  ;;  %v4750_v20 = vpop.f32.mrb[147].mxu0  ;;  %4908 = vmatmul.mubr.msk.f32.gmra.mrb[252].mxu0 %vm516_vm1, %v318_v15  ;;  %v2673_v21 = vadd.f32 %v7203_v18, %v2672_v17  ;;  %v5221_v22 = vpop.f32.mrb[147].mxu1  ;;  %5379 = vmatmul.mubr.msk.f32.gmra.mrb[252].mxu1 %vm516_vm1, %v475_v16  ;;  %v326_v32 = vld [vmem:[%s5737_s7 + $0x430] sm:$0xff]  ;;  %v483_v17 = vld [vmem:[%s5737_s7 + $0x918] sm:$0xff] }
 0x210   : > { %4910 = vmatprep.mubr.msk.f32.mxu0 %vm5662_vm0, %v5663_v6  ;;  %5381 = vmatprep.mubr.msk.f32.mxu1 %vm5662_vm0, %v5663_v6 }
 0x211   : > { %3160 = vst.msk [vmem:[%s6181_s12 + $0x248] sm:$0xff] %vm3086_vm2, %v1888_v19  ;;  %3317 = vst.msk [vmem:[%s6181_s12 + $0x730] sm:$0xff] %vm3086_vm2, %v2673_v21 }
 0x212   : > { %v1892_v25 = vpop.f32.mrb[148].mxu0  ;;  %v2677_v26 = vpop.f32.mrb[148].mxu1 }
 0x213   : > { %v1893_v27 = vadd.f32 %v7203_v18, %v1892_v25  ;;  %v4753_v28 = vpop.f32.mrb[149].mxu0  ;;  %4911 = vmatmul.mubr.msk.f32.gmra.mrb[254].mxu0 %vm516_vm1, %v319_v23  ;;  %v2678_v29 = vadd.f32 %v7203_v18, %v2677_v26  ;;  %v5224_v30 = vpop.f32.mrb[149].mxu1  ;;  %5382 = vmatmul.mubr.msk.f32.gmra.mrb[254].mxu1 %vm516_vm1, %v476_v24  ;;  %v327_v25 = vld [vmem:[%s5737_s7 + $0x438] sm:$0xff]  ;;  %v484_v26 = vld [vmem:[%s5737_s7 + $0x920] sm:$0xff] }
 0x214   : > { %4913 = vmatprep.mubr.msk.f32.mxu0 %vm5662_vm0, %v5663_v6  ;;  %5384 = vmatprep.mubr.msk.f32.mxu1 %vm5662_vm0, %v5663_v6 }
 0x215   : > { %3161 = vst.msk [vmem:[%s6181_s12 + $0x250] sm:$0xff] %vm3086_vm2, %v1893_v27  ;;  %3318 = vst.msk [vmem:[%s6181_s12 + $0x738] sm:$0xff] %vm3086_vm2, %v2678_v29 }
 0x216   : > { %v1897_v33 = vpop.f32.mrb[150].mxu0  ;;  %v2682_v34 = vpop.f32.mrb[150].mxu1 }
 0x217   : > { %v1898_v35 = vadd.f32 %v7203_v18, %v1897_v33  ;;  %v4756_v36 = vpop.f32.mrb[151].mxu0  ;;  %4914 = vmatmul.mubr.msk.f32.gmra.mrb[0].mxu0 %vm516_vm1, %v320_v51  ;;  %v2683_v37 = vadd.f32 %v7203_v18, %v2682_v34  ;;  %v5227_v38 = vpop.f32.mrb[151].mxu1  ;;  %5385 = vmatmul.mubr.msk.f32.gmra.mrb[0].mxu1 %vm516_vm1, %v477_v31  ;;  %v328_v33 = vld [vmem:[%s5737_s7 + $0x440] sm:$0xff]  ;;  %v485_v34 = vld [vmem:[%s5737_s7 + $0x928] sm:$0xff] }
 0x218   : > { %4916 = vmatprep.mubr.msk.f32.mxu0 %vm5662_vm0, %v5663_v6  ;;  %5387 = vmatprep.mubr.msk.f32.mxu1 %vm5662_vm0, %v5663_v6 }
 0x219   : > { %3162 = vst.msk [vmem:[%s6181_s12 + $0x258] sm:$0xff] %vm3086_vm2, %v1898_v35  ;;  %3319 = vst.msk [vmem:[%s6181_s12 + $0x740] sm:$0xff] %vm3086_vm2, %v2683_v37 }
 0x21a   : > { %v1902_v41 = vpop.f32.mrb[152].mxu0  ;;  %v2687_v42 = vpop.f32.mrb[152].mxu1 }
 0x21b   : > { %v1903_v43 = vadd.f32 %v7203_v18, %v1902_v41  ;;  %v4759_v44 = vpop.f32.mrb[153].mxu0  ;;  %4917 = vmatmul.mubr.msk.f32.gmra.mrb[2].mxu0 %vm516_vm1, %v321_v39  ;;  %v2688_v45 = vadd.f32 %v7203_v18, %v2687_v42  ;;  %v5230_v46 = vpop.f32.mrb[153].mxu1  ;;  %5388 = vmatmul.mubr.msk.f32.gmra.mrb[2].mxu1 %vm516_vm1, %v478_v40  ;;  %v329_v41 = vld [vmem:[%s5737_s7 + $0x448] sm:$0xff]  ;;  %v486_v42 = vld [vmem:[%s5737_s7 + $0x930] sm:$0xff] }
 0x21c   : > { %4919 = vmatprep.mubr.msk.f32.mxu0 %vm5662_vm0, %v5663_v6  ;;  %5390 = vmatprep.mubr.msk.f32.mxu1 %vm5662_vm0, %v5663_v6 }
 0x21d   : > { %3163 = vst.msk [vmem:[%s6181_s12 + $0x260] sm:$0xff] %vm3086_vm2, %v1903_v43  ;;  %3320 = vst.msk [vmem:[%s6181_s12 + $0x748] sm:$0xff] %vm3086_vm2, %v2688_v45 }
 0x21e   : > { %v1907_v49 = vpop.f32.mrb[154].mxu0  ;;  %v2692_v50 = vpop.f32.mrb[154].mxu1 }
 0x21f   : > { %v1908_v52 = vadd.f32 %v7203_v18, %v1907_v49  ;;  %v4762_v53 = vpop.f32.mrb[155].mxu0  ;;  %4920 = vmatmul.mubr.msk.f32.gmra.mrb[4].mxu0 %vm516_vm1, %v322_v47  ;;  %v2693_v54 = vadd.f32 %v7203_v18, %v2692_v50  ;;  %v5233_v55 = vpop.f32.mrb[155].mxu1  ;;  %5391 = vmatmul.mubr.msk.f32.gmra.mrb[4].mxu1 %vm516_vm1, %v479_v48  ;;  %v330_v49 = vld [vmem:[%s5737_s7 + $0x450] sm:$0xff]  ;;  %v487_v50 = vld [vmem:[%s5737_s7 + $0x938] sm:$0xff] }
 0x220   : > { %4922 = vmatprep.mubr.msk.f32.mxu0 %vm5662_vm0, %v5663_v6  ;;  %5393 = vmatprep.mubr.msk.f32.mxu1 %vm5662_vm0, %v5663_v6 }
 0x221   : > { %3164 = vst.msk [vmem:[%s6181_s12 + $0x268] sm:$0xff] %vm3086_vm2, %v1908_v52  ;;  %3321 = vst.msk [vmem:[%s6181_s12 + $0x750] sm:$0xff] %vm3086_vm2, %v2693_v54 }
 0x222   : > { %v1912_v58 = vpop.f32.mrb[156].mxu0  ;;  %v2697_v59 = vpop.f32.mrb[156].mxu1 }
 0x223   : > { %v1913_v60 = vadd.f32 %v7203_v18, %v1912_v58  ;;  %v4765_v61 = vpop.f32.mrb[157].mxu0  ;;  %4923 = vmatmul.mubr.msk.f32.gmra.mrb[6].mxu0 %vm516_vm1, %v323_v56  ;;  %v2698_v62 = vadd.f32 %v7203_v18, %v2697_v59  ;;  %v5236_v63 = vpop.f32.mrb[157].mxu1  ;;  %5394 = vmatmul.mubr.msk.f32.gmra.mrb[6].mxu1 %vm516_vm1, %v480_v57  ;;  %v331_v58 = vld [vmem:[%s5737_s7 + $0x458] sm:$0xff]  ;;  %v488_v59 = vld [vmem:[%s5737_s7 + $0x940] sm:$0xff] }
 0x224   : > { %4925 = vmatprep.mubr.msk.f32.mxu0 %vm5662_vm0, %v5663_v6  ;;  %5396 = vmatprep.mubr.msk.f32.mxu1 %vm5662_vm0, %v5663_v6 }
 0x225   : > { %3165 = vst.msk [vmem:[%s6181_s12 + $0x270] sm:$0xff] %vm3086_vm2, %v1913_v60  ;;  %3322 = vst.msk [vmem:[%s6181_s12 + $0x758] sm:$0xff] %vm3086_vm2, %v2698_v62 }
 0x226   : > { %v1917_v2 = vpop.f32.mrb[158].mxu0  ;;  %v2702_v3 = vpop.f32.mrb[158].mxu1 }
 0x227   : > { %v1918_v4 = vadd.f32 %v7203_v18, %v1917_v2  ;;  %v4768_v5 = vpop.f32.mrb[159].mxu0  ;;  %4926 = vmatmul.mubr.msk.f32.gmra.mrb[8].mxu0 %vm516_vm1, %v324_v0  ;;  %v2703_v7 = vadd.f32 %v7203_v18, %v2702_v3  ;;  %v5239_v8 = vpop.f32.mrb[159].mxu1  ;;  %5397 = vmatmul.mubr.msk.f32.gmra.mrb[8].mxu1 %vm516_vm1, %v481_v1  ;;  %v332_v2 = vld [vmem:[%s5737_s7 + $0x460] sm:$0xff]  ;;  %v489_v3 = vld [vmem:[%s5737_s7 + $0x948] sm:$0xff] }
 0x228   : > { %4928 = vmatprep.mubr.msk.f32.mxu0 %vm5662_vm0, %v5663_v6  ;;  %5399 = vmatprep.mubr.msk.f32.mxu1 %vm5662_vm0, %v5663_v6 }
 0x229   : > { %3166 = vst.msk [vmem:[%s6181_s12 + $0x278] sm:$0xff] %vm3086_vm2, %v1918_v4  ;;  %3323 = vst.msk [vmem:[%s6181_s12 + $0x760] sm:$0xff] %vm3086_vm2, %v2703_v7 }
 0x22a   : > { %v1922_v11 = vpop.f32.mrb[160].mxu0  ;;  %v2707_v12 = vpop.f32.mrb[160].mxu1 }
 0x22b   : > { %v1923_v13 = vadd.f32 %v7203_v18, %v1922_v11  ;;  %v4771_v14 = vpop.f32.mrb[161].mxu0  ;;  %4929 = vmatmul.mubr.msk.f32.gmra.mrb[10].mxu0 %vm516_vm1, %v325_v9  ;;  %v2708_v15 = vadd.f32 %v7203_v18, %v2707_v12  ;;  %v5242_v16 = vpop.f32.mrb[161].mxu1  ;;  %5400 = vmatmul.mubr.msk.f32.gmra.mrb[10].mxu1 %vm516_vm1, %v482_v10  ;;  %v333_v11 = vld [vmem:[%s5737_s7 + $0x468] sm:$0xff]  ;;  %v490_v12 = vld [vmem:[%s5737_s7 + $0x950] sm:$0xff] }
 0x22c   : > { %4931 = vmatprep.mubr.msk.f32.mxu0 %vm5662_vm0, %v5663_v6  ;;  %5402 = vmatprep.mubr.msk.f32.mxu1 %vm5662_vm0, %v5663_v6 }
 0x22d   : > { %3167 = vst.msk [vmem:[%s6181_s12 + $0x280] sm:$0xff] %vm3086_vm2, %v1923_v13  ;;  %3324 = vst.msk [vmem:[%s6181_s12 + $0x768] sm:$0xff] %vm3086_vm2, %v2708_v15 }
 0x22e   : > { %v1927_v19 = vpop.f32.mrb[162].mxu0  ;;  %v2712_v20 = vpop.f32.mrb[162].mxu1 }
 0x22f   : > { %v1928_v21 = vadd.f32 %v7203_v18, %v1927_v19  ;;  %v4774_v22 = vpop.f32.mrb[163].mxu0  ;;  %4932 = vmatmul.mubr.msk.f32.gmra.mrb[12].mxu0 %vm516_vm1, %v326_v32  ;;  %v2713_v23 = vadd.f32 %v7203_v18, %v2712_v20  ;;  %v5245_v24 = vpop.f32.mrb[163].mxu1  ;;  %5403 = vmatmul.mubr.msk.f32.gmra.mrb[12].mxu1 %vm516_vm1, %v483_v17  ;;  %v334_v19 = vld [vmem:[%s5737_s7 + $0x470] sm:$0xff]  ;;  %v491_v20 = vld [vmem:[%s5737_s7 + $0x958] sm:$0xff] }
 0x230   : > { %4934 = vmatprep.mubr.msk.f32.mxu0 %vm5662_vm0, %v5663_v6  ;;  %5405 = vmatprep.mubr.msk.f32.mxu1 %vm5662_vm0, %v5663_v6 }
 0x231   : > { %3168 = vst.msk [vmem:[%s6181_s12 + $0x288] sm:$0xff] %vm3086_vm2, %v1928_v21  ;;  %3325 = vst.msk [vmem:[%s6181_s12 + $0x770] sm:$0xff] %vm3086_vm2, %v2713_v23 }
 0x232   : > { %v1932_v27 = vpop.f32.mrb[164].mxu0  ;;  %v2717_v28 = vpop.f32.mrb[164].mxu1 }
 0x233   : > { %v1933_v29 = vadd.f32 %v7203_v18, %v1932_v27  ;;  %v4777_v30 = vpop.f32.mrb[165].mxu0  ;;  %4935 = vmatmul.mubr.msk.f32.gmra.mrb[14].mxu0 %vm516_vm1, %v327_v25  ;;  %v2718_v51 = vadd.f32 %v7203_v18, %v2717_v28  ;;  %v5248_v31 = vpop.f32.mrb[165].mxu1  ;;  %5406 = vmatmul.mubr.msk.f32.gmra.mrb[14].mxu1 %vm516_vm1, %v484_v26  ;;  %v335_v27 = vld [vmem:[%s5737_s7 + $0x478] sm:$0xff]  ;;  %v492_v28 = vld [vmem:[%s5737_s7 + $0x960] sm:$0xff] }
 0x234   : > { %4937 = vmatprep.mubr.msk.f32.mxu0 %vm5662_vm0, %v5663_v6  ;;  %5408 = vmatprep.mubr.msk.f32.mxu1 %vm5662_vm0, %v5663_v6 }
 0x235   : > { %3169 = vst.msk [vmem:[%s6181_s12 + $0x290] sm:$0xff] %vm3086_vm2, %v1933_v29  ;;  %3326 = vst.msk [vmem:[%s6181_s12 + $0x778] sm:$0xff] %vm3086_vm2, %v2718_v51 }
 0x236   : > { %v1937_v35 = vpop.f32.mrb[166].mxu0  ;;  %v2722_v36 = vpop.f32.mrb[166].mxu1 }
 0x237   : > { %v1938_v37 = vadd.f32 %v7203_v18, %v1937_v35  ;;  %v4780_v38 = vpop.f32.mrb[167].mxu0  ;;  %4938 = vmatmul.mubr.msk.f32.gmra.mrb[16].mxu0 %vm516_vm1, %v328_v33  ;;  %v2723_v39 = vadd.f32 %v7203_v18, %v2722_v36  ;;  %v5251_v40 = vpop.f32.mrb[167].mxu1  ;;  %5409 = vmatmul.mubr.msk.f32.gmra.mrb[16].mxu1 %vm516_vm1, %v485_v34  ;;  %v336_v35 = vld [vmem:[%s5737_s7 + $0x480] sm:$0xff]  ;;  %v493_v36 = vld [vmem:[%s5737_s7 + $0x968] sm:$0xff] }
 0x238   : > { %4940 = vmatprep.mubr.msk.f32.mxu0 %vm5662_vm0, %v5663_v6  ;;  %5411 = vmatprep.mubr.msk.f32.mxu1 %vm5662_vm0, %v5663_v6 }
 0x239   : > { %3170 = vst.msk [vmem:[%s6181_s12 + $0x298] sm:$0xff] %vm3086_vm2, %v1938_v37  ;;  %3327 = vst.msk [vmem:[%s6181_s12 + $0x780] sm:$0xff] %vm3086_vm2, %v2723_v39 }
 0x23a   : > { %v1942_v43 = vpop.f32.mrb[168].mxu0  ;;  %v2727_v44 = vpop.f32.mrb[168].mxu1 }
 0x23b   : > { %v1943_v45 = vadd.f32 %v7203_v18, %v1942_v43  ;;  %v4783_v46 = vpop.f32.mrb[169].mxu0  ;;  %4941 = vmatmul.mubr.msk.f32.gmra.mrb[18].mxu0 %vm516_vm1, %v329_v41  ;;  %v2728_v47 = vadd.f32 %v7203_v18, %v2727_v44  ;;  %v5254_v48 = vpop.f32.mrb[169].mxu1  ;;  %5412 = vmatmul.mubr.msk.f32.gmra.mrb[18].mxu1 %vm516_vm1, %v486_v42  ;;  %v337_v43 = vld [vmem:[%s5737_s7 + $0x488] sm:$0xff]  ;;  %v494_v44 = vld [vmem:[%s5737_s7 + $0x970] sm:$0xff] }
 0x23c   : > { %4943 = vmatprep.mubr.msk.f32.mxu0 %vm5662_vm0, %v5663_v6  ;;  %5414 = vmatprep.mubr.msk.f32.mxu1 %vm5662_vm0, %v5663_v6 }
 0x23d   : > { %3171 = vst.msk [vmem:[%s6181_s12 + $0x2a0] sm:$0xff] %vm3086_vm2, %v1943_v45  ;;  %3328 = vst.msk [vmem:[%s6181_s12 + $0x788] sm:$0xff] %vm3086_vm2, %v2728_v47 }
 0x23e   : > { %v1947_v52 = vpop.f32.mrb[170].mxu0  ;;  %v2732_v53 = vpop.f32.mrb[170].mxu1 }
 0x23f   : > { %v1948_v54 = vadd.f32 %v7203_v18, %v1947_v52  ;;  %v4786_v55 = vpop.f32.mrb[171].mxu0  ;;  %4944 = vmatmul.mubr.msk.f32.gmra.mrb[20].mxu0 %vm516_vm1, %v330_v49  ;;  %v2733_v56 = vadd.f32 %v7203_v18, %v2732_v53  ;;  %v5257_v57 = vpop.f32.mrb[171].mxu1  ;;  %5415 = vmatmul.mubr.msk.f32.gmra.mrb[20].mxu1 %vm516_vm1, %v487_v50  ;;  %v338_v52 = vld [vmem:[%s5737_s7 + $0x490] sm:$0xff]  ;;  %v495_v53 = vld [vmem:[%s5737_s7 + $0x978] sm:$0xff] }
 0x240   : > { %4946 = vmatprep.mubr.msk.f32.mxu0 %vm5662_vm0, %v5663_v6  ;;  %5417 = vmatprep.mubr.msk.f32.mxu1 %vm5662_vm0, %v5663_v6 }
 0x241   : > { %3172 = vst.msk [vmem:[%s6181_s12 + $0x2a8] sm:$0xff] %vm3086_vm2, %v1948_v54  ;;  %3329 = vst.msk [vmem:[%s6181_s12 + $0x790] sm:$0xff] %vm3086_vm2, %v2733_v56 }
 0x242   : > { %v1952_v60 = vpop.f32.mrb[172].mxu0  ;;  %v2737_v61 = vpop.f32.mrb[172].mxu1 }
 0x243   : > { %v1953_v62 = vadd.f32 %v7203_v18, %v1952_v60  ;;  %v4789_v63 = vpop.f32.mrb[173].mxu0  ;;  %4947 = vmatmul.mubr.msk.f32.gmra.mrb[22].mxu0 %vm516_vm1, %v331_v58  ;;  %v2738_v0 = vadd.f32 %v7203_v18, %v2737_v61  ;;  %v5260_v1 = vpop.f32.mrb[173].mxu1  ;;  %5418 = vmatmul.mubr.msk.f32.gmra.mrb[22].mxu1 %vm516_vm1, %v488_v59  ;;  %v339_v60 = vld [vmem:[%s5737_s7 + $0x498] sm:$0xff]  ;;  %v496_v61 = vld [vmem:[%s5737_s7 + $0x980] sm:$0xff] }
 0x244   : > { %4949 = vmatprep.mubr.msk.f32.mxu0 %vm5662_vm0, %v5663_v6  ;;  %5420 = vmatprep.mubr.msk.f32.mxu1 %vm5662_vm0, %v5663_v6 }
 0x245   : > { %3173 = vst.msk [vmem:[%s6181_s12 + $0x2b0] sm:$0xff] %vm3086_vm2, %v1953_v62  ;;  %3330 = vst.msk [vmem:[%s6181_s12 + $0x798] sm:$0xff] %vm3086_vm2, %v2738_v0 }
 0x246   : > { %v1957_v4 = vpop.f32.mrb[174].mxu0  ;;  %v2742_v5 = vpop.f32.mrb[174].mxu1 }
 0x247   : > { %v1958_v7 = vadd.f32 %v7203_v18, %v1957_v4  ;;  %v4792_v8 = vpop.f32.mrb[175].mxu0  ;;  %4950 = vmatmul.mubr.msk.f32.gmra.mrb[24].mxu0 %vm516_vm1, %v332_v2  ;;  %v2743_v9 = vadd.f32 %v7203_v18, %v2742_v5  ;;  %v5263_v10 = vpop.f32.mrb[175].mxu1  ;;  %5421 = vmatmul.mubr.msk.f32.gmra.mrb[24].mxu1 %vm516_vm1, %v489_v3  ;;  %v340_v4 = vld [vmem:[%s5737_s7 + $0x4a0] sm:$0xff]  ;;  %v497_v5 = vld [vmem:[%s5737_s7 + $0x988] sm:$0xff] }
 0x248   : > { %4952 = vmatprep.mubr.msk.f32.mxu0 %vm5662_vm0, %v5663_v6  ;;  %5423 = vmatprep.mubr.msk.f32.mxu1 %vm5662_vm0, %v5663_v6 }
 0x249   : > { %3174 = vst.msk [vmem:[%s6181_s12 + $0x2b8] sm:$0xff] %vm3086_vm2, %v1958_v7  ;;  %3331 = vst.msk [vmem:[%s6181_s12 + $0x7a0] sm:$0xff] %vm3086_vm2, %v2743_v9 }
 0x24a   : > { %v1962_v13 = vpop.f32.mrb[176].mxu0  ;;  %v2747_v14 = vpop.f32.mrb[176].mxu1 }
 0x24b   : > { %v1963_v15 = vadd.f32 %v7203_v18, %v1962_v13  ;;  %v4795_v16 = vpop.f32.mrb[177].mxu0  ;;  %4953 = vmatmul.mubr.msk.f32.gmra.mrb[26].mxu0 %vm516_vm1, %v333_v11  ;;  %v2748_v32 = vadd.f32 %v7203_v18, %v2747_v14  ;;  %v5266_v17 = vpop.f32.mrb[177].mxu1  ;;  %5424 = vmatmul.mubr.msk.f32.gmra.mrb[26].mxu1 %vm516_vm1, %v490_v12  ;;  %v341_v13 = vld [vmem:[%s5737_s7 + $0x4a8] sm:$0xff]  ;;  %v498_v14 = vld [vmem:[%s5737_s7 + $0x990] sm:$0xff] }
 0x24c   : > { %4955 = vmatprep.mubr.msk.f32.mxu0 %vm5662_vm0, %v5663_v6  ;;  %5426 = vmatprep.mubr.msk.f32.mxu1 %vm5662_vm0, %v5663_v6 }
 0x24d   : > { %3175 = vst.msk [vmem:[%s6181_s12 + $0x2c0] sm:$0xff] %vm3086_vm2, %v1963_v15  ;;  %3332 = vst.msk [vmem:[%s6181_s12 + $0x7a8] sm:$0xff] %vm3086_vm2, %v2748_v32 }
 0x24e   : > { %v1967_v21 = vpop.f32.mrb[178].mxu0  ;;  %v2752_v22 = vpop.f32.mrb[178].mxu1 }
 0x24f   : > { %v1968_v23 = vadd.f32 %v7203_v18, %v1967_v21  ;;  %v4798_v24 = vpop.f32.mrb[179].mxu0  ;;  %4956 = vmatmul.mubr.msk.f32.gmra.mrb[28].mxu0 %vm516_vm1, %v334_v19  ;;  %v2753_v25 = vadd.f32 %v7203_v18, %v2752_v22  ;;  %v5269_v26 = vpop.f32.mrb[179].mxu1  ;;  %5427 = vmatmul.mubr.msk.f32.gmra.mrb[28].mxu1 %vm516_vm1, %v491_v20  ;;  %v342_v21 = vld [vmem:[%s5737_s7 + $0x4b0] sm:$0xff]  ;;  %v499_v22 = vld [vmem:[%s5737_s7 + $0x998] sm:$0xff] }
 0x250   : > { %4958 = vmatprep.mubr.msk.f32.mxu0 %vm5662_vm0, %v5663_v6  ;;  %5429 = vmatprep.mubr.msk.f32.mxu1 %vm5662_vm0, %v5663_v6 }
 0x251   : > { %3176 = vst.msk [vmem:[%s6181_s12 + $0x2c8] sm:$0xff] %vm3086_vm2, %v1968_v23  ;;  %3333 = vst.msk [vmem:[%s6181_s12 + $0x7b0] sm:$0xff] %vm3086_vm2, %v2753_v25 }
 0x252   : > { %v1972_v29 = vpop.f32.mrb[180].mxu0  ;;  %v2757_v30 = vpop.f32.mrb[180].mxu1 }
 0x253   : > { %v1973_v51 = vadd.f32 %v7203_v18, %v1972_v29  ;;  %v4801_v31 = vpop.f32.mrb[181].mxu0  ;;  %4959 = vmatmul.mubr.msk.f32.gmra.mrb[30].mxu0 %vm516_vm1, %v335_v27  ;;  %v2758_v33 = vadd.f32 %v7203_v18, %v2757_v30  ;;  %v5272_v34 = vpop.f32.mrb[181].mxu1  ;;  %5430 = vmatmul.mubr.msk.f32.gmra.mrb[30].mxu1 %vm516_vm1, %v492_v28  ;;  %v343_v29 = vld [vmem:[%s5737_s7 + $0x4b8] sm:$0xff]  ;;  %v500_v30 = vld [vmem:[%s5737_s7 + $0x9a0] sm:$0xff] }
 0x254   : > { %4961 = vmatprep.mubr.msk.f32.mxu0 %vm5662_vm0, %v5663_v6  ;;  %5432 = vmatprep.mubr.msk.f32.mxu1 %vm5662_vm0, %v5663_v6 }
 0x255   : > { %3177 = vst.msk [vmem:[%s6181_s12 + $0x2d0] sm:$0xff] %vm3086_vm2, %v1973_v51  ;;  %3334 = vst.msk [vmem:[%s6181_s12 + $0x7b8] sm:$0xff] %vm3086_vm2, %v2758_v33 }
 0x256   : > { %v1977_v37 = vpop.f32.mrb[182].mxu0  ;;  %v2762_v38 = vpop.f32.mrb[182].mxu1 }
 0x257   : > { %v1978_v39 = vadd.f32 %v7203_v18, %v1977_v37  ;;  %v4804_v40 = vpop.f32.mrb[183].mxu0  ;;  %4962 = vmatmul.mubr.msk.f32.gmra.mrb[32].mxu0 %vm516_vm1, %v336_v35  ;;  %v2763_v41 = vadd.f32 %v7203_v18, %v2762_v38  ;;  %v5275_v42 = vpop.f32.mrb[183].mxu1  ;;  %5433 = vmatmul.mubr.msk.f32.gmra.mrb[32].mxu1 %vm516_vm1, %v493_v36  ;;  %v344_v37 = vld [vmem:[%s5737_s7 + $0x4c0] sm:$0xff]  ;;  %v501_v38 = vld [vmem:[%s5737_s7 + $0x9a8] sm:$0xff] }
 0x258   : > { %4964 = vmatprep.mubr.msk.f32.mxu0 %vm5662_vm0, %v5663_v6  ;;  %5435 = vmatprep.mubr.msk.f32.mxu1 %vm5662_vm0, %v5663_v6 }
 0x259   : > { %3178 = vst.msk [vmem:[%s6181_s12 + $0x2d8] sm:$0xff] %vm3086_vm2, %v1978_v39  ;;  %3335 = vst.msk [vmem:[%s6181_s12 + $0x7c0] sm:$0xff] %vm3086_vm2, %v2763_v41 }
 0x25a   : > { %v1982_v45 = vpop.f32.mrb[184].mxu0  ;;  %v2767_v46 = vpop.f32.mrb[184].mxu1 }
 0x25b   : > { %v1983_v47 = vadd.f32 %v7203_v18, %v1982_v45  ;;  %v4807_v48 = vpop.f32.mrb[185].mxu0  ;;  %4965 = vmatmul.mubr.msk.f32.gmra.mrb[34].mxu0 %vm516_vm1, %v337_v43  ;;  %v2768_v49 = vadd.f32 %v7203_v18, %v2767_v46  ;;  %v5278_v50 = vpop.f32.mrb[185].mxu1  ;;  %5436 = vmatmul.mubr.msk.f32.gmra.mrb[34].mxu1 %vm516_vm1, %v494_v44  ;;  %v345_v45 = vld [vmem:[%s5737_s7 + $0x4c8] sm:$0xff]  ;;  %v502_v46 = vld [vmem:[%s5737_s7 + $0x9b0] sm:$0xff] }
 0x25c   : > { %4967 = vmatprep.mubr.msk.f32.mxu0 %vm5662_vm0, %v5663_v6  ;;  %5438 = vmatprep.mubr.msk.f32.mxu1 %vm5662_vm0, %v5663_v6 }
 0x25d   : > { %3179 = vst.msk [vmem:[%s6181_s12 + $0x2e0] sm:$0xff] %vm3086_vm2, %v1983_v47  ;;  %3336 = vst.msk [vmem:[%s6181_s12 + $0x7c8] sm:$0xff] %vm3086_vm2, %v2768_v49 }
 0x25e   : > { %v1987_v54 = vpop.f32.mrb[186].mxu0  ;;  %v2772_v55 = vpop.f32.mrb[186].mxu1 }
 0x25f   : > { %v1988_v56 = vadd.f32 %v7203_v18, %v1987_v54  ;;  %v4810_v57 = vpop.f32.mrb[187].mxu0  ;;  %4968 = vmatmul.mubr.msk.f32.gmra.mrb[36].mxu0 %vm516_vm1, %v338_v52  ;;  %v2773_v58 = vadd.f32 %v7203_v18, %v2772_v55  ;;  %v5281_v59 = vpop.f32.mrb[187].mxu1  ;;  %5439 = vmatmul.mubr.msk.f32.gmra.mrb[36].mxu1 %vm516_vm1, %v495_v53  ;;  %v346_v54 = vld [vmem:[%s5737_s7 + $0x4d0] sm:$0xff]  ;;  %v503_v55 = vld [vmem:[%s5737_s7 + $0x9b8] sm:$0xff] }
 0x260   : > { %4970 = vmatprep.mubr.msk.f32.mxu0 %vm5662_vm0, %v5663_v6  ;;  %5441 = vmatprep.mubr.msk.f32.mxu1 %vm5662_vm0, %v5663_v6 }
 0x261   : > { %3180 = vst.msk [vmem:[%s6181_s12 + $0x2e8] sm:$0xff] %vm3086_vm2, %v1988_v56  ;;  %3337 = vst.msk [vmem:[%s6181_s12 + $0x7d0] sm:$0xff] %vm3086_vm2, %v2773_v58 }
 0x262   : > { %v1992_v62 = vpop.f32.mrb[188].mxu0  ;;  %v2777_v63 = vpop.f32.mrb[188].mxu1 }
 0x263   : > { %v1993_v0 = vadd.f32 %v7203_v18, %v1992_v62  ;;  %v4813_v1 = vpop.f32.mrb[189].mxu0  ;;  %4971 = vmatmul.mubr.msk.f32.gmra.mrb[38].mxu0 %vm516_vm1, %v339_v60  ;;  %v2778_v2 = vadd.f32 %v7203_v18, %v2777_v63  ;;  %v5284_v3 = vpop.f32.mrb[189].mxu1  ;;  %5442 = vmatmul.mubr.msk.f32.gmra.mrb[38].mxu1 %vm516_vm1, %v496_v61  ;;  %v347_v62 = vld [vmem:[%s5737_s7 + $0x4d8] sm:$0xff]  ;;  %v504_v63 = vld [vmem:[%s5737_s7 + $0x9c0] sm:$0xff] }
 0x264   : > { %4973 = vmatprep.mubr.msk.f32.mxu0 %vm5662_vm0, %v5663_v6  ;;  %5444 = vmatprep.mubr.msk.f32.mxu1 %vm5662_vm0, %v5663_v6 }
 0x265   : > { %3181 = vst.msk [vmem:[%s6181_s12 + $0x2f0] sm:$0xff] %vm3086_vm2, %v1993_v0  ;;  %3338 = vst.msk [vmem:[%s6181_s12 + $0x7d8] sm:$0xff] %vm3086_vm2, %v2778_v2 }
 0x266   : > { %v1997_v7 = vpop.f32.mrb[190].mxu0  ;;  %v2782_v8 = vpop.f32.mrb[190].mxu1 }
 0x267   : > { %v1998_v9 = vadd.f32 %v7203_v18, %v1997_v7  ;;  %v4816_v10 = vpop.f32.mrb[191].mxu0  ;;  %4974 = vmatmul.mubr.msk.f32.gmra.mrb[40].mxu0 %vm516_vm1, %v340_v4  ;;  %v2783_v11 = vadd.f32 %v7203_v18, %v2782_v8  ;;  %v5287_v12 = vpop.f32.mrb[191].mxu1  ;;  %5445 = vmatmul.mubr.msk.f32.gmra.mrb[40].mxu1 %vm516_vm1, %v497_v5  ;;  %v348_v7 = vld [vmem:[%s5737_s7 + $0x4e0] sm:$0xff] }
 0x268   : > { %4976 = vmatprep.mubr.msk.f32.mxu0 %vm5662_vm0, %v5663_v6  ;;  %5447 = vmatprep.mubr.msk.f32.mxu1 %vm5662_vm0, %v5663_v6 }
 0x269   : > { %3182 = vst.msk [vmem:[%s6181_s12 + $0x2f8] sm:$0xff] %vm3086_vm2, %v1998_v9  ;;  %3339 = vst.msk [vmem:[%s6181_s12 + $0x7e0] sm:$0xff] %vm3086_vm2, %v2783_v11 }
 0x26a   : > { %v2002_v15 = vpop.f32.mrb[192].mxu0  ;;  %v2787_v16 = vpop.f32.mrb[192].mxu1 }
 0x26b   : > { %v2003_v32 = vadd.f32 %v7203_v18, %v2002_v15  ;;  %v4819_v17 = vpop.f32.mrb[193].mxu0  ;;  %4977 = vmatmul.mubr.msk.f32.gmra.mrb[42].mxu0 %vm516_vm1, %v341_v13  ;;  %v2788_v19 = vadd.f32 %v7203_v18, %v2787_v16  ;;  %v5290_v20 = vpop.f32.mrb[193].mxu1  ;;  %5448 = vmatmul.mubr.msk.f32.gmra.mrb[42].mxu1 %vm516_vm1, %v498_v14 }
 0x26c   : > { %4979 = vmatprep.mubr.msk.f32.mxu0 %vm5662_vm0, %v5663_v6  ;;  %5450 = vmatprep.mubr.msk.f32.mxu1 %vm5662_vm0, %v5663_v6 }
 0x26d   : > { %3183 = vst.msk [vmem:[%s6181_s12 + $0x300] sm:$0xff] %vm3086_vm2, %v2003_v32  ;;  %3340 = vst.msk [vmem:[%s6181_s12 + $0x7e8] sm:$0xff] %vm3086_vm2, %v2788_v19 }
 0x26e   : > { %v2007_v23 = vpop.f32.mrb[194].mxu0  ;;  %v2792_v24 = vpop.f32.mrb[194].mxu1 }
 0x26f   : > { %v2008_v25 = vadd.f32 %v7203_v18, %v2007_v23  ;;  %v4822_v26 = vpop.f32.mrb[195].mxu0  ;;  %4980 = vmatmul.mubr.msk.f32.gmra.mrb[44].mxu0 %vm516_vm1, %v342_v21  ;;  %v2793_v27 = vadd.f32 %v7203_v18, %v2792_v24  ;;  %v5293_v28 = vpop.f32.mrb[195].mxu1  ;;  %5451 = vmatmul.mubr.msk.f32.gmra.mrb[44].mxu1 %vm516_vm1, %v499_v22 }
 0x270   : > { %4982 = vmatprep.mubr.msk.f32.mxu0 %vm5662_vm0, %v5663_v6  ;;  %5453 = vmatprep.mubr.msk.f32.mxu1 %vm5662_vm0, %v5663_v6 }
 0x271   : > { %3184 = vst.msk [vmem:[%s6181_s12 + $0x308] sm:$0xff] %vm3086_vm2, %v2008_v25  ;;  %3341 = vst.msk [vmem:[%s6181_s12 + $0x7f0] sm:$0xff] %vm3086_vm2, %v2793_v27 }
 0x272   : > { %v2012_v51 = vpop.f32.mrb[196].mxu0  ;;  %v2797_v31 = vpop.f32.mrb[196].mxu1 }
 0x273   : > { %v2013_v33 = vadd.f32 %v7203_v18, %v2012_v51  ;;  %v4825_v34 = vpop.f32.mrb[197].mxu0  ;;  %4983 = vmatmul.mubr.msk.f32.gmra.mrb[46].mxu0 %vm516_vm1, %v343_v29  ;;  %v2798_v35 = vadd.f32 %v7203_v18, %v2797_v31  ;;  %v5296_v36 = vpop.f32.mrb[197].mxu1  ;;  %5454 = vmatmul.mubr.msk.f32.gmra.mrb[46].mxu1 %vm516_vm1, %v500_v30 }
 0x274   : > { %4985 = vmatprep.mubr.msk.f32.mxu0 %vm5662_vm0, %v5663_v6  ;;  %5456 = vmatprep.mubr.msk.f32.mxu1 %vm5662_vm0, %v5663_v6 }
 0x275   : > { %3185 = vst.msk [vmem:[%s6181_s12 + $0x310] sm:$0xff] %vm3086_vm2, %v2013_v33  ;;  %3342 = vst.msk [vmem:[%s6181_s12 + $0x7f8] sm:$0xff] %vm3086_vm2, %v2798_v35 }
 0x276   : > { %v2017_v39 = vpop.f32.mrb[198].mxu0  ;;  %v2802_v40 = vpop.f32.mrb[198].mxu1 }
 0x277   : > { %v2018_v41 = vadd.f32 %v7203_v18, %v2017_v39  ;;  %v4828_v42 = vpop.f32.mrb[199].mxu0  ;;  %4986 = vmatmul.mubr.msk.f32.gmra.mrb[48].mxu0 %vm516_vm1, %v344_v37  ;;  %v2803_v43 = vadd.f32 %v7203_v18, %v2802_v40  ;;  %v5299_v44 = vpop.f32.mrb[199].mxu1  ;;  %5457 = vmatmul.mubr.msk.f32.gmra.mrb[48].mxu1 %vm516_vm1, %v501_v38 }
 0x278   : > { %4988 = vmatprep.mubr.msk.f32.mxu0 %vm5662_vm0, %v5663_v6  ;;  %5459 = vmatprep.mubr.msk.f32.mxu1 %vm5662_vm0, %v5663_v6 }
 0x279   : > { %3186 = vst.msk [vmem:[%s6181_s12 + $0x318] sm:$0xff] %vm3086_vm2, %v2018_v41  ;;  %3343 = vst.msk [vmem:[%s6181_s12 + $0x800] sm:$0xff] %vm3086_vm2, %v2803_v43 }
 0x27a   : > { %v2022_v47 = vpop.f32.mrb[200].mxu0  ;;  %v2807_v48 = vpop.f32.mrb[200].mxu1 }
 0x27b   : > { %v2023_v49 = vadd.f32 %v7203_v18, %v2022_v47  ;;  %v4831_v50 = vpop.f32.mrb[201].mxu0  ;;  %4989 = vmatmul.mubr.msk.f32.gmra.mrb[50].mxu0 %vm516_vm1, %v345_v45  ;;  %v2808_v52 = vadd.f32 %v7203_v18, %v2807_v48  ;;  %v5302_v53 = vpop.f32.mrb[201].mxu1  ;;  %5460 = vmatmul.mubr.msk.f32.gmra.mrb[50].mxu1 %vm516_vm1, %v502_v46 }
 0x27c   : > { %4991 = vmatprep.mubr.msk.f32.mxu0 %vm5662_vm0, %v5663_v6  ;;  %5462 = vmatprep.mubr.msk.f32.mxu1 %vm5662_vm0, %v5663_v6 }
 0x27d   : > { %3187 = vst.msk [vmem:[%s6181_s12 + $0x320] sm:$0xff] %vm3086_vm2, %v2023_v49  ;;  %3344 = vst.msk [vmem:[%s6181_s12 + $0x808] sm:$0xff] %vm3086_vm2, %v2808_v52 }
 0x27e   : > { %v2027_v56 = vpop.f32.mrb[202].mxu0  ;;  %v2812_v57 = vpop.f32.mrb[202].mxu1 }
 0x27f   : > { %v2028_v58 = vadd.f32 %v7203_v18, %v2027_v56  ;;  %v4834_v59 = vpop.f32.mrb[203].mxu0  ;;  %4992 = vmatmul.mubr.msk.f32.gmra.mrb[52].mxu0 %vm516_vm1, %v346_v54  ;;  %v2813_v60 = vadd.f32 %v7203_v18, %v2812_v57  ;;  %v5305_v61 = vpop.f32.mrb[203].mxu1  ;;  %5463 = vmatmul.mubr.msk.f32.gmra.mrb[52].mxu1 %vm516_vm1, %v503_v55 }
 0x280   : > { %4994 = vmatprep.mubr.msk.f32.mxu0 %vm5662_vm0, %v5663_v6  ;;  %5465 = vmatprep.mubr.msk.f32.mxu1 %vm5662_vm0, %v5663_v6 }
 0x281   : > { %3188 = vst.msk [vmem:[%s6181_s12 + $0x328] sm:$0xff] %vm3086_vm2, %v2028_v58  ;;  %3345 = vst.msk [vmem:[%s6181_s12 + $0x810] sm:$0xff] %vm3086_vm2, %v2813_v60 }
 0x282   : > { %v2032_v0 = vpop.f32.mrb[204].mxu0  ;;  %v2817_v1 = vpop.f32.mrb[204].mxu1 }
 0x283   : > { %v2033_v2 = vadd.f32 %v7203_v18, %v2032_v0  ;;  %v4837_v3 = vpop.f32.mrb[205].mxu0  ;;  %4995 = vmatmul.mubr.msk.f32.gmra.mrb[54].mxu0 %vm516_vm1, %v347_v62  ;;  %v2818_v4 = vadd.f32 %v7203_v18, %v2817_v1  ;;  %v5308_v5 = vpop.f32.mrb[205].mxu1  ;;  %5466 = vmatmul.mubr.msk.f32.gmra.mrb[54].mxu1 %vm516_vm1, %v504_v63 }
 0x284   : > { %4997 = vmatprep.mubr.msk.f32.mxu0 %vm5662_vm0, %v5663_v6 }
 0x285   : > { %3189 = vst.msk [vmem:[%s6181_s12 + $0x330] sm:$0xff] %vm3086_vm2, %v2033_v2  ;;  %3346 = vst.msk [vmem:[%s6181_s12 + $0x818] sm:$0xff] %vm3086_vm2, %v2818_v4 }
 0x286   : > { %v2037_v8 = vpop.f32.mrb[206].mxu0  ;;  %v2822_v9 = vpop.f32.mrb[206].mxu1 }
 0x287   : > { %v2038_v10 = vadd.f32 %v7203_v18, %v2037_v8  ;;  %v4840_v11 = vpop.f32.mrb[207].mxu0  ;;  %4998 = vmatmul.mubr.msk.f32.gmra.mrb[56].mxu0 %vm516_vm1, %v348_v7  ;;  %v2823_v12 = vadd.f32 %v7203_v18, %v2822_v9  ;;  %v5311_v13 = vpop.f32.mrb[207].mxu1 }
 0x289   : > { %3190 = vst.msk [vmem:[%s6181_s12 + $0x338] sm:$0xff] %vm3086_vm2, %v2038_v10  ;;  %3347 = vst.msk [vmem:[%s6181_s12 + $0x820] sm:$0xff] %vm3086_vm2, %v2823_v12 }
 0x28a   : > { %v2042_v6 = vpop.f32.mrb[208].mxu0  ;;  %v2827_v14 = vpop.f32.mrb[208].mxu1 }
 0x28b   : > { %v2043_v15 = vadd.f32 %v7203_v18, %v2042_v6  ;;  %v4843_v16 = vpop.f32.mrb[209].mxu0  ;;  %v2828_v32 = vadd.f32 %v7203_v18, %v2827_v14  ;;  %v5314_v17 = vpop.f32.mrb[209].mxu1 }
 0x28c   : > { %v7698_v17 = vld [vmem:[%s8157_s2] ss:$0 sm:$0xff] }
 0x28d   : > { %3191 = vst.msk [vmem:[%s6181_s12 + $0x340] sm:$0xff] %vm3086_vm2, %v2043_v15  ;;  %3348 = vst.msk [vmem:[%s6181_s12 + $0x828] sm:$0xff] %vm3086_vm2, %v2828_v32 }
 0x28e   : > { %v2047_v19 = vpop.f32.mrb[210].mxu0  ;;  %v2832_v20 = vpop.f32.mrb[210].mxu1 }
 0x28f   : > { %v2048_v21 = vadd.f32 %v7203_v18, %v2047_v19  ;;  %v4846_v22 = vpop.f32.mrb[211].mxu0  ;;  %v2833_v23 = vadd.f32 %v7203_v18, %v2832_v20  ;;  %v5317_v24 = vpop.f32.mrb[211].mxu1 }
 0x291   : > { %3192 = vst.msk [vmem:[%s6181_s12 + $0x348] sm:$0xff] %vm3086_vm2, %v2048_v21  ;;  %3349 = vst.msk [vmem:[%s6181_s12 + $0x830] sm:$0xff] %vm3086_vm2, %v2833_v23 }
 0x292   : > { %v2052_v25 = vpop.f32.mrb[212].mxu0  ;;  %v2837_v26 = vpop.f32.mrb[212].mxu1 }
 0x293   : > { %v2053_v27 = vadd.f32 %v7203_v18, %v2052_v25  ;;  %v4849_v28 = vpop.f32.mrb[213].mxu0  ;;  %v2838_v29 = vadd.f32 %v7203_v18, %v2837_v26  ;;  %v5320_v30 = vpop.f32.mrb[213].mxu1 }
 0x295   : > { %3193 = vst.msk [vmem:[%s6181_s12 + $0x350] sm:$0xff] %vm3086_vm2, %v2053_v27  ;;  %3350 = vst.msk [vmem:[%s6181_s12 + $0x838] sm:$0xff] %vm3086_vm2, %v2838_v29 }
 0x296   : > { %v2057_v51 = vpop.f32.mrb[214].mxu0  ;;  %v2842_v31 = vpop.f32.mrb[214].mxu1 }
 0x297   : > { %v2058_v33 = vadd.f32 %v7203_v18, %v2057_v51  ;;  %v4852_v34 = vpop.f32.mrb[215].mxu0  ;;  %v2843_v35 = vadd.f32 %v7203_v18, %v2842_v31  ;;  %v5323_v36 = vpop.f32.mrb[215].mxu1 }
 0x299   : > { %3194 = vst.msk [vmem:[%s6181_s12 + $0x358] sm:$0xff] %vm3086_vm2, %v2058_v33  ;;  %3351 = vst.msk [vmem:[%s6181_s12 + $0x840] sm:$0xff] %vm3086_vm2, %v2843_v35 }
 0x29a   : > { %v2062_v37 = vpop.f32.mrb[216].mxu0  ;;  %v2847_v38 = vpop.f32.mrb[216].mxu1 }
 0x29b   : > { %v2063_v39 = vadd.f32 %v7203_v18, %v2062_v37  ;;  %v4855_v40 = vpop.f32.mrb[217].mxu0  ;;  %v2848_v41 = vadd.f32 %v7203_v18, %v2847_v38  ;;  %v5326_v42 = vpop.f32.mrb[217].mxu1 }
 0x29d   : > { %3195 = vst.msk [vmem:[%s6181_s12 + $0x360] sm:$0xff] %vm3086_vm2, %v2063_v39  ;;  %3352 = vst.msk [vmem:[%s6181_s12 + $0x848] sm:$0xff] %vm3086_vm2, %v2848_v41 }
 0x29e   : > { %v2067_v43 = vpop.f32.mrb[218].mxu0  ;;  %v2852_v44 = vpop.f32.mrb[218].mxu1 }
 0x29f   : > { %v2068_v45 = vadd.f32 %v7203_v18, %v2067_v43  ;;  %v4858_v46 = vpop.f32.mrb[219].mxu0  ;;  %v2853_v47 = vadd.f32 %v7203_v18, %v2852_v44  ;;  %v5329_v48 = vpop.f32.mrb[219].mxu1 }
 0x2a1   : > { %3196 = vst.msk [vmem:[%s6181_s12 + $0x368] sm:$0xff] %vm3086_vm2, %v2068_v45  ;;  %3353 = vst.msk [vmem:[%s6181_s12 + $0x850] sm:$0xff] %vm3086_vm2, %v2853_v47 }
 0x2a2   : > { %v2072_v49 = vpop.f32.mrb[220].mxu0  ;;  %v2857_v50 = vpop.f32.mrb[220].mxu1 }
 0x2a3   : > { %v2073_v52 = vadd.f32 %v7203_v18, %v2072_v49  ;;  %v4861_v53 = vpop.f32.mrb[221].mxu0  ;;  %v2858_v54 = vadd.f32 %v7203_v18, %v2857_v50  ;;  %v5332_v55 = vpop.f32.mrb[221].mxu1 }
 0x2a5   : > { %3197 = vst.msk [vmem:[%s6181_s12 + $0x370] sm:$0xff] %vm3086_vm2, %v2073_v52  ;;  %3354 = vst.msk [vmem:[%s6181_s12 + $0x858] sm:$0xff] %vm3086_vm2, %v2858_v54 }
 0x2a6   : > { %v2077_v56 = vpop.f32.mrb[222].mxu0  ;;  %v2862_v57 = vpop.f32.mrb[222].mxu1 }
 0x2a7   : > { %v2078_v58 = vadd.f32 %v7203_v18, %v2077_v56  ;;  %v4864_v59 = vpop.f32.mrb[223].mxu0  ;;  %v2863_v60 = vadd.f32 %v7203_v18, %v2862_v57  ;;  %v5335_v61 = vpop.f32.mrb[223].mxu1 }
 0x2a9   : > { %3198 = vst.msk [vmem:[%s6181_s12 + $0x378] sm:$0xff] %vm3086_vm2, %v2078_v58  ;;  %3355 = vst.msk [vmem:[%s6181_s12 + $0x860] sm:$0xff] %vm3086_vm2, %v2863_v60 }
 0x2aa   : > { %v2082_v62 = vpop.f32.mrb[224].mxu0  ;;  %v2867_v63 = vpop.f32.mrb[224].mxu1 }
 0x2ab   : > { %v2083_v0 = vadd.f32 %v7203_v18, %v2082_v62  ;;  %v4867_v1 = vpop.f32.mrb[225].mxu0  ;;  %v2868_v2 = vadd.f32 %v7203_v18, %v2867_v63  ;;  %v5338_v3 = vpop.f32.mrb[225].mxu1 }
 0x2ad   : > { %3199 = vst.msk [vmem:[%s6181_s12 + $0x380] sm:$0xff] %vm3086_vm2, %v2083_v0  ;;  %3356 = vst.msk [vmem:[%s6181_s12 + $0x868] sm:$0xff] %vm3086_vm2, %v2868_v2 }
 0x2ae   : > { %v2087_v4 = vpop.f32.mrb[226].mxu0  ;;  %v2872_v5 = vpop.f32.mrb[226].mxu1 }
 0x2af   : > { %v2088_v7 = vadd.f32 %v7203_v18, %v2087_v4  ;;  %v4870_v8 = vpop.f32.mrb[227].mxu0  ;;  %v2873_v9 = vadd.f32 %v7203_v18, %v2872_v5  ;;  %v5341_v10 = vpop.f32.mrb[227].mxu1 }
 0x2b1   : > { %3200 = vst.msk [vmem:[%s6181_s12 + $0x388] sm:$0xff] %vm3086_vm2, %v2088_v7  ;;  %3357 = vst.msk [vmem:[%s6181_s12 + $0x870] sm:$0xff] %vm3086_vm2, %v2873_v9 }
 0x2b2   : > { %v2092_v11 = vpop.f32.mrb[228].mxu0  ;;  %v2877_v12 = vpop.f32.mrb[228].mxu1 }
 0x2b3   : > { %v2093_v13 = vadd.f32 %v7203_v18, %v2092_v11  ;;  %v4873_v6 = vpop.f32.mrb[229].mxu0  ;;  %v2878_v14 = vadd.f32 %v7203_v18, %v2877_v12  ;;  %v5344_v15 = vpop.f32.mrb[229].mxu1 }
 0x2b5   : > { %3201 = vst.msk [vmem:[%s6181_s12 + $0x390] sm:$0xff] %vm3086_vm2, %v2093_v13  ;;  %3358 = vst.msk [vmem:[%s6181_s12 + $0x878] sm:$0xff] %vm3086_vm2, %v2878_v14 }
 0x2b6   : > { %v2097_v16 = vpop.f32.mrb[230].mxu0  ;;  %v2882_v32 = vpop.f32.mrb[230].mxu1 }
 0x2b7   : > { %v2098_v19 = vadd.f32 %v7698_v17, %v2097_v16  ;;  %v4876_v20 = vpop.f32.mrb[231].mxu0  ;;  %v2883_v21 = vadd.f32 %v7698_v17, %v2882_v32  ;;  %v5347_v18 = vpop.f32.mrb[231].mxu1 }
 0x2b9   : > { %3202 = vst.msk [vmem:[%s6181_s12 + $0x398] sm:$0xff] %vm3086_vm2, %v2098_v19  ;;  %3359 = vst.msk [vmem:[%s6181_s12 + $0x880] sm:$0xff] %vm3086_vm2, %v2883_v21 }
 0x2ba   : > { %v2102_v22 = vpop.f32.mrb[232].mxu0  ;;  %v2887_v23 = vpop.f32.mrb[232].mxu1 }
 0x2bb   : > { %v2103_v24 = vadd.f32 %v7698_v17, %v2102_v22  ;;  %v4879_v25 = vpop.f32.mrb[233].mxu0  ;;  %v2888_v26 = vadd.f32 %v7698_v17, %v2887_v23  ;;  %v5350_v27 = vpop.f32.mrb[233].mxu1 }
 0x2bd   : > { %3203 = vst.msk [vmem:[%s6181_s12 + $0x3a0] sm:$0xff] %vm3086_vm2, %v2103_v24  ;;  %3360 = vst.msk [vmem:[%s6181_s12 + $0x888] sm:$0xff] %vm3086_vm2, %v2888_v26 }
 0x2be   : > { %v2107_v28 = vpop.f32.mrb[234].mxu0  ;;  %v2892_v29 = vpop.f32.mrb[234].mxu1 }
 0x2bf   : > { %v2108_v30 = vadd.f32 %v7698_v17, %v2107_v28  ;;  %v4882_v51 = vpop.f32.mrb[235].mxu0  ;;  %v2893_v31 = vadd.f32 %v7698_v17, %v2892_v29  ;;  %v5353_v33 = vpop.f32.mrb[235].mxu1 }
 0x2c1   : > { %3204 = vst.msk [vmem:[%s6181_s12 + $0x3a8] sm:$0xff] %vm3086_vm2, %v2108_v30  ;;  %3361 = vst.msk [vmem:[%s6181_s12 + $0x890] sm:$0xff] %vm3086_vm2, %v2893_v31 }
 0x2c2   : > { %v2112_v34 = vpop.f32.mrb[236].mxu0  ;;  %v2897_v35 = vpop.f32.mrb[236].mxu1 }
 0x2c3   : > { %v2113_v36 = vadd.f32 %v7698_v17, %v2112_v34  ;;  %v4885_v37 = vpop.f32.mrb[237].mxu0  ;;  %v2898_v38 = vadd.f32 %v7698_v17, %v2897_v35  ;;  %v5356_v39 = vpop.f32.mrb[237].mxu1 }
 0x2c5   : > { %3205 = vst.msk [vmem:[%s6181_s12 + $0x3b0] sm:$0xff] %vm3086_vm2, %v2113_v36  ;;  %3362 = vst.msk [vmem:[%s6181_s12 + $0x898] sm:$0xff] %vm3086_vm2, %v2898_v38 }
 0x2c6   : > { %v2117_v40 = vpop.f32.mrb[238].mxu0  ;;  %v2902_v41 = vpop.f32.mrb[238].mxu1 }
 0x2c7   : > { %v2118_v42 = vadd.f32 %v7698_v17, %v2117_v40  ;;  %v4888_v43 = vpop.f32.mrb[239].mxu0  ;;  %v2903_v44 = vadd.f32 %v7698_v17, %v2902_v41  ;;  %v5359_v45 = vpop.f32.mrb[239].mxu1 }
 0x2c9   : > { %3206 = vst.msk [vmem:[%s6181_s12 + $0x3b8] sm:$0xff] %vm3086_vm2, %v2118_v42  ;;  %3363 = vst.msk [vmem:[%s6181_s12 + $0x8a0] sm:$0xff] %vm3086_vm2, %v2903_v44 }
 0x2ca   : > { %v2122_v46 = vpop.f32.mrb[240].mxu0  ;;  %v2907_v47 = vpop.f32.mrb[240].mxu1 }
 0x2cb   : > { %v2123_v48 = vadd.f32 %v7698_v17, %v2122_v46  ;;  %v4891_v49 = vpop.f32.mrb[241].mxu0  ;;  %v2908_v50 = vadd.f32 %v7698_v17, %v2907_v47  ;;  %v5362_v52 = vpop.f32.mrb[241].mxu1 }
 0x2cd   : > { %3207 = vst.msk [vmem:[%s6181_s12 + $0x3c0] sm:$0xff] %vm3086_vm2, %v2123_v48  ;;  %3364 = vst.msk [vmem:[%s6181_s12 + $0x8a8] sm:$0xff] %vm3086_vm2, %v2908_v50 }
 0x2ce   : > { %v2127_v53 = vpop.f32.mrb[242].mxu0  ;;  %v2912_v54 = vpop.f32.mrb[242].mxu1 }
 0x2cf   : > { %v2128_v55 = vadd.f32 %v7698_v17, %v2127_v53  ;;  %v4894_v56 = vpop.f32.mrb[243].mxu0  ;;  %v2913_v57 = vadd.f32 %v7698_v17, %v2912_v54  ;;  %v5365_v58 = vpop.f32.mrb[243].mxu1 }
 0x2d1   : > { %3208 = vst.msk [vmem:[%s6181_s12 + $0x3c8] sm:$0xff] %vm3086_vm2, %v2128_v55  ;;  %3365 = vst.msk [vmem:[%s6181_s12 + $0x8b0] sm:$0xff] %vm3086_vm2, %v2913_v57 }
 0x2d2   : > { %v2132_v59 = vpop.f32.mrb[244].mxu0  ;;  %v2917_v60 = vpop.f32.mrb[244].mxu1 }
 0x2d3   : > { %v2133_v61 = vadd.f32 %v7698_v17, %v2132_v59  ;;  %v4897_v62 = vpop.f32.mrb[245].mxu0  ;;  %v2918_v63 = vadd.f32 %v7698_v17, %v2917_v60  ;;  %v5368_v0 = vpop.f32.mrb[245].mxu1 }
 0x2d5   : > { %3209 = vst.msk [vmem:[%s6181_s12 + $0x3d0] sm:$0xff] %vm3086_vm2, %v2133_v61  ;;  %3366 = vst.msk [vmem:[%s6181_s12 + $0x8b8] sm:$0xff] %vm3086_vm2, %v2918_v63 }
 0x2d6   : > { %v2137_v1 = vpop.f32.mrb[246].mxu0  ;;  %v2922_v2 = vpop.f32.mrb[246].mxu1 }
 0x2d7   : > { %v2138_v3 = vadd.f32 %v7698_v17, %v2137_v1  ;;  %v4900_v4 = vpop.f32.mrb[247].mxu0  ;;  %v2923_v5 = vadd.f32 %v7698_v17, %v2922_v2  ;;  %v5371_v7 = vpop.f32.mrb[247].mxu1 }
 0x2d9   : > { %3210 = vst.msk [vmem:[%s6181_s12 + $0x3d8] sm:$0xff] %vm3086_vm2, %v2138_v3  ;;  %3367 = vst.msk [vmem:[%s6181_s12 + $0x8c0] sm:$0xff] %vm3086_vm2, %v2923_v5 }
 0x2da   : > { %v2142_v8 = vpop.f32.mrb[248].mxu0  ;;  %v2927_v9 = vpop.f32.mrb[248].mxu1 }
 0x2db   : > { %v2143_v10 = vadd.f32 %v7698_v17, %v2142_v8  ;;  %v4903_v11 = vpop.f32.mrb[249].mxu0  ;;  %v2928_v12 = vadd.f32 %v7698_v17, %v2927_v9  ;;  %v5374_v13 = vpop.f32.mrb[249].mxu1 }
 0x2dd   : > { %3211 = vst.msk [vmem:[%s6181_s12 + $0x3e0] sm:$0xff] %vm3086_vm2, %v2143_v10  ;;  %3368 = vst.msk [vmem:[%s6181_s12 + $0x8c8] sm:$0xff] %vm3086_vm2, %v2928_v12 }
 0x2de   : > { %v2147_v6 = vpop.f32.mrb[250].mxu0  ;;  %v2932_v14 = vpop.f32.mrb[250].mxu1 }
 0x2df   : > { %v2148_v15 = vadd.f32 %v7698_v17, %v2147_v6  ;;  %v4906_v16 = vpop.f32.mrb[251].mxu0  ;;  %v2933_v32 = vadd.f32 %v7698_v17, %v2932_v14  ;;  %v5377_v19 = vpop.f32.mrb[251].mxu1 }
 0x2e1   : > { %3212 = vst.msk [vmem:[%s6181_s12 + $0x3e8] sm:$0xff] %vm3086_vm2, %v2148_v15  ;;  %3369 = vst.msk [vmem:[%s6181_s12 + $0x8d0] sm:$0xff] %vm3086_vm2, %v2933_v32 }
 0x2e2   : > { %v2152_v20 = vpop.f32.mrb[252].mxu0  ;;  %v2937_v21 = vpop.f32.mrb[252].mxu1 }
 0x2e3   : > { %v2153_v18 = vadd.f32 %v7698_v17, %v2152_v20  ;;  %v4909_v22 = vpop.f32.mrb[253].mxu0  ;;  %v2938_v23 = vadd.f32 %v7698_v17, %v2937_v21  ;;  %v5380_v24 = vpop.f32.mrb[253].mxu1 }
 0x2e5   : > { %3213 = vst.msk [vmem:[%s6181_s12 + $0x3f0] sm:$0xff] %vm3086_vm2, %v2153_v18  ;;  %3370 = vst.msk [vmem:[%s6181_s12 + $0x8d8] sm:$0xff] %vm3086_vm2, %v2938_v23 }
 0x2e6   : > { %v2157_v25 = vpop.f32.mrb[254].mxu0  ;;  %v2942_v26 = vpop.f32.mrb[254].mxu1 }
 0x2e7   : > { %v2158_v27 = vadd.f32 %v7698_v17, %v2157_v25  ;;  %v4912_v28 = vpop.f32.mrb[255].mxu0  ;;  %v2943_v29 = vadd.f32 %v7698_v17, %v2942_v26  ;;  %v5383_v30 = vpop.f32.mrb[255].mxu1 }
 0x2e9   : > { %3214 = vst.msk [vmem:[%s6181_s12 + $0x3f8] sm:$0xff] %vm3086_vm2, %v2158_v27  ;;  %3371 = vst.msk [vmem:[%s6181_s12 + $0x8e0] sm:$0xff] %vm3086_vm2, %v2943_v29 }
 0x2ea   : > { %v2162_v51 = vpop.f32.mrb[0].mxu0  ;;  %v2947_v31 = vpop.f32.mrb[0].mxu1 }
 0x2eb   : > { %v2163_v33 = vadd.f32 %v7698_v17, %v2162_v51  ;;  %v4915_v34 = vpop.f32.mrb[1].mxu0  ;;  %v2948_v35 = vadd.f32 %v7698_v17, %v2947_v31  ;;  %v5386_v36 = vpop.f32.mrb[1].mxu1 }
 0x2ed   : > { %3215 = vst.msk [vmem:[%s6181_s12 + $0x400] sm:$0xff] %vm3086_vm2, %v2163_v33  ;;  %3372 = vst.msk [vmem:[%s6181_s12 + $0x8e8] sm:$0xff] %vm3086_vm2, %v2948_v35 }
 0x2ee   : > { %v2167_v37 = vpop.f32.mrb[2].mxu0  ;;  %v2952_v38 = vpop.f32.mrb[2].mxu1 }
 0x2ef   : > { %v2168_v39 = vadd.f32 %v7698_v17, %v2167_v37  ;;  %v4918_v40 = vpop.f32.mrb[3].mxu0  ;;  %v2953_v41 = vadd.f32 %v7698_v17, %v2952_v38  ;;  %v5389_v42 = vpop.f32.mrb[3].mxu1 }
 0x2f1   : > { %3216 = vst.msk [vmem:[%s6181_s12 + $0x408] sm:$0xff] %vm3086_vm2, %v2168_v39  ;;  %3373 = vst.msk [vmem:[%s6181_s12 + $0x8f0] sm:$0xff] %vm3086_vm2, %v2953_v41 }
 0x2f2   : > { %v2172_v43 = vpop.f32.mrb[4].mxu0  ;;  %v2957_v44 = vpop.f32.mrb[4].mxu1 }
 0x2f3   : > { %v2173_v45 = vadd.f32 %v7698_v17, %v2172_v43  ;;  %v4921_v46 = vpop.f32.mrb[5].mxu0  ;;  %v2958_v47 = vadd.f32 %v7698_v17, %v2957_v44  ;;  %v5392_v48 = vpop.f32.mrb[5].mxu1 }
 0x2f5   : > { %3217 = vst.msk [vmem:[%s6181_s12 + $0x410] sm:$0xff] %vm3086_vm2, %v2173_v45  ;;  %3374 = vst.msk [vmem:[%s6181_s12 + $0x8f8] sm:$0xff] %vm3086_vm2, %v2958_v47 }
 0x2f6   : > { %v2177_v49 = vpop.f32.mrb[6].mxu0  ;;  %v2962_v50 = vpop.f32.mrb[6].mxu1 }
 0x2f7   : > { %v2178_v52 = vadd.f32 %v7698_v17, %v2177_v49  ;;  %v4924_v53 = vpop.f32.mrb[7].mxu0  ;;  %v2963_v54 = vadd.f32 %v7698_v17, %v2962_v50  ;;  %v5395_v55 = vpop.f32.mrb[7].mxu1 }
 0x2f9   : > { %3218 = vst.msk [vmem:[%s6181_s12 + $0x418] sm:$0xff] %vm3086_vm2, %v2178_v52  ;;  %3375 = vst.msk [vmem:[%s6181_s12 + $0x900] sm:$0xff] %vm3086_vm2, %v2963_v54 }
 0x2fa   : > { %v2182_v56 = vpop.f32.mrb[8].mxu0  ;;  %v2967_v57 = vpop.f32.mrb[8].mxu1 }
 0x2fb   : > { %v2183_v58 = vadd.f32 %v7698_v17, %v2182_v56  ;;  %v4927_v59 = vpop.f32.mrb[9].mxu0  ;;  %v2968_v60 = vadd.f32 %v7698_v17, %v2967_v57  ;;  %v5398_v61 = vpop.f32.mrb[9].mxu1 }
 0x2fd   : > { %3219 = vst.msk [vmem:[%s6181_s12 + $0x420] sm:$0xff] %vm3086_vm2, %v2183_v58  ;;  %3376 = vst.msk [vmem:[%s6181_s12 + $0x908] sm:$0xff] %vm3086_vm2, %v2968_v60 }
 0x2fe   : > { %v2187_v62 = vpop.f32.mrb[10].mxu0  ;;  %v2972_v63 = vpop.f32.mrb[10].mxu1 }
 0x2ff   : > { %v2188_v0 = vadd.f32 %v7698_v17, %v2187_v62  ;;  %v4930_v1 = vpop.f32.mrb[11].mxu0  ;;  %v2973_v2 = vadd.f32 %v7698_v17, %v2972_v63  ;;  %v5401_v3 = vpop.f32.mrb[11].mxu1 }
 0x301   : > { %3220 = vst.msk [vmem:[%s6181_s12 + $0x428] sm:$0xff] %vm3086_vm2, %v2188_v0  ;;  %3377 = vst.msk [vmem:[%s6181_s12 + $0x910] sm:$0xff] %vm3086_vm2, %v2973_v2 }
 0x302   : > { %v2192_v4 = vpop.f32.mrb[12].mxu0  ;;  %v2977_v5 = vpop.f32.mrb[12].mxu1 }
 0x303   : > { %v2193_v7 = vadd.f32 %v7698_v17, %v2192_v4  ;;  %v4933_v8 = vpop.f32.mrb[13].mxu0  ;;  %v2978_v9 = vadd.f32 %v7698_v17, %v2977_v5  ;;  %v5404_v10 = vpop.f32.mrb[13].mxu1 }
 0x305   : > { %3221 = vst.msk [vmem:[%s6181_s12 + $0x430] sm:$0xff] %vm3086_vm2, %v2193_v7  ;;  %3378 = vst.msk [vmem:[%s6181_s12 + $0x918] sm:$0xff] %vm3086_vm2, %v2978_v9 }
 0x306   : > { %v2197_v11 = vpop.f32.mrb[14].mxu0  ;;  %v2982_v12 = vpop.f32.mrb[14].mxu1 }
 0x307   : > { %v2198_v13 = vadd.f32 %v7698_v17, %v2197_v11  ;;  %v4936_v6 = vpop.f32.mrb[15].mxu0  ;;  %v2983_v14 = vadd.f32 %v7698_v17, %v2982_v12  ;;  %v5407_v15 = vpop.f32.mrb[15].mxu1 }
 0x309   : > { %3222 = vst.msk [vmem:[%s6181_s12 + $0x438] sm:$0xff] %vm3086_vm2, %v2198_v13  ;;  %3379 = vst.msk [vmem:[%s6181_s12 + $0x920] sm:$0xff] %vm3086_vm2, %v2983_v14 }
 0x30a   : > { %v2202_v16 = vpop.f32.mrb[16].mxu0  ;;  %v2987_v32 = vpop.f32.mrb[16].mxu1 }
 0x30b   : > { %v2203_v19 = vadd.f32 %v7698_v17, %v2202_v16  ;;  %v4939_v20 = vpop.f32.mrb[17].mxu0  ;;  %v2988_v21 = vadd.f32 %v7698_v17, %v2987_v32  ;;  %v5410_v18 = vpop.f32.mrb[17].mxu1 }
 0x30d   : > { %3223 = vst.msk [vmem:[%s6181_s12 + $0x440] sm:$0xff] %vm3086_vm2, %v2203_v19  ;;  %3380 = vst.msk [vmem:[%s6181_s12 + $0x928] sm:$0xff] %vm3086_vm2, %v2988_v21 }
 0x30e   : > { %v2207_v22 = vpop.f32.mrb[18].mxu0  ;;  %v2992_v23 = vpop.f32.mrb[18].mxu1 }
 0x30f   : > { %v2208_v24 = vadd.f32 %v7698_v17, %v2207_v22  ;;  %v4942_v25 = vpop.f32.mrb[19].mxu0  ;;  %v2993_v26 = vadd.f32 %v7698_v17, %v2992_v23  ;;  %v5413_v27 = vpop.f32.mrb[19].mxu1 }
 0x311   : > { %3224 = vst.msk [vmem:[%s6181_s12 + $0x448] sm:$0xff] %vm3086_vm2, %v2208_v24  ;;  %3381 = vst.msk [vmem:[%s6181_s12 + $0x930] sm:$0xff] %vm3086_vm2, %v2993_v26 }
 0x312   : > { %v2212_v28 = vpop.f32.mrb[20].mxu0  ;;  %v2997_v29 = vpop.f32.mrb[20].mxu1 }
 0x313   : > { %v2213_v30 = vadd.f32 %v7698_v17, %v2212_v28  ;;  %v4945_v51 = vpop.f32.mrb[21].mxu0  ;;  %v2998_v31 = vadd.f32 %v7698_v17, %v2997_v29  ;;  %v5416_v33 = vpop.f32.mrb[21].mxu1 }
 0x315   : > { %3225 = vst.msk [vmem:[%s6181_s12 + $0x450] sm:$0xff] %vm3086_vm2, %v2213_v30  ;;  %3382 = vst.msk [vmem:[%s6181_s12 + $0x938] sm:$0xff] %vm3086_vm2, %v2998_v31 }
 0x316   : > { %v2217_v34 = vpop.f32.mrb[22].mxu0  ;;  %v3002_v35 = vpop.f32.mrb[22].mxu1 }
 0x317   : > { %v2218_v36 = vadd.f32 %v7698_v17, %v2217_v34  ;;  %v4948_v37 = vpop.f32.mrb[23].mxu0  ;;  %v3003_v38 = vadd.f32 %v7698_v17, %v3002_v35  ;;  %v5419_v39 = vpop.f32.mrb[23].mxu1 }
 0x319   : > { %3226 = vst.msk [vmem:[%s6181_s12 + $0x458] sm:$0xff] %vm3086_vm2, %v2218_v36  ;;  %3383 = vst.msk [vmem:[%s6181_s12 + $0x940] sm:$0xff] %vm3086_vm2, %v3003_v38 }
 0x31a   : > { %v2222_v40 = vpop.f32.mrb[24].mxu0  ;;  %v3007_v41 = vpop.f32.mrb[24].mxu1 }
 0x31b   : > { %v2223_v42 = vadd.f32 %v7698_v17, %v2222_v40  ;;  %v4951_v43 = vpop.f32.mrb[25].mxu0  ;;  %v3008_v44 = vadd.f32 %v7698_v17, %v3007_v41  ;;  %v5422_v45 = vpop.f32.mrb[25].mxu1 }
 0x31d   : > { %3227 = vst.msk [vmem:[%s6181_s12 + $0x460] sm:$0xff] %vm3086_vm2, %v2223_v42  ;;  %3384 = vst.msk [vmem:[%s6181_s12 + $0x948] sm:$0xff] %vm3086_vm2, %v3008_v44 }
 0x31e   : > { %v2227_v46 = vpop.f32.mrb[26].mxu0  ;;  %v3012_v47 = vpop.f32.mrb[26].mxu1 }
 0x31f   : > { %v2228_v48 = vadd.f32 %v7698_v17, %v2227_v46  ;;  %v4954_v49 = vpop.f32.mrb[27].mxu0  ;;  %v3013_v50 = vadd.f32 %v7698_v17, %v3012_v47  ;;  %v5425_v52 = vpop.f32.mrb[27].mxu1 }
 0x321   : > { %3228 = vst.msk [vmem:[%s6181_s12 + $0x468] sm:$0xff] %vm3086_vm2, %v2228_v48  ;;  %3385 = vst.msk [vmem:[%s6181_s12 + $0x950] sm:$0xff] %vm3086_vm2, %v3013_v50 }
 0x322   : > { %v2232_v53 = vpop.f32.mrb[28].mxu0  ;;  %v3017_v54 = vpop.f32.mrb[28].mxu1 }
 0x323   : > { %v2233_v55 = vadd.f32 %v7698_v17, %v2232_v53  ;;  %v4957_v56 = vpop.f32.mrb[29].mxu0  ;;  %v3018_v57 = vadd.f32 %v7698_v17, %v3017_v54  ;;  %v5428_v58 = vpop.f32.mrb[29].mxu1 }
 0x325   : > { %3229 = vst.msk [vmem:[%s6181_s12 + $0x470] sm:$0xff] %vm3086_vm2, %v2233_v55  ;;  %3386 = vst.msk [vmem:[%s6181_s12 + $0x958] sm:$0xff] %vm3086_vm2, %v3018_v57 }
 0x326   : > { %v2237_v59 = vpop.f32.mrb[30].mxu0  ;;  %v3022_v60 = vpop.f32.mrb[30].mxu1 }
 0x327   : > { %v2238_v61 = vadd.f32 %v7698_v17, %v2237_v59  ;;  %v4960_v62 = vpop.f32.mrb[31].mxu0  ;;  %v3023_v63 = vadd.f32 %v7698_v17, %v3022_v60  ;;  %v5431_v0 = vpop.f32.mrb[31].mxu1 }
 0x329   : > { %3230 = vst.msk [vmem:[%s6181_s12 + $0x478] sm:$0xff] %vm3086_vm2, %v2238_v61  ;;  %3387 = vst.msk [vmem:[%s6181_s12 + $0x960] sm:$0xff] %vm3086_vm2, %v3023_v63 }
 0x32a   : > { %v2242_v1 = vpop.f32.mrb[32].mxu0  ;;  %v3027_v2 = vpop.f32.mrb[32].mxu1 }
 0x32b   : > { %v2243_v3 = vadd.f32 %v7698_v17, %v2242_v1  ;;  %v4963_v4 = vpop.f32.mrb[33].mxu0  ;;  %v3028_v5 = vadd.f32 %v7698_v17, %v3027_v2  ;;  %v5434_v7 = vpop.f32.mrb[33].mxu1 }
 0x32d   : > { %3231 = vst.msk [vmem:[%s6181_s12 + $0x480] sm:$0xff] %vm3086_vm2, %v2243_v3  ;;  %3388 = vst.msk [vmem:[%s6181_s12 + $0x968] sm:$0xff] %vm3086_vm2, %v3028_v5 }
 0x32e   : > { %v2247_v8 = vpop.f32.mrb[34].mxu0  ;;  %v3032_v9 = vpop.f32.mrb[34].mxu1 }
 0x32f   : > { %v2248_v10 = vadd.f32 %v7698_v17, %v2247_v8  ;;  %v4966_v11 = vpop.f32.mrb[35].mxu0  ;;  %v3033_v12 = vadd.f32 %v7698_v17, %v3032_v9  ;;  %v5437_v13 = vpop.f32.mrb[35].mxu1 }
 0x331   : > { %3232 = vst.msk [vmem:[%s6181_s12 + $0x488] sm:$0xff] %vm3086_vm2, %v2248_v10  ;;  %3389 = vst.msk [vmem:[%s6181_s12 + $0x970] sm:$0xff] %vm3086_vm2, %v3033_v12 }
 0x332   : > { %v2252_v6 = vpop.f32.mrb[36].mxu0  ;;  %v3037_v14 = vpop.f32.mrb[36].mxu1 }
 0x333   : > { %v2253_v15 = vadd.f32 %v7698_v17, %v2252_v6  ;;  %v4969_v16 = vpop.f32.mrb[37].mxu0  ;;  %v3038_v32 = vadd.f32 %v7698_v17, %v3037_v14  ;;  %v5440_v19 = vpop.f32.mrb[37].mxu1 }
 0x335   : > { %3233 = vst.msk [vmem:[%s6181_s12 + $0x490] sm:$0xff] %vm3086_vm2, %v2253_v15  ;;  %3390 = vst.msk [vmem:[%s6181_s12 + $0x978] sm:$0xff] %vm3086_vm2, %v3038_v32 }
 0x336   : > { %v2257_v20 = vpop.f32.mrb[38].mxu0  ;;  %v3042_v21 = vpop.f32.mrb[38].mxu1 }
 0x337   : > { %v2258_v18 = vadd.f32 %v7698_v17, %v2257_v20  ;;  %v4972_v22 = vpop.f32.mrb[39].mxu0  ;;  %v3043_v23 = vadd.f32 %v7698_v17, %v3042_v21  ;;  %v5443_v24 = vpop.f32.mrb[39].mxu1 }
 0x339   : > { %3234 = vst.msk [vmem:[%s6181_s12 + $0x498] sm:$0xff] %vm3086_vm2, %v2258_v18  ;;  %3391 = vst.msk [vmem:[%s6181_s12 + $0x980] sm:$0xff] %vm3086_vm2, %v3043_v23 }
 0x33a   : > { %v2262_v25 = vpop.f32.mrb[40].mxu0  ;;  %v3047_v26 = vpop.f32.mrb[40].mxu1 }
 0x33b   : > { %v2263_v27 = vadd.f32 %v7698_v17, %v2262_v25  ;;  %v4975_v28 = vpop.f32.mrb[41].mxu0  ;;  %v3048_v29 = vadd.f32 %v7698_v17, %v3047_v26  ;;  %v5446_v30 = vpop.f32.mrb[41].mxu1 }
 0x33d   : > { %3235 = vst.msk [vmem:[%s6181_s12 + $0x4a0] sm:$0xff] %vm3086_vm2, %v2263_v27  ;;  %3392 = vst.msk [vmem:[%s6181_s12 + $0x988] sm:$0xff] %vm3086_vm2, %v3048_v29 }
 0x33e   : > { %v2267_v51 = vpop.f32.mrb[42].mxu0  ;;  %v3052_v31 = vpop.f32.mrb[42].mxu1 }
 0x33f   : > { %v2268_v33 = vadd.f32 %v7698_v17, %v2267_v51  ;;  %v4978_v34 = vpop.f32.mrb[43].mxu0  ;;  %v3053_v35 = vadd.f32 %v7698_v17, %v3052_v31  ;;  %v5449_v36 = vpop.f32.mrb[43].mxu1 }
 0x341   : > { %3236 = vst.msk [vmem:[%s6181_s12 + $0x4a8] sm:$0xff] %vm3086_vm2, %v2268_v33  ;;  %3393 = vst.msk [vmem:[%s6181_s12 + $0x990] sm:$0xff] %vm3086_vm2, %v3053_v35 }
 0x342   : > { %v2272_v37 = vpop.f32.mrb[44].mxu0  ;;  %v3057_v38 = vpop.f32.mrb[44].mxu1 }
 0x343   : > { %v2273_v39 = vadd.f32 %v7698_v17, %v2272_v37  ;;  %v4981_v40 = vpop.f32.mrb[45].mxu0  ;;  %v3058_v41 = vadd.f32 %v7698_v17, %v3057_v38  ;;  %v5452_v42 = vpop.f32.mrb[45].mxu1 }
 0x345   : > { %3237 = vst.msk [vmem:[%s6181_s12 + $0x4b0] sm:$0xff] %vm3086_vm2, %v2273_v39  ;;  %3394 = vst.msk [vmem:[%s6181_s12 + $0x998] sm:$0xff] %vm3086_vm2, %v3058_v41 }
 0x346   : > { %v2277_v43 = vpop.f32.mrb[46].mxu0  ;;  %v3062_v44 = vpop.f32.mrb[46].mxu1 }
 0x347   : > { %v2278_v45 = vadd.f32 %v7698_v17, %v2277_v43  ;;  %v4984_v46 = vpop.f32.mrb[47].mxu0  ;;  %v3063_v47 = vadd.f32 %v7698_v17, %v3062_v44  ;;  %v5455_v48 = vpop.f32.mrb[47].mxu1 }
 0x349   : > { %3238 = vst.msk [vmem:[%s6181_s12 + $0x4b8] sm:$0xff] %vm3086_vm2, %v2278_v45  ;;  %3395 = vst.msk [vmem:[%s6181_s12 + $0x9a0] sm:$0xff] %vm3086_vm2, %v3063_v47 }
 0x34a   : > { %v2282_v49 = vpop.f32.mrb[48].mxu0  ;;  %v3067_v50 = vpop.f32.mrb[48].mxu1 }
 0x34b   : > { %v2283_v52 = vadd.f32 %v7698_v17, %v2282_v49  ;;  %v4987_v53 = vpop.f32.mrb[49].mxu0  ;;  %v3068_v54 = vadd.f32 %v7698_v17, %v3067_v50  ;;  %v5458_v55 = vpop.f32.mrb[49].mxu1 }
 0x34d   : > { %3239 = vst.msk [vmem:[%s6181_s12 + $0x4c0] sm:$0xff] %vm3086_vm2, %v2283_v52  ;;  %3396 = vst.msk [vmem:[%s6181_s12 + $0x9a8] sm:$0xff] %vm3086_vm2, %v3068_v54 }
 0x34e   : > { %v2287_v56 = vpop.f32.mrb[50].mxu0  ;;  %v3072_v57 = vpop.f32.mrb[50].mxu1 }
 0x34f   : > { %v2288_v58 = vadd.f32 %v7698_v17, %v2287_v56  ;;  %v4990_v59 = vpop.f32.mrb[51].mxu0  ;;  %v3073_v60 = vadd.f32 %v7698_v17, %v3072_v57  ;;  %v5461_v61 = vpop.f32.mrb[51].mxu1 }
 0x351   : > { %3240 = vst.msk [vmem:[%s6181_s12 + $0x4c8] sm:$0xff] %vm3086_vm2, %v2288_v58  ;;  %3397 = vst.msk [vmem:[%s6181_s12 + $0x9b0] sm:$0xff] %vm3086_vm2, %v3073_v60 }
 0x352   : > { %v2292_v62 = vpop.f32.mrb[52].mxu0  ;;  %v3077_v63 = vpop.f32.mrb[52].mxu1 }
 0x353   : > { %v2293_v0 = vadd.f32 %v7698_v17, %v2292_v62  ;;  %v4993_v1 = vpop.f32.mrb[53].mxu0  ;;  %v3078_v2 = vadd.f32 %v7698_v17, %v3077_v63  ;;  %v5464_v3 = vpop.f32.mrb[53].mxu1 }
 0x355   : > { %3241 = vst.msk [vmem:[%s6181_s12 + $0x4d0] sm:$0xff] %vm3086_vm2, %v2293_v0  ;;  %3398 = vst.msk [vmem:[%s6181_s12 + $0x9b8] sm:$0xff] %vm3086_vm2, %v3078_v2 }
 0x356   : > { %v2297_v4 = vpop.f32.mrb[54].mxu0  ;;  %v3082_v5 = vpop.f32.mrb[54].mxu1 }
 0x357   : > { %v2298_v7 = vadd.f32 %v7698_v17, %v2297_v4  ;;  %v4996_v8 = vpop.f32.mrb[55].mxu0  ;;  %v3083_v9 = vadd.f32 %v7698_v17, %v3082_v5  ;;  %v5467_v10 = vpop.f32.mrb[55].mxu1  ;;  %3406 = sbr.rel (!%p5709_p4) target bundleno = 934 (0x3a6), region = 36 }
 0x359   : > { %3242 = vst.msk [vmem:[%s6181_s12 + $0x4d8] sm:$0xff] %vm3086_vm2, %v2298_v7  ;;  %3399 = vst.msk [vmem:[%s6181_s12 + $0x9c0] sm:$0xff] %vm3086_vm2, %v3083_v9 }
 0x35a   : > { %v2302_v11 = vpop.f32.mrb[56].mxu0 }
 0x35b   : > { %v2303_v12 = vadd.f32 %v7698_v17, %v2302_v11  ;;  %v4999_v13 = vpop.f32.mrb[57].mxu0 }
 0x35d   : > { %3243 = vst.msk [vmem:[%s6181_s12 + $0x4e0] sm:$0xff] %vm3086_vm2, %v2303_v12 }
 0x35e   : > { %s8169_s24 = smov (!%p3409_p8, %s3408_s24), 313 }
 0x35f   : > { %s4186_s30 = sshll.u32 %s8169_s24, 7 }
 0x360   : > { %p4189_p9 = scmp.eq.s32.totalorder %s4186_s30, 0 }
 0x361   : > { %s7962_s4 = sshrl.u32 (!%p4189_p9), %s8169_s24, 6 }
 0x362   : > { %3417 = sbr.rel (%p4189_p9) target bundleno = 934 (0x3a6), region = 40  ;;  %p4190_p10 = scmp.le.s32.totalorder (!%p4189_p9), %s7962_s4, 0 }
 0x369   : > { %3823 = sbr.rel (%p4190_p10) target bundleno = 913 (0x391), region = 116  ;;  %s8160_s15 = smov (!%p4190_p10), %s7956_s28 }
 0x36a   : > { %s8161_s20 = smov (!%p4190_p10), %s6181_s12  ;;  %s7971_s29 = smov (!%p4190_p10), 0  }
 0x36b   : > { %s7973_s5 = smov (!%p4190_p10), 0  }
 0x370 LB: >> { %v3605_v17 = vld [vmem:[%s5635_s20] sm:$0xff]  ;;  %v3607_v6 = vld [vmem:[%s5635_s20 + $0x8] sm:$0xff]  ;;  %v3609_v14 = vld [vmem:[%s5635_s20 + $0x10] sm:$0xff]  ;;  %s3733_s6 = sadd.s32 1, %s5639_s29  ;;  %s3599_s5 = sadd.s32 1, %s5643_s5   ;;  %s5643_s5 = sphi %s7973_s5, %s3599_s5   ;;  %s5639_s29 = sphi %s7971_s29, %s8164_s29   ;;  %s5635_s20 = sphi %s8161_s20, %s8163_s20   ;;  %s5631_s15 = sphi %s8160_s15, %s8162_s15  }
 0x371   : >> { %3606 = vst [vmem:[%s5631_s15] sm:$0xff] %v3605_v17  ;;  %3608 = vst [vmem:[%s5631_s15 + $0x8] sm:$0xff] %v3607_v6  ;;  %v3611_v15 = vld [vmem:[%s5635_s20 + $0x18] sm:$0xff]  ;;  %v3613_v16 = vld [vmem:[%s5635_s20 + $0x20] sm:$0xff]  ;;  %p3734_p11 = scmp.ge.s32.totalorder %s3733_s6, %s7962_s4  ;;  %p3598_p12 = scmp.ge.s32.totalorder %s3599_s5, %s7962_s4 }
 0x372   : >> { %3610 = vst [vmem:[%s5631_s15 + $0x10] sm:$0xff] %v3609_v14  ;;  %v3615_v32 = vld [vmem:[%s5635_s20 + $0x28] sm:$0xff]  ;;  %3612 = vst [vmem:[%s5631_s15 + $0x18] sm:$0xff] %v3611_v15  ;;  %v3617_v19 = vld [vmem:[%s5635_s20 + $0x30] sm:$0xff] }
 0x373   : >> { %3614 = vst [vmem:[%s5631_s15 + $0x20] sm:$0xff] %v3613_v16  ;;  %3616 = vst [vmem:[%s5631_s15 + $0x28] sm:$0xff] %v3615_v32  ;;  %v3619_v20 = vld [vmem:[%s5635_s20 + $0x38] sm:$0xff]  ;;  %v3621_v21 = vld [vmem:[%s5635_s20 + $0x40] sm:$0xff]  ;;  %s8171_s6 = smov (%p3734_p11, %s3733_s6), 0 }
 0x374   : >> { %3618 = vst [vmem:[%s5631_s15 + $0x30] sm:$0xff] %v3617_v19  ;;  %3620 = vst [vmem:[%s5631_s15 + $0x38] sm:$0xff] %v3619_v20  ;;  %v3623_v18 = vld [vmem:[%s5635_s20 + $0x48] sm:$0xff]  ;;  %v3625_v22 = vld [vmem:[%s5635_s20 + $0x50] sm:$0xff]  ;;  %s4191_s7 = sshll.u32 %s8171_s6, 9  ;;  %s8164_s29 = smov %s8171_s6 }
 0x375   : >> { %3622 = vst [vmem:[%s5631_s15 + $0x40] sm:$0xff] %v3621_v21  ;;  %v3627_v23 = vld [vmem:[%s5635_s20 + $0x58] sm:$0xff]  ;;  %3624 = vst [vmem:[%s5631_s15 + $0x48] sm:$0xff] %v3623_v18  ;;  %v3629_v24 = vld [vmem:[%s5635_s20 + $0x60] sm:$0xff]  ;;  %s8029_s8 = scalar_lea.vmem %s6181_s12, %s4191_s7 [#allocation2]   ;;  %s8032_s9 = scalar_lea.vmem %s7956_s28, %s4191_s7  }
 0x376   : >> { %3626 = vst [vmem:[%s5631_s15 + $0x50] sm:$0xff] %v3625_v22  ;;  %3628 = vst [vmem:[%s5631_s15 + $0x58] sm:$0xff] %v3627_v23  ;;  %v3631_v25 = vld [vmem:[%s5635_s20 + $0x68] sm:$0xff]  ;;  %v3633_v26 = vld [vmem:[%s5635_s20 + $0x70] sm:$0xff] }
 0x377   : >> { %3630 = vst [vmem:[%s5631_s15 + $0x60] sm:$0xff] %v3629_v24  ;;  %3632 = vst [vmem:[%s5631_s15 + $0x68] sm:$0xff] %v3631_v25  ;;  %v3635_v27 = vld [vmem:[%s5635_s20 + $0x78] sm:$0xff]  ;;  %v3637_v28 = vld [vmem:[%s5635_s20 + $0x80] sm:$0xff] }
 0x378   : >> { %3634 = vst [vmem:[%s5631_s15 + $0x70] sm:$0xff] %v3633_v26  ;;  %v3639_v29 = vld [vmem:[%s5635_s20 + $0x88] sm:$0xff]  ;;  %3636 = vst [vmem:[%s5631_s15 + $0x78] sm:$0xff] %v3635_v27  ;;  %v3641_v30 = vld [vmem:[%s5635_s20 + $0x90] sm:$0xff] }
 0x379   : >> { %3638 = vst [vmem:[%s5631_s15 + $0x80] sm:$0xff] %v3637_v28  ;;  %3640 = vst [vmem:[%s5631_s15 + $0x88] sm:$0xff] %v3639_v29  ;;  %v3643_v51 = vld [vmem:[%s5635_s20 + $0x98] sm:$0xff]  ;;  %v3645_v31 = vld [vmem:[%s5635_s20 + $0xa0] sm:$0xff] }
 0x37a   : >> { %3642 = vst [vmem:[%s5631_s15 + $0x90] sm:$0xff] %v3641_v30  ;;  %3644 = vst [vmem:[%s5631_s15 + $0x98] sm:$0xff] %v3643_v51  ;;  %v3647_v33 = vld [vmem:[%s5635_s20 + $0xa8] sm:$0xff]  ;;  %v3649_v34 = vld [vmem:[%s5635_s20 + $0xb0] sm:$0xff] }
 0x37b   : >> { %3646 = vst [vmem:[%s5631_s15 + $0xa0] sm:$0xff] %v3645_v31  ;;  %v3651_v35 = vld [vmem:[%s5635_s20 + $0xb8] sm:$0xff]  ;;  %3648 = vst [vmem:[%s5631_s15 + $0xa8] sm:$0xff] %v3647_v33  ;;  %v3653_v36 = vld [vmem:[%s5635_s20 + $0xc0] sm:$0xff] }
 0x37c   : >> { %3650 = vst [vmem:[%s5631_s15 + $0xb0] sm:$0xff] %v3649_v34  ;;  %3652 = vst [vmem:[%s5631_s15 + $0xb8] sm:$0xff] %v3651_v35  ;;  %v3655_v37 = vld [vmem:[%s5635_s20 + $0xc8] sm:$0xff]  ;;  %v3657_v38 = vld [vmem:[%s5635_s20 + $0xd0] sm:$0xff] }
 0x37d   : >> { %3654 = vst [vmem:[%s5631_s15 + $0xc0] sm:$0xff] %v3653_v36  ;;  %3656 = vst [vmem:[%s5631_s15 + $0xc8] sm:$0xff] %v3655_v37  ;;  %v3659_v39 = vld [vmem:[%s5635_s20 + $0xd8] sm:$0xff]  ;;  %v3661_v40 = vld [vmem:[%s5635_s20 + $0xe0] sm:$0xff] }
 0x37e   : >> { %3658 = vst [vmem:[%s5631_s15 + $0xd0] sm:$0xff] %v3657_v38  ;;  %v3663_v41 = vld [vmem:[%s5635_s20 + $0xe8] sm:$0xff]  ;;  %3660 = vst [vmem:[%s5631_s15 + $0xd8] sm:$0xff] %v3659_v39  ;;  %v3665_v42 = vld [vmem:[%s5635_s20 + $0xf0] sm:$0xff] }
 0x37f   : >> { %3662 = vst [vmem:[%s5631_s15 + $0xe0] sm:$0xff] %v3661_v40  ;;  %3664 = vst [vmem:[%s5631_s15 + $0xe8] sm:$0xff] %v3663_v41  ;;  %v3667_v43 = vld [vmem:[%s5635_s20 + $0xf8] sm:$0xff]  ;;  %v3669_v44 = vld [vmem:[%s5635_s20 + $0x100] sm:$0xff] }
 0x380   : >> { %3666 = vst [vmem:[%s5631_s15 + $0xf0] sm:$0xff] %v3665_v42  ;;  %3668 = vst [vmem:[%s5631_s15 + $0xf8] sm:$0xff] %v3667_v43  ;;  %v3671_v45 = vld [vmem:[%s5635_s20 + $0x108] sm:$0xff]  ;;  %v3673_v46 = vld [vmem:[%s5635_s20 + $0x110] sm:$0xff] }
 0x381   : >> { %3670 = vst [vmem:[%s5631_s15 + $0x100] sm:$0xff] %v3669_v44  ;;  %v3675_v47 = vld [vmem:[%s5635_s20 + $0x118] sm:$0xff]  ;;  %3672 = vst [vmem:[%s5631_s15 + $0x108] sm:$0xff] %v3671_v45  ;;  %v3677_v48 = vld [vmem:[%s5635_s20 + $0x120] sm:$0xff] }
 0x382   : >> { %3674 = vst [vmem:[%s5631_s15 + $0x110] sm:$0xff] %v3673_v46  ;;  %3676 = vst [vmem:[%s5631_s15 + $0x118] sm:$0xff] %v3675_v47  ;;  %v3679_v49 = vld [vmem:[%s5635_s20 + $0x128] sm:$0xff]  ;;  %v3681_v50 = vld [vmem:[%s5635_s20 + $0x130] sm:$0xff] }
 0x383   : >> { %3678 = vst [vmem:[%s5631_s15 + $0x120] sm:$0xff] %v3677_v48  ;;  %3680 = vst [vmem:[%s5631_s15 + $0x128] sm:$0xff] %v3679_v49  ;;  %v3683_v52 = vld [vmem:[%s5635_s20 + $0x138] sm:$0xff]  ;;  %v3685_v53 = vld [vmem:[%s5635_s20 + $0x140] sm:$0xff] }
 0x384   : >> { %3682 = vst [vmem:[%s5631_s15 + $0x130] sm:$0xff] %v3681_v50  ;;  %v3687_v54 = vld [vmem:[%s5635_s20 + $0x148] sm:$0xff]  ;;  %3684 = vst [vmem:[%s5631_s15 + $0x138] sm:$0xff] %v3683_v52  ;;  %v3689_v55 = vld [vmem:[%s5635_s20 + $0x150] sm:$0xff] }
 0x385   : >> { %3686 = vst [vmem:[%s5631_s15 + $0x140] sm:$0xff] %v3685_v53  ;;  %3688 = vst [vmem:[%s5631_s15 + $0x148] sm:$0xff] %v3687_v54  ;;  %v3691_v56 = vld [vmem:[%s5635_s20 + $0x158] sm:$0xff]  ;;  %v3693_v57 = vld [vmem:[%s5635_s20 + $0x160] sm:$0xff] }
 0x386   : >> { %3690 = vst [vmem:[%s5631_s15 + $0x150] sm:$0xff] %v3689_v55  ;;  %3692 = vst [vmem:[%s5631_s15 + $0x158] sm:$0xff] %v3691_v56  ;;  %v3695_v58 = vld [vmem:[%s5635_s20 + $0x168] sm:$0xff]  ;;  %v3697_v59 = vld [vmem:[%s5635_s20 + $0x170] sm:$0xff] }
 0x387   : >> { %3694 = vst [vmem:[%s5631_s15 + $0x160] sm:$0xff] %v3693_v57  ;;  %v3699_v60 = vld [vmem:[%s5635_s20 + $0x178] sm:$0xff]  ;;  %3696 = vst [vmem:[%s5631_s15 + $0x168] sm:$0xff] %v3695_v58  ;;  %v3701_v61 = vld [vmem:[%s5635_s20 + $0x180] sm:$0xff] }
 0x388   : >> { %3698 = vst [vmem:[%s5631_s15 + $0x170] sm:$0xff] %v3697_v59  ;;  %3700 = vst [vmem:[%s5631_s15 + $0x178] sm:$0xff] %v3699_v60  ;;  %v3703_v62 = vld [vmem:[%s5635_s20 + $0x188] sm:$0xff]  ;;  %v3705_v63 = vld [vmem:[%s5635_s20 + $0x190] sm:$0xff] }
 0x389   : >> { %3702 = vst [vmem:[%s5631_s15 + $0x180] sm:$0xff] %v3701_v61  ;;  %3704 = vst [vmem:[%s5631_s15 + $0x188] sm:$0xff] %v3703_v62  ;;  %v3707_v0 = vld [vmem:[%s5635_s20 + $0x198] sm:$0xff]  ;;  %v3709_v1 = vld [vmem:[%s5635_s20 + $0x1a0] sm:$0xff] }
 0x38a   : >> { %3706 = vst [vmem:[%s5631_s15 + $0x190] sm:$0xff] %v3705_v63  ;;  %v3711_v2 = vld [vmem:[%s5635_s20 + $0x1a8] sm:$0xff]  ;;  %3708 = vst [vmem:[%s5631_s15 + $0x198] sm:$0xff] %v3707_v0  ;;  %v3713_v3 = vld [vmem:[%s5635_s20 + $0x1b0] sm:$0xff]  ;;  %3601 = sbr.rel (!%p3598_p12) target bundleno = 880 (0x370), region = 122 }
 0x38b   : >> { %3710 = vst [vmem:[%s5631_s15 + $0x1a0] sm:$0xff] %v3709_v1  ;;  %3712 = vst [vmem:[%s5631_s15 + $0x1a8] sm:$0xff] %v3711_v2  ;;  %v3715_v4 = vld [vmem:[%s5635_s20 + $0x1b8] sm:$0xff]  ;;  %v3717_v5 = vld [vmem:[%s5635_s20 + $0x1c0] sm:$0xff] }
 0x38c   : >> { %3714 = vst [vmem:[%s5631_s15 + $0x1b0] sm:$0xff] %v3713_v3  ;;  %3716 = vst [vmem:[%s5631_s15 + $0x1b8] sm:$0xff] %v3715_v4  ;;  %v3719_v7 = vld [vmem:[%s5635_s20 + $0x1c8] sm:$0xff]  ;;  %v3721_v8 = vld [vmem:[%s5635_s20 + $0x1d0] sm:$0xff] }
 0x38d   : >> { %3718 = vst [vmem:[%s5631_s15 + $0x1c0] sm:$0xff] %v3717_v5  ;;  %v3723_v9 = vld [vmem:[%s5635_s20 + $0x1d8] sm:$0xff]  ;;  %3720 = vst [vmem:[%s5631_s15 + $0x1c8] sm:$0xff] %v3719_v7  ;;  %v3725_v10 = vld [vmem:[%s5635_s20 + $0x1e0] sm:$0xff] }
 0x38e   : >> { %3722 = vst [vmem:[%s5631_s15 + $0x1d0] sm:$0xff] %v3721_v8  ;;  %3724 = vst [vmem:[%s5631_s15 + $0x1d8] sm:$0xff] %v3723_v9  ;;  %v3727_v11 = vld [vmem:[%s5635_s20 + $0x1e8] sm:$0xff]  ;;  %v3729_v12 = vld [vmem:[%s5635_s20 + $0x1f0] sm:$0xff] }
 0x38f   : >> { %3726 = vst [vmem:[%s5631_s15 + $0x1e0] sm:$0xff] %v3725_v10  ;;  %3728 = vst [vmem:[%s5631_s15 + $0x1e8] sm:$0xff] %v3727_v11  ;;  %v3731_v13 = vld [vmem:[%s5635_s20 + $0x1f8] sm:$0xff]  ;;  %s8163_s20 = smov %s8029_s8 }
 0x390   : >> { %3730 = vst [vmem:[%s5631_s15 + $0x1f0] sm:$0xff] %v3729_v12  ;;  %3732 = vst [vmem:[%s5631_s15 + $0x1f8] sm:$0xff] %v3731_v13  ;;  %s8162_s15 = smov %s8032_s9 }
 0x391 PF: > { %s8137_s10 = sand.u32 63, %s8169_s24   ;;  %s4202_s11 = sshll.u32 %s7962_s4, 9 }
 0x392   : > { %s3744_s14 = scalar_lea.vmem %s6181_s12, %s4202_s11 [#allocation2]   ;;  %s3746_s17 = scalar_lea.vmem %s7956_s28, %s4202_s11  }
 0x393   : > { %p4196_p13 = scmp.le.s32.totalorder %s8137_s10, 0 }
 0x394   : > { %s5645_s18 = smov (!%p4196_p13), %s3746_s17   ;;  %s5649_s21 = smov (!%p4196_p13), %s3744_s14  }
 0x395   : > { %3837 = sbr.rel (%p4196_p13) target bundleno = 934 (0x3a6), region = 127  ;;  %s5653_s22 = smov (!%p4196_p13), 0  }
 0x396   : > { %s5657_s23 = smov (!%p4196_p13), 0  }
 0x39c LB: >> { %v3756_v17 = vld [vmem:[%s5651_s21] sm:$0xff]  ;;  %s3758_s24 = sadd.s32 1, %s5655_s22  ;;  %s3750_s23 = sadd.s32 1, %s5659_s23   ;;  %s5659_s23 = sphi %s5657_s23, %s3750_s23   ;;  %s5655_s22 = sphi %s5653_s22, %s5654_s22   ;;  %s5651_s21 = sphi %s5649_s21, %s3763_s21   ;;  %s5647_s18 = sphi %s5645_s18, %s3764_s18  }
 0x39d   : >> { %3757 = vst [vmem:[%s5647_s18] sm:$0xff] %v3756_v17  ;;  %p3759_p0 = scmp.ge.s32.totalorder %s3758_s24, %s8137_s10  ;;  %p3749_p1 = scmp.ge.s32.totalorder %s3750_s23, %s8137_s10 }
 0x39f   : >> { %s8173_s24 = smov (%p3759_p0, %s3758_s24), 0  ;;  %3752 = sbr.rel (!%p3749_p1) target bundleno = 924 (0x39c), region = 133 }
 0x3a0   : >> { %s4197_s12 = sshll.u32 %s8173_s24, 3  ;;  %s5654_s22 = smov %s8173_s24  }
 0x3a1   : >> { %s3763_s21 = scalar_lea.vmem %s3744_s14, %s4197_s12 [#allocation2]   ;;  %s3764_s18 = scalar_lea.vmem %s3746_s17, %s4197_s12  }
 0x3a6 PF: > { %p10_p2 = scmp.ge.s32.totalorder %s5699_s16, 4   ;;  %s8165_s12 = smov %s5623_s13 }
 0x3a7   : > { %s8166_s13 = smov %s5707_s19  ;;  %s8167_s14 = smov %s5699_s16 }
 0x3a8   :  { %12 = sbr.rel (!%p10_p2) target bundleno = 2 (0x2), region = 144 }

</bundles_post_ra>
